<compile_context>
chip_gen: v6e
topology: v6e:2x2x1
jax: 0.10.0
libtpu: 0.0.40
codegen_flags: <defaults>
</compile_context>

<pallas_src>
import functools
import jax
import jax.numpy as jnp
from jax.experimental import pallas as pl
from jax.experimental.pallas import tpu as pltpu

# ----------------------------- config (small) -------------------------------
B = 2            # real batch
BP = 8           # batch padded to a full 8-sublane tile
S = 8            # sequence length
VOCAB = 100      # synthetic vocab
HID = 32         # bert hidden size
NH = 2           # attention heads
DH = HID // NH   # head dim
FFN = 64         # bert intermediate size
LH = 16          # lstm_hidden_size (small stand-in for 128)
LANE = 128       # lane-padded slab width
NUM_EMO = 3      # num_emotion_classes
BINARY_COLS = ['sản phẩm', 'giá cả', 'vận chuyển',
               'thái độ và dịch vụ khách hàng', 'khác']
NUM_BIN = len(BINARY_COLS)
N = S * BP       # time-major row count (multiple of 8)

_VMEM = pl.BlockSpec(memory_space=pltpu.MemorySpace.VMEM)


# --------------------------- fused forward kernel ----------------------------
def _fused_kernel(emb_ref, bias_ref,
                  ln_e_g, ln_e_b,
                  w_qkv, b_qkv, w_o, b_o,
                  ln1_g, ln1_b,
                  w_f1, b_f1, w_f2, b_f2,
                  ln2_g, ln2_b,
                  wih_f, whh_f, b_f,
                  wih_b, b_b,
                  w_hf, w_hb, b_head,
                  out_ref):
    f32 = jnp.float32

    def ln(x, g_ref, bias_ref_, eps=1e-12):
        mu = jnp.mean(x, axis=-1, keepdims=True)
        var = jnp.mean(jnp.square(x - mu), axis=-1, keepdims=True)
        return (x - mu) * jax.lax.rsqrt(var + eps) * g_ref[...] + bias_ref_[...]

    # ---- BERT-lite encoder (time-major rows: row = t*BP + b) ----
    h = ln(emb_ref[...], ln_e_g, ln_e_b)                        # [N, HID]

    # merged Q/K/V projection, each head at a 128-lane-aligned slab (zero-padded
    # lanes DH..127): one [HID, 6*128] matmul, all slices below are free views.
    qkv = jnp.dot(h, w_qkv[...], preferred_element_type=f32) + b_qkv[...]   # [N, 6*128]
    att_bias = bias_ref[...]                                    # [N, N] block-diag + key mask
    w_o_all = w_o[...]                                          # [NH*128, HID], row-padded
    scale = 1.0 / (DH ** 0.5)

    attn = jnp.zeros((N, HID), f32)
    for hd in range(NH):                                        # NH=2, static
        q = qkv[:, hd * LANE:(hd + 1) * LANE]
        k = qkv[:, (NH + hd) * LANE:(NH + hd + 1) * LANE]
        v = qkv[:, (2 * NH + hd) * LANE:(2 * NH + hd + 1) * LANE]
        # plain 2-D matmuls over flattened rows; cross-batch / padded keys are
        # killed by the additive block-diagonal bias.
        s = jax.lax.dot_general(q, k, (((1,), (1,)), ((), ())),
                                preferred_element_type=f32) * scale + att_bias
        s = s - jnp.max(s, axis=-1, keepdims=True)
        p = jnp.exp(s)
        p = p * pl.reciprocal(jnp.sum(p, axis=-1, keepdims=True), approx=True)
        ctx = jnp.dot(p, v, preferred_element_type=f32)         # [N, 128], padded lanes = 0
        # head concat absorbed into the (row-padded) output projection.
        attn = attn + jnp.dot(ctx, w_o_all[hd * LANE:(hd + 1) * LANE, :],
                              preferred_element_type=f32)

    h = ln(h + attn + b_o[...], ln1_g, ln1_b)
    # TODO(synk): HF BERT uses exact (erf) gelu; tanh approximation used here.
    ffn = jax.nn.gelu(jnp.dot(h, w_f1[...], preferred_element_type=f32) + b_f1[...],
                      approximate=True)
    h = ln(h + jnp.dot(ffn, w_f2[...], preferred_element_type=f32) + b_f2[...],
           ln2_g, ln2_b)                                        # last_hidden_state, [N, HID]

    # ---- BiLSTM forward direction ----
    # Input projection hoisted out of the recurrence; each gate occupies its own
    # 128-lane slab (padded lanes are exactly 0), so the recurrence below is one
    # matmul + whole-slab sigmoid/tanh + lane-aligned picks per step.
    xz = jnp.dot(h, wih_f[...], preferred_element_type=f32) + b_f[...]      # [N, 4*128]
    xz_tm = xz.reshape(S, BP, 4 * LANE)                         # time-major: [t] = full tile
    whh = whh_f[...]                                            # [128, 4*128], padded rows/cols 0

    hs = jnp.zeros((BP, LANE), f32)   # padded lanes LH..127 provably stay 0
    cs = jnp.zeros((BP, LANE), f32)
    for t in range(S):  # S=8: static unroll. TODO(synk): lax.fori_loop(unroll=True) if S grows.
        z = xz_tm[t] + jnp.dot(hs, whh, preferred_element_type=f32)   # ONE matmul / step
        sz = jax.nn.sigmoid(z)
        tz = jnp.tanh(z)
        i = sz[:, 0 * LANE:1 * LANE]
        f = sz[:, 1 * LANE:2 * LANE]
        g = tz[:, 2 * LANE:3 * LANE]
        o = sz[:, 3 * LANE:4 * LANE]
        cs = f * cs + i * g
        hs = o * jnp.tanh(cs)

    # Backward direction at t = S-1 is its very first recurrence step from zero
    # state: h_prev @ Whh_b == 0 and f * c_prev == 0, so compute it closed-form
    # (Whh_b does not influence lstm_out[:, -1, :] and is omitted).
    x_last = h.reshape(S, BP, HID)[S - 1]                       # [BP, HID], leading-axis select
    zb = jnp.dot(x_last, wih_b[...], preferred_element_type=f32) + b_b[...]
    ib = jax.nn.sigmoid(zb[:, 0 * LANE:1 * LANE])
    gb = jnp.tanh(zb[:, 2 * LANE:3 * LANE])
    ob = jax.nn.sigmoid(zb[:, 3 * LANE:4 * LANE])
    hb = ob * jnp.tanh(ib * gb)                                 # [BP, 128], padded lanes 0

    # dropout: identity (eval mode)
    # ---- merged classification heads: unmasked (8,128) lane/sublane-dense store ----
    out_ref[...] = (jnp.dot(hs, w_hf[...], preferred_element_type=f32)
                    + jnp.dot(hb, w_hb[...], preferred_element_type=f32)
                    + b_head[...])


def _fused_forward_call(emb, att_bias, p):
    n_in = 24
    return pl.pallas_call(
        _fused_kernel,
        out_shape=jax.ShapeDtypeStruct((BP, LANE), jnp.float32),
        in_specs=[_VMEM] * n_in,
        out_specs=_VMEM,
        # VMEM footprint is <1 MiB: leave the scoped-VMEM limit at its default.
        # TODO(synk): at real BERT sizes (HID=768, multi-layer, big batch), stream
        # per-layer weights via BlockSpec pipelining (bf16) sized against v7x's
        # 64 MiB VMEM and add a parallel batch grid axis (v7x has 2 TensorCores).
    )(emb, att_bias,
      p["ln_emb_g"], p["ln_emb_b"],
      p["w_qkv"], p["b_qkv"], p["w_o"], p["b_o"],
      p["ln1_g"], p["ln1_b"],
      p["w_ffn1"], p["b_ffn1"], p["w_ffn2"], p["b_ffn2"],
      p["ln2_g"], p["ln2_b"],
      p["wih_f"], p["whh_f"], p["b_f"],
      p["wih_b"], p["b_b"],
      p["w_head_f"], p["w_head_b"], p["b_head"])


# ------------------------- padded-layout weight helpers ----------------------
def _scatter_cols(w, chunk, pad=LANE):
    """Place each `chunk`-wide column block at a 128-lane-aligned offset."""
    rows, cols = w.shape
    n = cols // chunk
    out = jnp.zeros((rows, n * pad), w.dtype)
    for i in range(n):
        out = out.at[:, i * pad:i * pad + chunk].set(w[:, i * chunk:(i + 1) * chunk])
    return out


def _pad_rows(w, pad_to):
    rows, cols = w.shape
    return jnp.zeros((pad_to, cols), w.dtype).at[:rows, :].set(w)


# ------------------------------ parameters ----------------------------------
def init_params(key):
    keys = iter(jax.random.split(key, 16))

    def w(shape):
        return jax.random.normal(next(keys), shape, jnp.float32) * 0.02

    f32 = jnp.float32

    # attention: merged, per-head lane-padded QKV -> [HID, 6*128] (Q heads | K heads | V heads)
    w_q, w_k, w_v = w((HID, HID)), w((HID, HID)), w((HID, HID))
    w_qkv = jnp.concatenate([_scatter_cols(w_q, DH),
                             _scatter_cols(w_k, DH),
                             _scatter_cols(w_v, DH)], axis=1)
    # output projection split by head, each head's DH rows padded to 128 -> [NH*128, HID]
    w_o_small = w((HID, HID))
    w_o = jnp.concatenate(
        [_pad_rows(w_o_small[hd * DH:(hd + 1) * DH, :], LANE) for hd in range(NH)], axis=0)

    # BiLSTM (gate order i,f,g,o; each gate padded to a 128-lane slab; biases = b_ih + b_hh).
    # Whh of the backward direction never affects lstm_out[:, -1, :] -> omitted.
    wih_f = _scatter_cols(w((HID, 4 * LH)), LH)                     # [HID, 4*128]
    whh_f = _pad_rows(_scatter_cols(w((LH, 4 * LH)), LH), LANE)     # [128, 4*128]
    wih_b = _scatter_cols(w((HID, 4 * LH)), LH)                     # [HID, 4*128]

    # merged classification heads (emotion || binary) padded to 128 output lanes,
    # split into forward-hidden / backward-hidden row blocks (row-padded to 128).
    w_emo = w((2 * LH, NUM_EMO))
    w_bin = w((2 * LH, NUM_BIN))
    w_head = jnp.zeros((2 * LH, LANE), f32)
    w_head = w_head.at[:, :NUM_EMO].set(w_emo)
    w_head = w_head.at[:, NUM_EMO:NUM_EMO + NUM_BIN].set(w_bin)
    w_head_f = _pad_rows(w_head[:LH, :], LANE)
    w_head_b = _pad_rows(w_head[LH:, :], LANE)

    return {
        # BERT-lite embeddings + encoder layer (all f32: no per-matmul casts)
        "word_emb": w((VOCAB, HID)),
        "pos_emb": w((S, HID)),
        "ln_emb_g": jnp.ones((1, HID), f32),
        "ln_emb_b": jnp.zeros((1, HID), f32),
        "w_qkv": w_qkv, "b_qkv": jnp.zeros((1, 3 * NH * LANE), f32),
        "w_o": w_o, "b_o": jnp.zeros((1, HID), f32),
        "ln1_g": jnp.ones((1, HID), f32), "ln1_b": jnp.zeros((1, HID), f32),
        "w_ffn1": w((HID, FFN)), "b_ffn1": jnp.zeros((1, FFN), f32),
        "w_ffn2": w((FFN, HID)), "b_ffn2": jnp.zeros((1, HID), f32),
        "ln2_g": jnp.ones((1, HID), f32), "ln2_b": jnp.zeros((1, HID), f32),
        # BiLSTM
        "wih_f": wih_f, "whh_f": whh_f, "b_f": jnp.zeros((1, 4 * LANE), f32),
        "wih_b": wih_b, "b_b": jnp.zeros((1, 4 * LANE), f32),
        # merged heads
        "w_head_f": w_head_f, "w_head_b": w_head_b,
        "b_head": jnp.zeros((1, LANE), f32),
    }


# ------------------------------ forward pass --------------------------------
def bert_bilstm_forward(params, input_ids, attention_mask):
    Bx, Sx = input_ids.shape

    # Embedding row gather stays in XLA (tiny).
    # TODO(synk): at real vocab/HID sizes, move the gather into the kernel via
    # PrefetchScalarGridSpec + pl.Element row-gather index_map.
    emb = (jnp.take(params["word_emb"], input_ids, axis=0)
           + params["pos_emb"][None, :Sx, :])                           # [B, S, HID]

    # Pad batch to a full 8-sublane tile and go time-major (row = t*BP + b).
    emb = jnp.concatenate(
        [emb, jnp.zeros((BP - Bx, Sx, HID), emb.dtype)], axis=0)        # [BP, S, HID]
    emb_tm = jnp.transpose(emb, (1, 0, 2)).reshape(S * BP, HID)         # [N, HID]

    # Block-diagonal additive attention bias over flattened time-major rows:
    # bias[i, j] = 0 if (same batch) and (key j valid) else -1e9.
    mask_p = jnp.concatenate(
        [attention_mask.astype(jnp.float32),
         jnp.ones((BP - Bx, Sx), jnp.float32)], axis=0)                 # [BP, S]
    batch_of_row = jnp.tile(jnp.arange(BP), S)                          # row i -> batch i % BP
    key_valid = jnp.transpose(mask_p).reshape(S * BP)
    att_bias = jnp.where(
        (batch_of_row[:, None] == batch_of_row[None, :]) & (key_valid[None, :] > 0.5),
        0.0, -1e9).astype(jnp.float32)                                  # [N, N]

    out = _fused_forward_call(emb_tm, att_bias, params)                 # [BP, 128]

    emo_logits = out[:Bx, :NUM_EMO]                                     # [B, NUM_EMO]
    bin_all = out[:Bx, NUM_EMO:NUM_EMO + NUM_BIN]                       # [B, 5]
    bin_logits = {col: bin_all[:, i] for i, col in enumerate(BINARY_COLS)}
    return emo_logits, bin_logits


# --------------------------------- main --------------------------------------
if __name__ == "__main__":
    root = jax.random.PRNGKey(0)
    pkey, idkey = jax.random.split(root)

    params = init_params(pkey)
    input_ids = jax.random.randint(idkey, (B, S), 0, VOCAB, dtype=jnp.int32)
    attention_mask = jnp.ones((B, S), jnp.float32).at[1, 6:].set(0.0)

    fwd = jax.jit(functools.partial(bert_bilstm_forward, params))
    emo_logits, bin_logits = fwd(input_ids, attention_mask)

    jax.block_until_ready(emo_logits)
    for v in bin_logits.values():
        jax.block_until_ready(v)

    assert emo_logits.shape == (B, NUM_EMO)
    assert all(v.shape == (B,) for v in bin_logits.values())
    print("KERNEL_OK")
</pallas_src>

<mosaic_0001>
module attributes {stable_mosaic.version = 11 : i64} {
  func.func @_fused_kernel(%arg0: memref<64x32xf32, #tpu.memory_space<vmem>>, %arg1: memref<64x64xf32, #tpu.memory_space<vmem>>, %arg2: memref<1x32xf32, #tpu.memory_space<vmem>>, %arg3: memref<1x32xf32, #tpu.memory_space<vmem>>, %arg4: memref<32x768xf32, #tpu.memory_space<vmem>>, %arg5: memref<1x768xf32, #tpu.memory_space<vmem>>, %arg6: memref<256x32xf32, #tpu.memory_space<vmem>>, %arg7: memref<1x32xf32, #tpu.memory_space<vmem>>, %arg8: memref<1x32xf32, #tpu.memory_space<vmem>>, %arg9: memref<1x32xf32, #tpu.memory_space<vmem>>, %arg10: memref<32x64xf32, #tpu.memory_space<vmem>>, %arg11: memref<1x64xf32, #tpu.memory_space<vmem>>, %arg12: memref<64x32xf32, #tpu.memory_space<vmem>>, %arg13: memref<1x32xf32, #tpu.memory_space<vmem>>, %arg14: memref<1x32xf32, #tpu.memory_space<vmem>>, %arg15: memref<1x32xf32, #tpu.memory_space<vmem>>, %arg16: memref<32x512xf32, #tpu.memory_space<vmem>>, %arg17: memref<128x512xf32, #tpu.memory_space<vmem>>, %arg18: memref<1x512xf32, #tpu.memory_space<vmem>>, %arg19: memref<32x512xf32, #tpu.memory_space<vmem>>, %arg20: memref<1x512xf32, #tpu.memory_space<vmem>>, %arg21: memref<128x128xf32, #tpu.memory_space<vmem>>, %arg22: memref<128x128xf32, #tpu.memory_space<vmem>>, %arg23: memref<1x128xf32, #tpu.memory_space<vmem>>, %arg24: memref<8x128xf32, #tpu.memory_space<vmem>>) attributes {dimension_semantics = [], scalar_prefetch = 0 : i64, scratch_operands = 0 : i64, tpu.core_type = #tpu.core_type<tc>} {
    %c0 = arith.constant 0 : index
    %c0_0 = arith.constant 0 : index
    %0 = vector.load %arg0[%c0, %c0_0] : memref<64x32xf32, #tpu.memory_space<vmem>>, vector<64x32xf32>
    %cst = arith.constant dense<0.000000e+00> : vector<64xf32>
    %1 = vector.multi_reduction <add>, %0, %cst [1] : vector<64x32xf32> to vector<64xf32>
    %2 = vector.shape_cast %1 : vector<64xf32> to vector<64x1xf32>
    %cst_1 = arith.constant 3.200000e+01 : f32
    %3 = vector.broadcast %cst_1 : f32 to vector<64x1xf32>
    %4 = arith.divf %2, %3 : vector<64x1xf32>
    %5 = vector.broadcast %4 : vector<64x1xf32> to vector<64x32xf32>
    %6 = arith.subf %0, %5 : vector<64x32xf32>
    %7 = arith.mulf %6, %6 : vector<64x32xf32>
    %cst_2 = arith.constant dense<0.000000e+00> : vector<64xf32>
    %8 = vector.multi_reduction <add>, %7, %cst_2 [1] : vector<64x32xf32> to vector<64xf32>
    %9 = vector.shape_cast %8 : vector<64xf32> to vector<64x1xf32>
    %cst_3 = arith.constant 3.200000e+01 : f32
    %10 = vector.broadcast %cst_3 : f32 to vector<64x1xf32>
    %11 = arith.divf %9, %10 : vector<64x1xf32>
    %12 = vector.broadcast %4 : vector<64x1xf32> to vector<64x32xf32>
    %13 = arith.subf %0, %12 : vector<64x32xf32>
    %cst_4 = arith.constant 9.99999996E-13 : f32
    %14 = vector.broadcast %cst_4 : f32 to vector<64x1xf32>
    %15 = arith.addf %11, %14 : vector<64x1xf32>
    %16 = math.rsqrt %15 : vector<64x1xf32>
    %17 = vector.broadcast %16 : vector<64x1xf32> to vector<64x32xf32>
    %18 = arith.mulf %13, %17 : vector<64x32xf32>
    %c0_5 = arith.constant 0 : index
    %c0_6 = arith.constant 0 : index
    %19 = vector.load %arg2[%c0_5, %c0_6] : memref<1x32xf32, #tpu.memory_space<vmem>>, vector<1x32xf32>
    %20 = vector.broadcast %19 : vector<1x32xf32> to vector<64x32xf32>
    %21 = arith.mulf %18, %20 : vector<64x32xf32>
    %c0_7 = arith.constant 0 : index
    %c0_8 = arith.constant 0 : index
    %22 = vector.load %arg3[%c0_7, %c0_8] : memref<1x32xf32, #tpu.memory_space<vmem>>, vector<1x32xf32>
    %23 = vector.broadcast %22 : vector<1x32xf32> to vector<64x32xf32>
    %24 = arith.addf %21, %23 : vector<64x32xf32>
    %c0_9 = arith.constant 0 : index
    %c0_10 = arith.constant 0 : index
    %25 = vector.load %arg4[%c0_9, %c0_10] : memref<32x768xf32, #tpu.memory_space<vmem>>, vector<32x768xf32>
    %cst_11 = arith.constant dense<0.000000e+00> : vector<64x768xf32>
    %26 = tpu.matmul %24, %25, %cst_11 {dimension_numbers = #tpu.dot_dimension_numbers<[1], [0], [0], [1], [0, 0, 1, 1], [], []>} : vector<64x32xf32>, vector<32x768xf32>, vector<64x768xf32> -> vector<64x768xf32>
    %c0_12 = arith.constant 0 : index
    %c0_13 = arith.constant 0 : index
    %27 = vector.load %arg5[%c0_12, %c0_13] : memref<1x768xf32, #tpu.memory_space<vmem>>, vector<1x768xf32>
    %28 = vector.broadcast %27 : vector<1x768xf32> to vector<64x768xf32>
    %29 = arith.addf %26, %28 : vector<64x768xf32>
    %c0_14 = arith.constant 0 : index
    %c0_15 = arith.constant 0 : index
    %30 = vector.load %arg1[%c0_14, %c0_15] : memref<64x64xf32, #tpu.memory_space<vmem>>, vector<64x64xf32>
    %c0_16 = arith.constant 0 : index
    %c0_17 = arith.constant 0 : index
    %31 = vector.load %arg6[%c0_16, %c0_17] : memref<256x32xf32, #tpu.memory_space<vmem>>, vector<256x32xf32>
    %cst_18 = arith.constant 0.000000e+00 : f32
    %32 = vector.broadcast %cst_18 : f32 to vector<64x32xf32>
    %33 = vector.extract_strided_slice %29 {offsets = [0, 0], sizes = [64, 128], strides = [1, 1]} : vector<64x768xf32> to vector<64x128xf32>
    %34 = vector.extract_strided_slice %29 {offsets = [0, 256], sizes = [64, 128], strides = [1, 1]} : vector<64x768xf32> to vector<64x128xf32>
    %35 = vector.extract_strided_slice %29 {offsets = [0, 512], sizes = [64, 128], strides = [1, 1]} : vector<64x768xf32> to vector<64x128xf32>
    %cst_19 = arith.constant dense<0.000000e+00> : vector<64x64xf32>
    %36 = tpu.matmul %33, %34, %cst_19 {dimension_numbers = #tpu.dot_dimension_numbers<[1], [1], [0], [0], [0, 0, 1, 0], [], []>} : vector<64x128xf32>, vector<64x128xf32>, vector<64x64xf32> -> vector<64x64xf32>
    %cst_20 = arith.constant 2.500000e-01 : f32
    %37 = vector.broadcast %cst_20 : f32 to vector<64x64xf32>
    %38 = arith.mulf %36, %37 : vector<64x64xf32>
    %39 = arith.addf %38, %30 : vector<64x64xf32>
    %cst_21 = arith.constant dense<0xFF800000> : vector<64xf32>
    %40 = vector.multi_reduction <maximumf>, %39, %cst_21 [1] : vector<64x64xf32> to vector<64xf32>
    %41 = vector.shape_cast %40 : vector<64xf32> to vector<64x1xf32>
    %42 = vector.broadcast %41 : vector<64x1xf32> to vector<64x64xf32>
    %43 = arith.subf %39, %42 : vector<64x64xf32>
    %44 = math.exp %43 : vector<64x64xf32>
    %cst_22 = arith.constant dense<0.000000e+00> : vector<64xf32>
    %45 = vector.multi_reduction <add>, %44, %cst_22 [1] : vector<64x64xf32> to vector<64xf32>
    %46 = vector.shape_cast %45 : vector<64xf32> to vector<64x1xf32>
    %47 = tpu.reciprocal %46 {approx = true} : vector<64x1xf32> -> vector<64x1xf32>
    %48 = vector.broadcast %47 : vector<64x1xf32> to vector<64x64xf32>
    %49 = arith.mulf %44, %48 : vector<64x64xf32>
    %cst_23 = arith.constant dense<0.000000e+00> : vector<64x128xf32>
    %50 = tpu.matmul %49, %35, %cst_23 {dimension_numbers = #tpu.dot_dimension_numbers<[1], [0], [0], [1], [0, 0, 1, 1], [], []>} : vector<64x64xf32>, vector<64x128xf32>, vector<64x128xf32> -> vector<64x128xf32>
    %51 = vector.extract_strided_slice %31 {offsets = [0, 0], sizes = [128, 32], strides = [1, 1]} : vector<256x32xf32> to vector<128x32xf32>
    %cst_24 = arith.constant dense<0.000000e+00> : vector<64x32xf32>
    %52 = tpu.matmul %50, %51, %cst_24 {dimension_numbers = #tpu.dot_dimension_numbers<[1], [0], [0], [1], [0, 0, 1, 1], [], []>} : vector<64x128xf32>, vector<128x32xf32>, vector<64x32xf32> -> vector<64x32xf32>
    %53 = arith.addf %32, %52 : vector<64x32xf32>
    %54 = vector.extract_strided_slice %29 {offsets = [0, 128], sizes = [64, 128], strides = [1, 1]} : vector<64x768xf32> to vector<64x128xf32>
    %55 = vector.extract_strided_slice %29 {offsets = [0, 384], sizes = [64, 128], strides = [1, 1]} : vector<64x768xf32> to vector<64x128xf32>
    %56 = vector.extract_strided_slice %29 {offsets = [0, 640], sizes = [64, 128], strides = [1, 1]} : vector<64x768xf32> to vector<64x128xf32>
    %cst_25 = arith.constant dense<0.000000e+00> : vector<64x64xf32>
    %57 = tpu.matmul %54, %55, %cst_25 {dimension_numbers = #tpu.dot_dimension_numbers<[1], [1], [0], [0], [0, 0, 1, 0], [], []>} : vector<64x128xf32>, vector<64x128xf32>, vector<64x64xf32> -> vector<64x64xf32>
    %cst_26 = arith.constant 2.500000e-01 : f32
    %58 = vector.broadcast %cst_26 : f32 to vector<64x64xf32>
    %59 = arith.mulf %57, %58 : vector<64x64xf32>
    %60 = arith.addf %59, %30 : vector<64x64xf32>
    %cst_27 = arith.constant dense<0xFF800000> : vector<64xf32>
    %61 = vector.multi_reduction <maximumf>, %60, %cst_27 [1] : vector<64x64xf32> to vector<64xf32>
    %62 = vector.shape_cast %61 : vector<64xf32> to vector<64x1xf32>
    %63 = vector.broadcast %62 : vector<64x1xf32> to vector<64x64xf32>
    %64 = arith.subf %60, %63 : vector<64x64xf32>
    %65 = math.exp %64 : vector<64x64xf32>
    %cst_28 = arith.constant dense<0.000000e+00> : vector<64xf32>
    %66 = vector.multi_reduction <add>, %65, %cst_28 [1] : vector<64x64xf32> to vector<64xf32>
    %67 = vector.shape_cast %66 : vector<64xf32> to vector<64x1xf32>
    %68 = tpu.reciprocal %67 {approx = true} : vector<64x1xf32> -> vector<64x1xf32>
    %69 = vector.broadcast %68 : vector<64x1xf32> to vector<64x64xf32>
    %70 = arith.mulf %65, %69 : vector<64x64xf32>
    %cst_29 = arith.constant dense<0.000000e+00> : vector<64x128xf32>
    %71 = tpu.matmul %70, %56, %cst_29 {dimension_numbers = #tpu.dot_dimension_numbers<[1], [0], [0], [1], [0, 0, 1, 1], [], []>} : vector<64x64xf32>, vector<64x128xf32>, vector<64x128xf32> -> vector<64x128xf32>
    %72 = vector.extract_strided_slice %31 {offsets = [128, 0], sizes = [128, 32], strides = [1, 1]} : vector<256x32xf32> to vector<128x32xf32>
    %cst_30 = arith.constant dense<0.000000e+00> : vector<64x32xf32>
    %73 = tpu.matmul %71, %72, %cst_30 {dimension_numbers = #tpu.dot_dimension_numbers<[1], [0], [0], [1], [0, 0, 1, 1], [], []>} : vector<64x128xf32>, vector<128x32xf32>, vector<64x32xf32> -> vector<64x32xf32>
    %74 = arith.addf %53, %73 : vector<64x32xf32>
    %75 = arith.addf %24, %74 : vector<64x32xf32>
    %c0_31 = arith.constant 0 : index
    %c0_32 = arith.constant 0 : index
    %76 = vector.load %arg7[%c0_31, %c0_32] : memref<1x32xf32, #tpu.memory_space<vmem>>, vector<1x32xf32>
    %77 = vector.broadcast %76 : vector<1x32xf32> to vector<64x32xf32>
    %78 = arith.addf %75, %77 : vector<64x32xf32>
    %cst_33 = arith.constant dense<0.000000e+00> : vector<64xf32>
    %79 = vector.multi_reduction <add>, %78, %cst_33 [1] : vector<64x32xf32> to vector<64xf32>
    %80 = vector.shape_cast %79 : vector<64xf32> to vector<64x1xf32>
    %cst_34 = arith.constant 3.200000e+01 : f32
    %81 = vector.broadcast %cst_34 : f32 to vector<64x1xf32>
    %82 = arith.divf %80, %81 : vector<64x1xf32>
    %83 = vector.broadcast %82 : vector<64x1xf32> to vector<64x32xf32>
    %84 = arith.subf %78, %83 : vector<64x32xf32>
    %85 = arith.mulf %84, %84 : vector<64x32xf32>
    %cst_35 = arith.constant dense<0.000000e+00> : vector<64xf32>
    %86 = vector.multi_reduction <add>, %85, %cst_35 [1] : vector<64x32xf32> to vector<64xf32>
    %87 = vector.shape_cast %86 : vector<64xf32> to vector<64x1xf32>
    %cst_36 = arith.constant 3.200000e+01 : f32
    %88 = vector.broadcast %cst_36 : f32 to vector<64x1xf32>
    %89 = arith.divf %87, %88 : vector<64x1xf32>
    %90 = vector.broadcast %82 : vector<64x1xf32> to vector<64x32xf32>
    %91 = arith.subf %78, %90 : vector<64x32xf32>
    %cst_37 = arith.constant 9.99999996E-13 : f32
    %92 = vector.broadcast %cst_37 : f32 to vector<64x1xf32>
    %93 = arith.addf %89, %92 : vector<64x1xf32>
    %94 = math.rsqrt %93 : vector<64x1xf32>
    %95 = vector.broadcast %94 : vector<64x1xf32> to vector<64x32xf32>
    %96 = arith.mulf %91, %95 : vector<64x32xf32>
    %c0_38 = arith.constant 0 : index
    %c0_39 = arith.constant 0 : index
    %97 = vector.load %arg8[%c0_38, %c0_39] : memref<1x32xf32, #tpu.memory_space<vmem>>, vector<1x32xf32>
    %98 = vector.broadcast %97 : vector<1x32xf32> to vector<64x32xf32>
    %99 = arith.mulf %96, %98 : vector<64x32xf32>
    %c0_40 = arith.constant 0 : index
    %c0_41 = arith.constant 0 : index
    %100 = vector.load %arg9[%c0_40, %c0_41] : memref<1x32xf32, #tpu.memory_space<vmem>>, vector<1x32xf32>
    %101 = vector.broadcast %100 : vector<1x32xf32> to vector<64x32xf32>
    %102 = arith.addf %99, %101 : vector<64x32xf32>
    %c0_42 = arith.constant 0 : index
    %c0_43 = arith.constant 0 : index
    %103 = vector.load %arg10[%c0_42, %c0_43] : memref<32x64xf32, #tpu.memory_space<vmem>>, vector<32x64xf32>
    %cst_44 = arith.constant dense<0.000000e+00> : vector<64x64xf32>
    %104 = tpu.matmul %102, %103, %cst_44 {dimension_numbers = #tpu.dot_dimension_numbers<[1], [0], [0], [1], [0, 0, 1, 1], [], []>} : vector<64x32xf32>, vector<32x64xf32>, vector<64x64xf32> -> vector<64x64xf32>
    %c0_45 = arith.constant 0 : index
    %c0_46 = arith.constant 0 : index
    %105 = vector.load %arg11[%c0_45, %c0_46] : memref<1x64xf32, #tpu.memory_space<vmem>>, vector<1x64xf32>
    %106 = vector.broadcast %105 : vector<1x64xf32> to vector<64x64xf32>
    %107 = arith.addf %104, %106 : vector<64x64xf32>
    %108 = arith.mulf %107, %107 : vector<64x64xf32>
    %109 = arith.mulf %107, %108 : vector<64x64xf32>
    %cst_47 = arith.constant 4.471500e-02 : f32
    %110 = vector.broadcast %cst_47 : f32 to vector<64x64xf32>
    %111 = arith.mulf %110, %109 : vector<64x64xf32>
    %112 = arith.addf %107, %111 : vector<64x64xf32>
    %cst_48 = arith.constant 0.797884583 : f32
    %113 = vector.broadcast %cst_48 : f32 to vector<64x64xf32>
    %114 = arith.mulf %113, %112 : vector<64x64xf32>
    %115 = math.tanh %114 : vector<64x64xf32>
    %cst_49 = arith.constant 1.000000e+00 : f32
    %116 = vector.broadcast %cst_49 : f32 to vector<64x64xf32>
    %117 = arith.addf %116, %115 : vector<64x64xf32>
    %cst_50 = arith.constant 5.000000e-01 : f32
    %118 = vector.broadcast %cst_50 : f32 to vector<64x64xf32>
    %119 = arith.mulf %118, %117 : vector<64x64xf32>
    %120 = arith.mulf %107, %119 : vector<64x64xf32>
    %c0_51 = arith.constant 0 : index
    %c0_52 = arith.constant 0 : index
    %121 = vector.load %arg12[%c0_51, %c0_52] : memref<64x32xf32, #tpu.memory_space<vmem>>, vector<64x32xf32>
    %cst_53 = arith.constant dense<0.000000e+00> : vector<64x32xf32>
    %122 = tpu.matmul %120, %121, %cst_53 {dimension_numbers = #tpu.dot_dimension_numbers<[1], [0], [0], [1], [0, 0, 1, 1], [], []>} : vector<64x64xf32>, vector<64x32xf32>, vector<64x32xf32> -> vector<64x32xf32>
    %123 = arith.addf %102, %122 : vector<64x32xf32>
    %c0_54 = arith.constant 0 : index
    %c0_55 = arith.constant 0 : index
    %124 = vector.load %arg13[%c0_54, %c0_55] : memref<1x32xf32, #tpu.memory_space<vmem>>, vector<1x32xf32>
    %125 = vector.broadcast %124 : vector<1x32xf32> to vector<64x32xf32>
    %126 = arith.addf %123, %125 : vector<64x32xf32>
    %cst_56 = arith.constant dense<0.000000e+00> : vector<64xf32>
    %127 = vector.multi_reduction <add>, %126, %cst_56 [1] : vector<64x32xf32> to vector<64xf32>
    %128 = vector.shape_cast %127 : vector<64xf32> to vector<64x1xf32>
    %cst_57 = arith.constant 3.200000e+01 : f32
    %129 = vector.broadcast %cst_57 : f32 to vector<64x1xf32>
    %130 = arith.divf %128, %129 : vector<64x1xf32>
    %131 = vector.broadcast %130 : vector<64x1xf32> to vector<64x32xf32>
    %132 = arith.subf %126, %131 : vector<64x32xf32>
    %133 = arith.mulf %132, %132 : vector<64x32xf32>
    %cst_58 = arith.constant dense<0.000000e+00> : vector<64xf32>
    %134 = vector.multi_reduction <add>, %133, %cst_58 [1] : vector<64x32xf32> to vector<64xf32>
    %135 = vector.shape_cast %134 : vector<64xf32> to vector<64x1xf32>
    %cst_59 = arith.constant 3.200000e+01 : f32
    %136 = vector.broadcast %cst_59 : f32 to vector<64x1xf32>
    %137 = arith.divf %135, %136 : vector<64x1xf32>
    %138 = vector.broadcast %130 : vector<64x1xf32> to vector<64x32xf32>
    %139 = arith.subf %126, %138 : vector<64x32xf32>
    %cst_60 = arith.constant 9.99999996E-13 : f32
    %140 = vector.broadcast %cst_60 : f32 to vector<64x1xf32>
    %141 = arith.addf %137, %140 : vector<64x1xf32>
    %142 = math.rsqrt %141 : vector<64x1xf32>
    %143 = vector.broadcast %142 : vector<64x1xf32> to vector<64x32xf32>
    %144 = arith.mulf %139, %143 : vector<64x32xf32>
    %c0_61 = arith.constant 0 : index
    %c0_62 = arith.constant 0 : index
    %145 = vector.load %arg14[%c0_61, %c0_62] : memref<1x32xf32, #tpu.memory_space<vmem>>, vector<1x32xf32>
    %146 = vector.broadcast %145 : vector<1x32xf32> to vector<64x32xf32>
    %147 = arith.mulf %144, %146 : vector<64x32xf32>
    %c0_63 = arith.constant 0 : index
    %c0_64 = arith.constant 0 : index
    %148 = vector.load %arg15[%c0_63, %c0_64] : memref<1x32xf32, #tpu.memory_space<vmem>>, vector<1x32xf32>
    %149 = vector.broadcast %148 : vector<1x32xf32> to vector<64x32xf32>
    %150 = arith.addf %147, %149 : vector<64x32xf32>
    %c0_65 = arith.constant 0 : index
    %c0_66 = arith.constant 0 : index
    %151 = vector.load %arg16[%c0_65, %c0_66] : memref<32x512xf32, #tpu.memory_space<vmem>>, vector<32x512xf32>
    %cst_67 = arith.constant dense<0.000000e+00> : vector<64x512xf32>
    %152 = tpu.matmul %150, %151, %cst_67 {dimension_numbers = #tpu.dot_dimension_numbers<[1], [0], [0], [1], [0, 0, 1, 1], [], []>} : vector<64x32xf32>, vector<32x512xf32>, vector<64x512xf32> -> vector<64x512xf32>
    %c0_68 = arith.constant 0 : index
    %c0_69 = arith.constant 0 : index
    %153 = vector.load %arg18[%c0_68, %c0_69] : memref<1x512xf32, #tpu.memory_space<vmem>>, vector<1x512xf32>
    %154 = vector.broadcast %153 : vector<1x512xf32> to vector<64x512xf32>
    %155 = arith.addf %152, %154 : vector<64x512xf32>
    %156 = vector.shape_cast %155 : vector<64x512xf32> to vector<8x8x512xf32>
    %c0_70 = arith.constant 0 : index
    %c0_71 = arith.constant 0 : index
    %157 = vector.load %arg17[%c0_70, %c0_71] : memref<128x512xf32, #tpu.memory_space<vmem>>, vector<128x512xf32>
    %cst_72 = arith.constant 0.000000e+00 : f32
    %158 = vector.broadcast %cst_72 : f32 to vector<8x128xf32>
    %cst_73 = arith.constant 0.000000e+00 : f32
    %159 = vector.broadcast %cst_73 : f32 to vector<8x128xf32>
    %160 = vector.extract_strided_slice %156 {offsets = [0, 0, 0], sizes = [1, 8, 512], strides = [1, 1, 1]} : vector<8x8x512xf32> to vector<1x8x512xf32>
    %161 = vector.shape_cast %160 : vector<1x8x512xf32> to vector<8x512xf32>
    %cst_74 = arith.constant dense<0.000000e+00> : vector<8x512xf32>
    %162 = tpu.matmul %158, %157, %cst_74 {dimension_numbers = #tpu.dot_dimension_numbers<[1], [0], [0], [1], [0, 0, 1, 1], [], []>} : vector<8x128xf32>, vector<128x512xf32>, vector<8x512xf32> -> vector<8x512xf32>
    %163 = arith.addf %161, %162 : vector<8x512xf32>
    %164 = arith.negf %163 : vector<8x512xf32>
    %165 = math.exp %164 : vector<8x512xf32>
    %cst_75 = arith.constant 1.000000e+00 : f32
    %166 = vector.broadcast %cst_75 : f32 to vector<8x512xf32>
    %167 = arith.addf %166, %165 : vector<8x512xf32>
    %168 = arith.divf %166, %167 : vector<8x512xf32>
    %169 = math.tanh %163 : vector<8x512xf32>
    %170 = vector.extract_strided_slice %168 {offsets = [0, 0], sizes = [8, 128], strides = [1, 1]} : vector<8x512xf32> to vector<8x128xf32>
    %171 = vector.extract_strided_slice %168 {offsets = [0, 128], sizes = [8, 128], strides = [1, 1]} : vector<8x512xf32> to vector<8x128xf32>
    %172 = vector.extract_strided_slice %169 {offsets = [0, 256], sizes = [8, 128], strides = [1, 1]} : vector<8x512xf32> to vector<8x128xf32>
    %173 = vector.extract_strided_slice %168 {offsets = [0, 384], sizes = [8, 128], strides = [1, 1]} : vector<8x512xf32> to vector<8x128xf32>
    %174 = arith.mulf %171, %159 : vector<8x128xf32>
    %175 = arith.mulf %170, %172 : vector<8x128xf32>
    %176 = arith.addf %174, %175 : vector<8x128xf32>
    %177 = math.tanh %176 : vector<8x128xf32>
    %178 = arith.mulf %173, %177 : vector<8x128xf32>
    %179 = vector.extract_strided_slice %156 {offsets = [1, 0, 0], sizes = [1, 8, 512], strides = [1, 1, 1]} : vector<8x8x512xf32> to vector<1x8x512xf32>
    %180 = vector.shape_cast %179 : vector<1x8x512xf32> to vector<8x512xf32>
    %cst_76 = arith.constant dense<0.000000e+00> : vector<8x512xf32>
    %181 = tpu.matmul %178, %157, %cst_76 {dimension_numbers = #tpu.dot_dimension_numbers<[1], [0], [0], [1], [0, 0, 1, 1], [], []>} : vector<8x128xf32>, vector<128x512xf32>, vector<8x512xf32> -> vector<8x512xf32>
    %182 = arith.addf %180, %181 : vector<8x512xf32>
    %183 = arith.negf %182 : vector<8x512xf32>
    %184 = math.exp %183 : vector<8x512xf32>
    %cst_77 = arith.constant 1.000000e+00 : f32
    %185 = vector.broadcast %cst_77 : f32 to vector<8x512xf32>
    %186 = arith.addf %185, %184 : vector<8x512xf32>
    %187 = arith.divf %185, %186 : vector<8x512xf32>
    %188 = math.tanh %182 : vector<8x512xf32>
    %189 = vector.extract_strided_slice %187 {offsets = [0, 0], sizes = [8, 128], strides = [1, 1]} : vector<8x512xf32> to vector<8x128xf32>
    %190 = vector.extract_strided_slice %187 {offsets = [0, 128], sizes = [8, 128], strides = [1, 1]} : vector<8x512xf32> to vector<8x128xf32>
    %191 = vector.extract_strided_slice %188 {offsets = [0, 256], sizes = [8, 128], strides = [1, 1]} : vector<8x512xf32> to vector<8x128xf32>
    %192 = vector.extract_strided_slice %187 {offsets = [0, 384], sizes = [8, 128], strides = [1, 1]} : vector<8x512xf32> to vector<8x128xf32>
    %193 = arith.mulf %190, %176 : vector<8x128xf32>
    %194 = arith.mulf %189, %191 : vector<8x128xf32>
    %195 = arith.addf %193, %194 : vector<8x128xf32>
    %196 = math.tanh %195 : vector<8x128xf32>
    %197 = arith.mulf %192, %196 : vector<8x128xf32>
    %198 = vector.extract_strided_slice %156 {offsets = [2, 0, 0], sizes = [1, 8, 512], strides = [1, 1, 1]} : vector<8x8x512xf32> to vector<1x8x512xf32>
    %199 = vector.shape_cast %198 : vector<1x8x512xf32> to vector<8x512xf32>
    %cst_78 = arith.constant dense<0.000000e+00> : vector<8x512xf32>
    %200 = tpu.matmul %197, %157, %cst_78 {dimension_numbers = #tpu.dot_dimension_numbers<[1], [0], [0], [1], [0, 0, 1, 1], [], []>} : vector<8x128xf32>, vector<128x512xf32>, vector<8x512xf32> -> vector<8x512xf32>
    %201 = arith.addf %199, %200 : vector<8x512xf32>
    %202 = arith.negf %201 : vector<8x512xf32>
    %203 = math.exp %202 : vector<8x512xf32>
    %cst_79 = arith.constant 1.000000e+00 : f32
    %204 = vector.broadcast %cst_79 : f32 to vector<8x512xf32>
    %205 = arith.addf %204, %203 : vector<8x512xf32>
    %206 = arith.divf %204, %205 : vector<8x512xf32>
    %207 = math.tanh %201 : vector<8x512xf32>
    %208 = vector.extract_strided_slice %206 {offsets = [0, 0], sizes = [8, 128], strides = [1, 1]} : vector<8x512xf32> to vector<8x128xf32>
    %209 = vector.extract_strided_slice %206 {offsets = [0, 128], sizes = [8, 128], strides = [1, 1]} : vector<8x512xf32> to vector<8x128xf32>
    %210 = vector.extract_strided_slice %207 {offsets = [0, 256], sizes = [8, 128], strides = [1, 1]} : vector<8x512xf32> to vector<8x128xf32>
    %211 = vector.extract_strided_slice %206 {offsets = [0, 384], sizes = [8, 128], strides = [1, 1]} : vector<8x512xf32> to vector<8x128xf32>
    %212 = arith.mulf %209, %195 : vector<8x128xf32>
    %213 = arith.mulf %208, %210 : vector<8x128xf32>
    %214 = arith.addf %212, %213 : vector<8x128xf32>
    %215 = math.tanh %214 : vector<8x128xf32>
    %216 = arith.mulf %211, %215 : vector<8x128xf32>
    %217 = vector.extract_strided_slice %156 {offsets = [3, 0, 0], sizes = [1, 8, 512], strides = [1, 1, 1]} : vector<8x8x512xf32> to vector<1x8x512xf32>
    %218 = vector.shape_cast %217 : vector<1x8x512xf32> to vector<8x512xf32>
    %cst_80 = arith.constant dense<0.000000e+00> : vector<8x512xf32>
    %219 = tpu.matmul %216, %157, %cst_80 {dimension_numbers = #tpu.dot_dimension_numbers<[1], [0], [0], [1], [0, 0, 1, 1], [], []>} : vector<8x128xf32>, vector<128x512xf32>, vector<8x512xf32> -> vector<8x512xf32>
    %220 = arith.addf %218, %219 : vector<8x512xf32>
    %221 = arith.negf %220 : vector<8x512xf32>
    %222 = math.exp %221 : vector<8x512xf32>
    %cst_81 = arith.constant 1.000000e+00 : f32
    %223 = vector.broadcast %cst_81 : f32 to vector<8x512xf32>
    %224 = arith.addf %223, %222 : vector<8x512xf32>
    %225 = arith.divf %223, %224 : vector<8x512xf32>
    %226 = math.tanh %220 : vector<8x512xf32>
    %227 = vector.extract_strided_slice %225 {offsets = [0, 0], sizes = [8, 128], strides = [1, 1]} : vector<8x512xf32> to vector<8x128xf32>
    %228 = vector.extract_strided_slice %225 {offsets = [0, 128], sizes = [8, 128], strides = [1, 1]} : vector<8x512xf32> to vector<8x128xf32>
    %229 = vector.extract_strided_slice %226 {offsets = [0, 256], sizes = [8, 128], strides = [1, 1]} : vector<8x512xf32> to vector<8x128xf32>
    %230 = vector.extract_strided_slice %225 {offsets = [0, 384], sizes = [8, 128], strides = [1, 1]} : vector<8x512xf32> to vector<8x128xf32>
    %231 = arith.mulf %228, %214 : vector<8x128xf32>
    %232 = arith.mulf %227, %229 : vector<8x128xf32>
    %233 = arith.addf %231, %232 : vector<8x128xf32>
    %234 = math.tanh %233 : vector<8x128xf32>
    %235 = arith.mulf %230, %234 : vector<8x128xf32>
    %236 = vector.extract_strided_slice %156 {offsets = [4, 0, 0], sizes = [1, 8, 512], strides = [1, 1, 1]} : vector<8x8x512xf32> to vector<1x8x512xf32>
    %237 = vector.shape_cast %236 : vector<1x8x512xf32> to vector<8x512xf32>
    %cst_82 = arith.constant dense<0.000000e+00> : vector<8x512xf32>
    %238 = tpu.matmul %235, %157, %cst_82 {dimension_numbers = #tpu.dot_dimension_numbers<[1], [0], [0], [1], [0, 0, 1, 1], [], []>} : vector<8x128xf32>, vector<128x512xf32>, vector<8x512xf32> -> vector<8x512xf32>
    %239 = arith.addf %237, %238 : vector<8x512xf32>
    %240 = arith.negf %239 : vector<8x512xf32>
    %241 = math.exp %240 : vector<8x512xf32>
    %cst_83 = arith.constant 1.000000e+00 : f32
    %242 = vector.broadcast %cst_83 : f32 to vector<8x512xf32>
    %243 = arith.addf %242, %241 : vector<8x512xf32>
    %244 = arith.divf %242, %243 : vector<8x512xf32>
    %245 = math.tanh %239 : vector<8x512xf32>
    %246 = vector.extract_strided_slice %244 {offsets = [0, 0], sizes = [8, 128], strides = [1, 1]} : vector<8x512xf32> to vector<8x128xf32>
    %247 = vector.extract_strided_slice %244 {offsets = [0, 128], sizes = [8, 128], strides = [1, 1]} : vector<8x512xf32> to vector<8x128xf32>
    %248 = vector.extract_strided_slice %245 {offsets = [0, 256], sizes = [8, 128], strides = [1, 1]} : vector<8x512xf32> to vector<8x128xf32>
    %249 = vector.extract_strided_slice %244 {offsets = [0, 384], sizes = [8, 128], strides = [1, 1]} : vector<8x512xf32> to vector<8x128xf32>
    %250 = arith.mulf %247, %233 : vector<8x128xf32>
    %251 = arith.mulf %246, %248 : vector<8x128xf32>
    %252 = arith.addf %250, %251 : vector<8x128xf32>
    %253 = math.tanh %252 : vector<8x128xf32>
    %254 = arith.mulf %249, %253 : vector<8x128xf32>
    %255 = vector.extract_strided_slice %156 {offsets = [5, 0, 0], sizes = [1, 8, 512], strides = [1, 1, 1]} : vector<8x8x512xf32> to vector<1x8x512xf32>
    %256 = vector.shape_cast %255 : vector<1x8x512xf32> to vector<8x512xf32>
    %cst_84 = arith.constant dense<0.000000e+00> : vector<8x512xf32>
    %257 = tpu.matmul %254, %157, %cst_84 {dimension_numbers = #tpu.dot_dimension_numbers<[1], [0], [0], [1], [0, 0, 1, 1], [], []>} : vector<8x128xf32>, vector<128x512xf32>, vector<8x512xf32> -> vector<8x512xf32>
    %258 = arith.addf %256, %257 : vector<8x512xf32>
    %259 = arith.negf %258 : vector<8x512xf32>
    %260 = math.exp %259 : vector<8x512xf32>
    %cst_85 = arith.constant 1.000000e+00 : f32
    %261 = vector.broadcast %cst_85 : f32 to vector<8x512xf32>
    %262 = arith.addf %261, %260 : vector<8x512xf32>
    %263 = arith.divf %261, %262 : vector<8x512xf32>
    %264 = math.tanh %258 : vector<8x512xf32>
    %265 = vector.extract_strided_slice %263 {offsets = [0, 0], sizes = [8, 128], strides = [1, 1]} : vector<8x512xf32> to vector<8x128xf32>
    %266 = vector.extract_strided_slice %263 {offsets = [0, 128], sizes = [8, 128], strides = [1, 1]} : vector<8x512xf32> to vector<8x128xf32>
    %267 = vector.extract_strided_slice %264 {offsets = [0, 256], sizes = [8, 128], strides = [1, 1]} : vector<8x512xf32> to vector<8x128xf32>
    %268 = vector.extract_strided_slice %263 {offsets = [0, 384], sizes = [8, 128], strides = [1, 1]} : vector<8x512xf32> to vector<8x128xf32>
    %269 = arith.mulf %266, %252 : vector<8x128xf32>
    %270 = arith.mulf %265, %267 : vector<8x128xf32>
    %271 = arith.addf %269, %270 : vector<8x128xf32>
    %272 = math.tanh %271 : vector<8x128xf32>
    %273 = arith.mulf %268, %272 : vector<8x128xf32>
    %274 = vector.extract_strided_slice %156 {offsets = [6, 0, 0], sizes = [1, 8, 512], strides = [1, 1, 1]} : vector<8x8x512xf32> to vector<1x8x512xf32>
    %275 = vector.shape_cast %274 : vector<1x8x512xf32> to vector<8x512xf32>
    %cst_86 = arith.constant dense<0.000000e+00> : vector<8x512xf32>
    %276 = tpu.matmul %273, %157, %cst_86 {dimension_numbers = #tpu.dot_dimension_numbers<[1], [0], [0], [1], [0, 0, 1, 1], [], []>} : vector<8x128xf32>, vector<128x512xf32>, vector<8x512xf32> -> vector<8x512xf32>
    %277 = arith.addf %275, %276 : vector<8x512xf32>
    %278 = arith.negf %277 : vector<8x512xf32>
    %279 = math.exp %278 : vector<8x512xf32>
    %cst_87 = arith.constant 1.000000e+00 : f32
    %280 = vector.broadcast %cst_87 : f32 to vector<8x512xf32>
    %281 = arith.addf %280, %279 : vector<8x512xf32>
    %282 = arith.divf %280, %281 : vector<8x512xf32>
    %283 = math.tanh %277 : vector<8x512xf32>
    %284 = vector.extract_strided_slice %282 {offsets = [0, 0], sizes = [8, 128], strides = [1, 1]} : vector<8x512xf32> to vector<8x128xf32>
    %285 = vector.extract_strided_slice %282 {offsets = [0, 128], sizes = [8, 128], strides = [1, 1]} : vector<8x512xf32> to vector<8x128xf32>
    %286 = vector.extract_strided_slice %283 {offsets = [0, 256], sizes = [8, 128], strides = [1, 1]} : vector<8x512xf32> to vector<8x128xf32>
    %287 = vector.extract_strided_slice %282 {offsets = [0, 384], sizes = [8, 128], strides = [1, 1]} : vector<8x512xf32> to vector<8x128xf32>
    %288 = arith.mulf %285, %271 : vector<8x128xf32>
    %289 = arith.mulf %284, %286 : vector<8x128xf32>
    %290 = arith.addf %288, %289 : vector<8x128xf32>
    %291 = math.tanh %290 : vector<8x128xf32>
    %292 = arith.mulf %287, %291 : vector<8x128xf32>
    %293 = vector.extract_strided_slice %156 {offsets = [7, 0, 0], sizes = [1, 8, 512], strides = [1, 1, 1]} : vector<8x8x512xf32> to vector<1x8x512xf32>
    %294 = vector.shape_cast %293 : vector<1x8x512xf32> to vector<8x512xf32>
    %cst_88 = arith.constant dense<0.000000e+00> : vector<8x512xf32>
    %295 = tpu.matmul %292, %157, %cst_88 {dimension_numbers = #tpu.dot_dimension_numbers<[1], [0], [0], [1], [0, 0, 1, 1], [], []>} : vector<8x128xf32>, vector<128x512xf32>, vector<8x512xf32> -> vector<8x512xf32>
    %296 = arith.addf %294, %295 : vector<8x512xf32>
    %297 = arith.negf %296 : vector<8x512xf32>
    %298 = math.exp %297 : vector<8x512xf32>
    %cst_89 = arith.constant 1.000000e+00 : f32
    %299 = vector.broadcast %cst_89 : f32 to vector<8x512xf32>
    %300 = arith.addf %299, %298 : vector<8x512xf32>
    %301 = arith.divf %299, %300 : vector<8x512xf32>
    %302 = math.tanh %296 : vector<8x512xf32>
    %303 = vector.extract_strided_slice %301 {offsets = [0, 0], sizes = [8, 128], strides = [1, 1]} : vector<8x512xf32> to vector<8x128xf32>
    %304 = vector.extract_strided_slice %301 {offsets = [0, 128], sizes = [8, 128], strides = [1, 1]} : vector<8x512xf32> to vector<8x128xf32>
    %305 = vector.extract_strided_slice %302 {offsets = [0, 256], sizes = [8, 128], strides = [1, 1]} : vector<8x512xf32> to vector<8x128xf32>
    %306 = vector.extract_strided_slice %301 {offsets = [0, 384], sizes = [8, 128], strides = [1, 1]} : vector<8x512xf32> to vector<8x128xf32>
    %307 = arith.mulf %304, %290 : vector<8x128xf32>
    %308 = arith.mulf %303, %305 : vector<8x128xf32>
    %309 = arith.addf %307, %308 : vector<8x128xf32>
    %310 = math.tanh %309 : vector<8x128xf32>
    %311 = arith.mulf %306, %310 : vector<8x128xf32>
    %312 = vector.shape_cast %150 : vector<64x32xf32> to vector<8x8x32xf32>
    %313 = vector.extract_strided_slice %312 {offsets = [7, 0, 0], sizes = [1, 8, 32], strides = [1, 1, 1]} : vector<8x8x32xf32> to vector<1x8x32xf32>
    %314 = vector.shape_cast %313 : vector<1x8x32xf32> to vector<8x32xf32>
    %c0_90 = arith.constant 0 : index
    %c0_91 = arith.constant 0 : index
    %315 = vector.load %arg19[%c0_90, %c0_91] : memref<32x512xf32, #tpu.memory_space<vmem>>, vector<32x512xf32>
    %cst_92 = arith.constant dense<0.000000e+00> : vector<8x512xf32>
    %316 = tpu.matmul %314, %315, %cst_92 {dimension_numbers = #tpu.dot_dimension_numbers<[1], [0], [0], [1], [0, 0, 1, 1], [], []>} : vector<8x32xf32>, vector<32x512xf32>, vector<8x512xf32> -> vector<8x512xf32>
    %c0_93 = arith.constant 0 : index
    %c0_94 = arith.constant 0 : index
    %317 = vector.load %arg20[%c0_93, %c0_94] : memref<1x512xf32, #tpu.memory_space<vmem>>, vector<1x512xf32>
    %318 = vector.broadcast %317 : vector<1x512xf32> to vector<8x512xf32>
    %319 = arith.addf %316, %318 : vector<8x512xf32>
    %320 = vector.extract_strided_slice %319 {offsets = [0, 0], sizes = [8, 128], strides = [1, 1]} : vector<8x512xf32> to vector<8x128xf32>
    %321 = arith.negf %320 : vector<8x128xf32>
    %322 = math.exp %321 : vector<8x128xf32>
    %cst_95 = arith.constant 1.000000e+00 : f32
    %323 = vector.broadcast %cst_95 : f32 to vector<8x128xf32>
    %324 = arith.addf %323, %322 : vector<8x128xf32>
    %325 = arith.divf %323, %324 : vector<8x128xf32>
    %326 = vector.extract_strided_slice %319 {offsets = [0, 256], sizes = [8, 128], strides = [1, 1]} : vector<8x512xf32> to vector<8x128xf32>
    %327 = math.tanh %326 : vector<8x128xf32>
    %328 = vector.extract_strided_slice %319 {offsets = [0, 384], sizes = [8, 128], strides = [1, 1]} : vector<8x512xf32> to vector<8x128xf32>
    %329 = arith.negf %328 : vector<8x128xf32>
    %330 = math.exp %329 : vector<8x128xf32>
    %cst_96 = arith.constant 1.000000e+00 : f32
    %331 = vector.broadcast %cst_96 : f32 to vector<8x128xf32>
    %332 = arith.addf %331, %330 : vector<8x128xf32>
    %333 = arith.divf %331, %332 : vector<8x128xf32>
    %334 = arith.mulf %325, %327 : vector<8x128xf32>
    %335 = math.tanh %334 : vector<8x128xf32>
    %336 = arith.mulf %333, %335 : vector<8x128xf32>
    %c0_97 = arith.constant 0 : index
    %c0_98 = arith.constant 0 : index
    %337 = vector.load %arg21[%c0_97, %c0_98] : memref<128x128xf32, #tpu.memory_space<vmem>>, vector<128x128xf32>
    %cst_99 = arith.constant dense<0.000000e+00> : vector<8x128xf32>
    %338 = tpu.matmul %311, %337, %cst_99 {dimension_numbers = #tpu.dot_dimension_numbers<[1], [0], [0], [1], [0, 0, 1, 1], [], []>} : vector<8x128xf32>, vector<128x128xf32>, vector<8x128xf32> -> vector<8x128xf32>
    %c0_100 = arith.constant 0 : index
    %c0_101 = arith.constant 0 : index
    %339 = vector.load %arg22[%c0_100, %c0_101] : memref<128x128xf32, #tpu.memory_space<vmem>>, vector<128x128xf32>
    %cst_102 = arith.constant dense<0.000000e+00> : vector<8x128xf32>
    %340 = tpu.matmul %336, %339, %cst_102 {dimension_numbers = #tpu.dot_dimension_numbers<[1], [0], [0], [1], [0, 0, 1, 1], [], []>} : vector<8x128xf32>, vector<128x128xf32>, vector<8x128xf32> -> vector<8x128xf32>
    %341 = arith.addf %338, %340 : vector<8x128xf32>
    %c0_103 = arith.constant 0 : index
    %c0_104 = arith.constant 0 : index
    %342 = vector.load %arg23[%c0_103, %c0_104] : memref<1x128xf32, #tpu.memory_space<vmem>>, vector<1x128xf32>
    %343 = vector.broadcast %342 : vector<1x128xf32> to vector<8x128xf32>
    %344 = arith.addf %341, %343 : vector<8x128xf32>
    %c0_105 = arith.constant 0 : index
    %c0_106 = arith.constant 0 : index
    %345 = vector.load %arg24[%c0_105, %c0_106] : memref<8x128xf32, #tpu.memory_space<vmem>>, vector<8x128xf32>
    tpu.vector_store %arg24[%c0_105, %c0_106], %344 {strides = array<i32>} : memref<8x128xf32, #tpu.memory_space<vmem>>, vector<8x128xf32>,
    return
  }
}

</mosaic_0001>

<bundles_post_ra>
// kernel: eq.8
= control target key start
LH: loop header
LB: loop body
LE: loop exit
PB: predicated region body
PF: predicated region fallthrough
CT: control target
= control target key end

     0   :  { %s69_s10 = smov 56   ;;  %s70_s11 = smov 40   ;;  %vm3_vm0 = vcmask 64512   ;;  %vm9_vm1 = vcmask 523712   ;;  %vm15_vm2 = vcmask 458112   ;;  %vm21_vm3 = vcmask 392512   ;;  %s113_s0 = inlined_call_operand.vmem [shape: s32[8,8], index: 0, kind: input, shape index: {}]   ;;  %s114_s1 = inlined_call_operand.vmem [shape: s32[64], index: 1, kind: output, shape index: {}]  }
   0x1   :  { %v55_v0 = vld [vmem:[%s113_s0 + $0x7] sm:$0x1]   ;;  %v57_v1 = vld [vmem:[%s113_s0 + $0x5] sm:$0x1]   ;;  %v56_v2 = vld [vmem:[%s113_s0 + $0x6] sm:$0x1]  }
   0x2   :  { %7 = vrot.lane.b32.xlu0 %v55_v0, %s69_s10  ;;  %19 = vrot.lane.b32.xlu1 %v57_v1, %s70_s11  ;;  %v58_v3 = vld [vmem:[%s113_s0 + $0x4] sm:$0x1]   ;;  %v2_v4 = vld [vmem:[%s113_s0] sm:$0x1]   ;;  %s71_s18 = smov 48   ;;  %s72_s19 = smov 32  }
   0x3   :  { %4 = vst.msk [vmem:[#allocation0] sm:$0x1] %vm3_vm0, %v2_v4   ;;  %v59_v5 = vld [vmem:[%s113_s0 + $0x3] sm:$0x1]   ;;  %v60_v6 = vld [vmem:[%s113_s0 + $0x2] sm:$0x1]  }
   0x4   :  { %s73_s24 = smov 24   ;;  %s74_s25 = smov 16   ;;  %v61_v7 = vld [vmem:[%s113_s0 + $0x1] sm:$0x1]   ;;  %vm27_vm4 = vcmask 326912   ;;  %vm33_vm5 = vcmask 261312  }
   0x5   :  { %s75_s0 = smov 8   ;;  %vm39_vm6 = vcmask 195712   ;;  %vm45_vm7 = vcmask 130112  }
   0x6   :  { %13 = vrot.lane.b32.xlu0 %v56_v2, %s71_s18  ;;  %25 = vrot.lane.b32.xlu1 %v58_v3, %s72_s19 }
   0xa   :  { %31 = vrot.lane.b32.xlu0 %v59_v5, %s73_s24  ;;  %37 = vrot.lane.b32.xlu1 %v60_v6, %s74_s25 }
   0xe   :  { %43 = vrot.lane.b32.xlu0 %v61_v7, %s75_s0 }
  0x74   :  { %v8_v8 = vpop.permute.xlu0 %7   ;;  %v20_v9 = vpop.permute.xlu1 %19  }
  0x75   :  { %10 = vst.msk [vmem:[#allocation0] sm:$0x1] %vm9_vm1, %v8_v8  }
  0x78   :  { %v14_v10 = vpop.permute.xlu0 %13   ;;  %v26_v11 = vpop.permute.xlu1 %25  }
  0x79   :  { %16 = vst.msk [vmem:[#allocation0] sm:$0x1] %vm15_vm2, %v14_v10  }
  0x7a   :  { %22 = vst.msk [vmem:[#allocation0] sm:$0x1] %vm21_vm3, %v20_v9  }
  0x7b   :  { %28 = vst.msk [vmem:[#allocation0] sm:$0x1] %vm27_vm4, %v26_v11  }
  0x7c   :  { %v32_v12 = vpop.permute.xlu0 %31   ;;  %v38_v13 = vpop.permute.xlu1 %37  }
  0x7d   :  { %34 = vst.msk [vmem:[#allocation0] sm:$0x1] %vm33_vm5, %v32_v12  }
  0x7e   :  { %40 = vst.msk [vmem:[#allocation0] sm:$0x1] %vm39_vm6, %v38_v13  }
  0x80   :  { %v44_v14 = vpop.permute.xlu0 %43  }
  0x81   :  { %46 = vst.msk [vmem:[#allocation0] sm:$0x1] %vm45_vm7, %v44_v14  }
  0x88   :  { %v51_v15 = vld [vmem:[#allocation0] sm:$0x1] }
  0x89   :  { %54 = vst [vmem:[%s114_s1] sm:$0x1] %v51_v15 }

// kernel: bert_bilstm_forward.1
= control target key start
LH: loop header
LB: loop body
LE: loop exit
PB: predicated region body
PF: predicated region fallthrough
CT: control target
= control target key end

     0   :  { %s7698_s0 = inlined_call_operand.vmem [shape: f32[64,32], index: 0, kind: input, shape index: {}]   ;;  %s7699_s1 = inlined_call_operand.vmem [shape: f32[64,64], index: 1, kind: input, shape index: {}]   ;;  %s7700_s2 = inlined_call_operand.vmem [shape: f32[1,32], index: 2, kind: input, shape index: {}, may-alias: {2,8,14}]   ;;  %s7701_s3 = inlined_call_operand.vmem [shape: f32[1,32], index: 3, kind: input, shape index: {}, may-alias: {3,7,9,13,15}]   ;;  %s7702_s4 = inlined_call_operand.hbm [shape: f32[32,768], index: 4, kind: input, shape index: {}]   ;;  %s7703_s5 = inlined_call_operand.vmem [shape: f32[1,768], index: 5, kind: input, shape index: {}]   ;;  %s7704_s6 = inlined_call_operand.vmem [shape: f32[256,32], index: 6, kind: input, shape index: {}]   ;;  %s7705_s7 = inlined_call_operand.vmem [shape: f32[1,32], index: 7, kind: input, shape index: {}, may-alias: {3,7,9,13,15}]   ;;  %s7706_s8 = inlined_call_operand.vmem [shape: f32[1,32], index: 8, kind: input, shape index: {}, may-alias: {2,8,14}]   ;;  %s7707_s9 = inlined_call_operand.vmem [shape: f32[1,32], index: 9, kind: input, shape index: {}, may-alias: {3,7,9,13,15}]   ;;  %s7708_s10 = inlined_call_operand.hbm [shape: f32[32,64], index: 10, kind: input, shape index: {}]   ;;  %s7709_s11 = inlined_call_operand.vmem [shape: f32[1,64], index: 11, kind: input, shape index: {}]   ;;  %s7710_s12 = inlined_call_operand.hbm [shape: f32[64,32], index: 12, kind: input, shape index: {}]   ;;  %s7711_s13 = inlined_call_operand.vmem [shape: f32[1,32], index: 13, kind: input, shape index: {}, may-alias: {3,7,9,13,15}]   ;;  %s7712_s14 = inlined_call_operand.vmem [shape: f32[1,32], index: 14, kind: input, shape index: {}, may-alias: {2,8,14}]   ;;  %s7713_s15 = inlined_call_operand.vmem [shape: f32[1,32], index: 15, kind: input, shape index: {}, may-alias: {3,7,9,13,15}]   ;;  %s7714_s16 = inlined_call_operand.hbm [shape: f32[32,512], index: 16, kind: input, shape index: {}]   ;;  %s7715_s17 = inlined_call_operand.hbm [shape: f32[128,512], index: 17, kind: input, shape index: {}]   ;;  %s7716_s18 = inlined_call_operand.vmem [shape: f32[1,512], index: 18, kind: input, shape index: {}, may-alias: {18,20}]   ;;  %s7717_s19 = inlined_call_operand.hbm [shape: f32[32,512], index: 19, kind: input, shape index: {}]   ;;  %s7718_s20 = inlined_call_operand.vmem [shape: f32[1,512], index: 20, kind: input, shape index: {}, may-alias: {18,20}]   ;;  %s7719_s21 = inlined_call_operand.hbm [shape: f32[128,128], index: 21, kind: input, shape index: {}]   ;;  %s7720_s22 = inlined_call_operand.vmem [shape: f32[128,128], index: 22, kind: input, shape index: {}]   ;;  %s7721_s23 = inlined_call_operand.vmem [shape: f32[1,128], index: 23, kind: input, shape index: {}]   ;;  %s7722_s24 = inlined_call_operand.vmem [shape: f32[8,128], index: 24, kind: output, shape index: {}]  }
   0x1   :  { %7828 = sst [smem:[#allocation71_spill]] %s7698_s0 }
   0x2   :  { %7829 = sst [smem:[#allocation72_spill]] %s7699_s1 }
   0x3   :  { %7830 = sst [smem:[#allocation73_spill]] %s7700_s2 }
   0x4   :  { %7831 = sst [smem:[#allocation74_spill]] %s7701_s3 }
   0x5   :  { %7832 = sst [smem:[#allocation75_spill]] %s7702_s4 }
   0x6   :  { %7833 = sst [smem:[#allocation76_spill]] %s7703_s5 }
   0x7   :  { %7834 = sst [smem:[#allocation77_spill]] %s7704_s6 }
   0x8   :  { %7835 = sst [smem:[#allocation78_spill]] %s7705_s7 }
   0x9   :  { %7836 = sst [smem:[#allocation79_spill]] %s7706_s8 }
   0xa   :  { %29 = vsyncpa [#allocation3], 0 }
   0xb   :  { %30 = vsyncpa [#allocation5], 0 }
   0xc   :  { %31 = vsyncpa [#allocation8], 0 }
   0xd   :  { %32 = vsyncpa [#allocation11], 0  ;;  %s5513_s5 = smov [#allocation4]  }
   0xe   :  { %s68_s26 = sshll.u32 %s5513_s5, 4  ;;  %s69_s26 = int_to_ptr.vmem [resolvable:$true] %s68_s26 }
   0xf   :  { %s5373_s27 = scalar_lea.vmem %s69_s26, 512  ;;  %p5378_p1 = scmp.lt.s32.totalorder %s69_s26, %s69_s26 }
  0x10   :  { %p5374_p0 = scmp.ne.s32.totalorder %s69_s26, %s5373_s27  ;;  %p5379_p2 = scmp.lt.s32.totalorder %s5373_s27, %s5373_s27 }
  0x12   :  { %p5380_p3 = por %p5379_p2, %p5378_p1 }
  0x14   :  { %p5381_p4 = pnand %p5380_p3, %p5374_p0 }
  0x16   :  { %5384 = shalt.err (!%p5381_p4)
}
  0x17   :  { %s7726_s28 = smov 128   ;;  %s5515_s6 = smov 8  }
  0x18   :  { %74 = dma.hbm_to_vmem [thread:$0]  %s7708_s10, 512, %s69_s26, [#allocation5], %s7726_s28, %s7726_s28, %s5515_s6  }
  0x19   :  { %s5516_s0 = smov [#allocation7]  }
  0x1a   :  { %s100_s7 = sshll.u32 %s5516_s0, 4  ;;  %s101_s7 = int_to_ptr.vmem [resolvable:$true] %s100_s7 }
  0x1b   :  { %s5393_s30 = scalar_lea.vmem %s101_s7, 2048  ;;  %p5398_p6 = scmp.lt.s32.totalorder %s101_s7, %s101_s7 }
  0x1c   :  { %p5394_p5 = scmp.ne.s32.totalorder %s101_s7, %s5393_s30  ;;  %p5399_p7 = scmp.lt.s32.totalorder %s5393_s30, %s5393_s30 }
  0x1e   :  { %p5400_p8 = por %p5399_p7, %p5398_p6 }
  0x20   :  { %p5401_p9 = pnand %p5400_p8, %p5394_p5 }
  0x22   :  { %5404 = shalt.err (!%p5401_p9)
}
  0x23   :  { %s5517_s3 = smov 512   ;;  %s5518_s25 = smov 32  }
  0x24   :  { %106 = dma.hbm_to_vmem [thread:$0]  %s7714_s16, 2048, %s101_s7, [#allocation8], %s5517_s3, %s5517_s3, %s5518_s25  }
  0x25   :  { %s5519_s10 = smov [#allocation10]   ;;  %s5520_s5 = smov [#allocation2]  }
  0x26   :  { %s126_s1 = sshll.u32 %s5519_s10, 4  ;;  %s46_s26 = sshll.u32 %s5520_s5, 4  ;;  %s127_s1 = int_to_ptr.vmem [resolvable:$true] %s126_s1  ;;  %s47_s26 = int_to_ptr.vmem [resolvable:$true] %s46_s26 }
  0x27   :  { %s5413_s27 = scalar_lea.vmem %s127_s1, 2048  ;;  %p5418_p11 = scmp.lt.s32.totalorder %s127_s1, %s127_s1 }
  0x28   :  { %p5414_p10 = scmp.ne.s32.totalorder %s127_s1, %s5413_s27  ;;  %p5419_p12 = scmp.lt.s32.totalorder %s5413_s27, %s5413_s27 }
  0x2a   :  { %p5420_p13 = por %p5419_p12, %p5418_p11 }
  0x2c   :  { %p5421_p0 = pnand %p5420_p13, %p5414_p10 }
  0x2e   :  { %5424 = shalt.err (!%p5421_p0)
}
  0x2f   :  { %132 = dma.hbm_to_vmem [thread:$0]  %s7717_s19, 2048, %s127_s1, [#allocation11], %s5517_s3, %s5517_s3, %s5518_s25  }
  0x30   :  { %s5433_s16 = scalar_lea.vmem %s47_s26, 3072  ;;  %p5438_p2 = scmp.lt.s32.totalorder %s47_s26, %s47_s26 }
  0x31   :  { %p5434_p1 = scmp.ne.s32.totalorder %s47_s26, %s5433_s16  ;;  %p5439_p3 = scmp.lt.s32.totalorder %s5433_s16, %s5433_s16 }
  0x33   :  { %p5440_p4 = por %p5439_p3, %p5438_p2 }
  0x35   :  { %p5441_p5 = pnand %p5440_p4, %p5434_p1 }
  0x37   :  { %5444 = shalt.err (!%p5441_p5)
}
  0x38   :  { %s5521_s0 = smov 768   ;;  %s5522_s7 = smov 48  }
  0x39   :  { %s7837_s4 = sld [smem:[#allocation75_spill]]  ;;  %s5523_s10 = smov [#allocation6]  }
  0x3a   :  { %s82_s5 = sshll.u32 %s5523_s10, 4  ;;  %s5524_s27 = smov [#allocation9]   ;;  %s83_s5 = int_to_ptr.vmem [resolvable:$true] %s82_s5 }
  0x3b   :  { %s112_s28 = sshll.u32 %s5524_s27, 4  ;;  %s5453_s19 = scalar_lea.vmem %s83_s5, 1024  ;;  %s113_s28 = int_to_ptr.vmem [resolvable:$true] %s112_s28 }
  0x3c   :  { %p5454_p6 = scmp.ne.s32.totalorder %s83_s5, %s5453_s19  ;;  %p5458_p7 = scmp.lt.s32.totalorder %s83_s5, %s83_s5 }
  0x3d   :  { %p5459_p8 = scmp.lt.s32.totalorder %s5453_s19, %s5453_s19 }
  0x3f   :  { %52 = dma.hbm_to_vmem [thread:$0]  %s7837_s4, 3072, %s47_s26, [#allocation3], %s5521_s0, %s5521_s0, %s5522_s7  }
  0x40   :  { %p5460_p9 = por %p5459_p8, %p5458_p7 }
  0x42   :  { %p5461_p10 = pnand %p5460_p9, %p5454_p6 }
  0x44   :  { %5464 = shalt.err (!%p5461_p10)
}
  0x45   :  { %s7838_s1 = smov 128   ;;  %s5473_s26 = scalar_lea.vmem %s113_s28, 8192 }
  0x46   :  { %88 = dma.hbm_to_vmem [thread:$0]  %s7710_s12, 1024, %s83_s5, [#allocation5], %s7838_s1, %s7838_s1, %s5515_s6  }
  0x47   :  { %p5474_p11 = scmp.ne.s32.totalorder %s113_s28, %s5473_s26  ;;  %p5478_p12 = scmp.lt.s32.totalorder %s113_s28, %s113_s28 }
  0x48   :  { %p5479_p13 = scmp.lt.s32.totalorder %s5473_s26, %s5473_s26 }
  0x4a   :  { %p5480_p0 = por %p5479_p13, %p5478_p12 }
  0x4c   :  { %p5481_p1 = pnand %p5480_p0, %p5474_p11 }
  0x4e   :  { %5484 = shalt.err (!%p5481_p1)
}
  0x4f   :  { %118 = dma.hbm_to_vmem [thread:$0]  %s7715_s17, 8192, %s113_s28, [#allocation8], %s5517_s3, %s5517_s3, %s5518_s25  }
  0x50   :  { %s5525_s7 = smov [#allocation12]  }
  0x51   :  { %s140_s30 = sshll.u32 %s5525_s7, 4  ;;  %s141_s30 = int_to_ptr.vmem [resolvable:$true] %s140_s30 }
  0x52   :  { %s5493_s8 = scalar_lea.vmem %s141_s30, 2048  ;;  %p5498_p3 = scmp.lt.s32.totalorder %s141_s30, %s141_s30 }
  0x53   :  { %p5494_p2 = scmp.ne.s32.totalorder %s141_s30, %s5493_s8  ;;  %p5499_p4 = scmp.lt.s32.totalorder %s5493_s8, %s5493_s8 }
  0x55   :  { %p5500_p5 = por %p5499_p4, %p5498_p3 }
  0x57   :  { %p5501_p6 = pnand %p5500_p5, %p5494_p2 }
  0x59   :  { %5504 = shalt.err (!%p5501_p6)
}
  0x5a   :  { %146 = dma.hbm_to_vmem [thread:$0]  %s7719_s21, 2048, %s141_s30, [#allocation11], %s7838_s1, %s7838_s1, %s5515_s6  }
  0x5b   :  { %5505 = dma.done.wait [#allocation3], 3072  }
  0x5c   :  { %5506 = vsyncadd [#allocation3], 4294964224 }
  0x5d   :  { %5507 = dma.done.wait [#allocation5], 1536  }
  0x5e   :  { %5508 = vsyncadd [#allocation5], 4294965760 }
  0x5f   :  { %5509 = dma.done.wait [#allocation8], 10240  }
  0x60   :  { %5510 = vsyncadd [#allocation8], 4294957056 }
  0x61   :  { %5511 = dma.done.wait [#allocation11], 4096  }
  0x62   :  { %5512 = vsyncadd [#allocation11], 4294963200  ;;  %vm180_vm0 = vcmask 261120   ;;  %s7839_s3 = sld [smem:[#allocation71_spill]]  ;;  %v335_v56 = vld [vmem:[#allocation2 + $0x98] sm:$0xff]  ;;  %v337_v57 = vld [vmem:[#allocation2 + $0xa8] sm:$0xff] }
  0x63   :  { %420 = vmatprep.subr.mxu0 %v335_v56  ;;  %533 = vmatprep.subr.mxu1 %v337_v57  ;;  %v334_v58 = vld [vmem:[#allocation2 + $0x90] sm:$0xff]  ;;  %v336_v59 = vld [vmem:[#allocation2 + $0xa0] sm:$0xff]  ;;  %v329_v60 = vld [vmem:[#allocation2 + $0x68] sm:$0xff]  ;;  %s7840_s12 = sld [smem:[#allocation73_spill]]  ;;  %vm896_vm1 = vcmask 523264   ;;  %vm5527_vm2 = vmmov 0  }
  0x64   :  { %421 = vmatpush1.msra.mxu0 %v334_v58  ;;  %534 = vmatpush1.msra.mxu1 %v336_v59  ;;  %v331_v61 = vld [vmem:[#allocation2 + $0x78] sm:$0xff]  ;;  %v328_v62 = vld [vmem:[#allocation2 + $0x60] sm:$0xff]  ;;  %v330_v63 = vld [vmem:[#allocation2 + $0x70] sm:$0xff]  ;;  %s7841_s28 = sld [smem:[#allocation74_spill]] }
  0x65   :  { %422 = vmatprep.subr.mxu0 %v329_v60  ;;  %535 = vmatprep.subr.mxu1 %v331_v61  ;;  %v332_v57 = vld [vmem:[#allocation2 + $0x80] sm:$0xff]  ;;  %v327_v58 = vld [vmem:[#allocation2 + $0x58] sm:$0xff]  ;;  %s7844_s10 = sld [smem:[#allocation76_spill]] }
  0x66   :  { %423 = vmatpush1.msra.mxu0 %v328_v62  ;;  %536 = vmatpush1.msra.mxu1 %v330_v63  ;;  %v326_v62 = vld [vmem:[#allocation2 + $0x50] sm:$0xff]  ;;  %v321_v63 = vld [vmem:[#allocation2 + $0x28] sm:$0xff]  ;;  %s7847_s21 = sld [smem:[#allocation72_spill]] }
  0x67   :  { %s7848_s25 = sld [smem:[#allocation77_spill]] }
  0x68   :  { %v172_v0 = vld [vmem:[%s7839_s3] sm:$0xff]  ;;  %v174_v1 = vld [vmem:[%s7839_s3 + $0x10] sm:$0xff]  ;;  %v173_v2 = vld [vmem:[%s7839_s3 + $0x8] sm:$0xff]  ;;  %s7850_s1 = sld [smem:[#allocation79_spill]] }
  0x69   :  { %v181_v3 = vsel %vm180_vm0, %v172_v0, 0.0  ;;  %v187_v4 = vsel %vm180_vm0, %v174_v1, 0.0  ;;  %v175_v5 = vld [vmem:[%s7839_s3 + $0x18] sm:$0xff]  ;;  %v184_v6 = vsel %vm180_vm0, %v173_v2, 0.0  ;;  %v176_v8 = vld [vmem:[%s7839_s3 + $0x20] sm:$0xff]  ;;  %v177_v9 = vld [vmem:[%s7839_s3 + $0x28] sm:$0xff] }
  0x6a   :  { %182 = vadd.xlane.f32.xlu0 %v181_v3  ;;  %188 = vadd.xlane.f32.xlu1 %v187_v4  ;;  %v190_v7 = vsel %vm180_vm0, %v175_v5, 0.0  ;;  %v193_v10 = vsel %vm180_vm0, %v176_v8, 0.0  ;;  %v196_v11 = vsel %vm180_vm0, %v177_v9, 0.0  ;;  %v178_v12 = vld [vmem:[%s7839_s3 + $0x30] sm:$0xff]  ;;  %v179_v13 = vld [vmem:[%s7839_s3 + $0x38] sm:$0xff]  ;;  %v324_v3 = vld [vmem:[#allocation2 + $0x40] sm:$0xff] }
  0x6b   :  { %v199_v14 = vsel %vm180_vm0, %v178_v12, 0.0  ;;  %v202_v15 = vsel %vm180_vm0, %v179_v13, 0.0  ;;  %v317_v4 = vld [vmem:[#allocation2 + $0x8] sm:$0xff] }
  0x6e   :  { %185 = vadd.xlane.f32.xlu0 %v184_v6  ;;  %191 = vadd.xlane.f32.xlu1 %v190_v7  ;;  %v316_v6 = vld [vmem:[#allocation2] sm:$0xff]  ;;  %v318_v7 = vld [vmem:[#allocation2 + $0x10] sm:$0xff] }
  0x72   :  { %194 = vadd.xlane.f32.xlu0 %v193_v10  ;;  %197 = vadd.xlane.f32.xlu1 %v196_v11 }
  0x76   :  { %200 = vadd.xlane.f32.xlu0 %v199_v14  ;;  %203 = vadd.xlane.f32.xlu1 %v202_v15 }
  0xf3   :  { %v183_v16 = vpop.xlane.xlu0 %182  ;;  %v189_v17 = vpop.xlane.xlu1 %188 }
  0xf4   :  { %v206_v18 = vmul.f32 0.03125, %v183_v16  ;;  %v208_v19 = vmul.f32 0.03125, %v189_v17 }
  0xf6   :  { %v5724_v20 = vsub.f32 %v172_v0, %v206_v18  ;;  %v5726_v21 = vsub.f32 %v174_v1, %v208_v19  ;;  %v323_v0 = vld [vmem:[#allocation2 + $0x38] sm:$0xff]  ;;  %v325_v1 = vld [vmem:[#allocation2 + $0x48] sm:$0xff] }
  0xf7   :  { %v186_v22 = vpop.xlane.xlu0 %185  ;;  %v192_v23 = vpop.xlane.xlu1 %191  ;;  %424 = vmatprep.subr.mxu0 %v323_v0  ;;  %537 = vmatprep.subr.mxu1 %v325_v1 }
  0xf8   :  { %v207_v24 = vmul.f32 0.03125, %v186_v22  ;;  %v209_v25 = vmul.f32 0.03125, %v192_v23  ;;  %v222_v26 = vmul.f32 %v5724_v20, %v5724_v20  ;;  %v224_v27 = vmul.f32 %v5726_v21, %v5726_v21  ;;  %538 = vmatpush1.msra.mxu1 %v324_v3  ;;  %v320_v3 = vld [vmem:[#allocation2 + $0x20] sm:$0xff] }
  0xfa   :  { %v5732_v28 = vsub.f32 %v173_v2, %v207_v24  ;;  %v5734_v29 = vsub.f32 %v175_v5, %v209_v25  ;;  %v230_v30 = vsel %vm180_vm0, %v222_v26, 0.0  ;;  %v236_v33 = vsel %vm180_vm0, %v224_v27, 0.0  ;;  %v322_v2 = vld [vmem:[#allocation2 + $0x30] sm:$0xff]  ;;  %v319_v5 = vld [vmem:[#allocation2 + $0x18] sm:$0xff] }
  0xfb   :  { %231 = vadd.xlane.f32.xlu0 %v230_v30  ;;  %v195_v31 = vpop.xlane.xlu0 %194  ;;  %v198_v32 = vpop.xlane.xlu1 %197  ;;  %425 = vmatpush1.msra.mxu0 %v322_v2 }
  0xfc   :  { %v210_v34 = vmul.f32 0.03125, %v195_v31  ;;  %v211_v35 = vmul.f32 0.03125, %v198_v32  ;;  %v223_v36 = vmul.f32 %v5732_v28, %v5732_v28  ;;  %v225_v37 = vmul.f32 %v5734_v29, %v5734_v29  ;;  %426 = vmatprep.subr.mxu0 %v317_v4  ;;  %539 = vmatprep.subr.mxu1 %v319_v5 }
  0xfd   :  { %427 = vmatpush1.msra.mxu0 %v316_v6  ;;  %540 = vmatpush1.msra.mxu1 %v318_v7 }
  0xfe   :  { %v5742_v38 = vsub.f32 %v176_v8, %v210_v34  ;;  %v5744_v39 = vsub.f32 %v177_v9, %v211_v35  ;;  %v233_v40 = vsel %vm180_vm0, %v223_v36, 0.0  ;;  %v239_v43 = vsel %vm180_vm0, %v225_v37, 0.0  ;;  %v339_v9 = vld [vmem:[#allocation2 + $0xb8] sm:$0xff]  ;;  %v5769_v36 = vld [vmem:[%s7840_s12] ss:$0 sm:$0xff] }
  0xff   :  { %237 = vadd.xlane.f32.xlu0 %v236_v33  ;;  %234 = vadd.xlane.f32.xlu1 %v233_v40  ;;  %v201_v41 = vpop.xlane.xlu0 %200  ;;  %v204_v42 = vpop.xlane.xlu1 %203  ;;  %v7729_v8 = vmov 0.0  }
 0x100   :  { %v212_v44 = vmul.f32 0.03125, %v201_v41  ;;  %v213_v45 = vmul.f32 0.03125, %v204_v42  ;;  %v226_v46 = vmul.f32 %v5742_v38, %v5742_v38  ;;  %v227_v47 = vmul.f32 %v5744_v39, %v5744_v39  ;;  %460 = vmatprep.mubr.f32.mxu0 %v7729_v8  ;;  %573 = vmatprep.mubr.f32.mxu1 %v7729_v8  ;;  %v5775_v42 = vld [vmem:[%s7841_s28] ss:$0 sm:$0xff] }
 0x101   :  { %646 = vmatprep.subr.mxu0 %v339_v9 }
 0x102   :  { %v5752_v48 = vsub.f32 %v178_v12, %v212_v44  ;;  %v5754_v49 = vsub.f32 %v179_v13, %v213_v45  ;;  %v242_v50 = vsel %vm180_vm0, %v226_v46, 0.0  ;;  %v245_v51 = vsel %vm180_vm0, %v227_v47, 0.0 }
 0x103   :  { %240 = vadd.xlane.f32.xlu1 %v239_v43  ;;  %243 = vadd.xlane.f32.xlu0 %v242_v50 }
 0x104   :  { %v228_v52 = vmul.f32 %v5752_v48, %v5752_v48  ;;  %v229_v53 = vmul.f32 %v5754_v49, %v5754_v49 }
 0x106   :  { %v248_v54 = vsel %vm180_vm0, %v228_v52, 0.0  ;;  %v251_v55 = vsel %vm180_vm0, %v229_v53, 0.0  ;;  %v338_v52 = vld [vmem:[#allocation2 + $0xb0] sm:$0xff]  ;;  %v333_v53 = vld [vmem:[#allocation2 + $0x88] sm:$0xff] }
 0x107   :  { %246 = vadd.xlane.f32.xlu1 %v245_v51  ;;  %249 = vadd.xlane.f32.xlu0 %v248_v54 }
 0x10b   :  { %252 = vadd.xlane.f32.xlu1 %v251_v55 }
 0x184   :  { %v232_v10 = vpop.xlane.xlu0 %231 }
 0x185   :  { %v254_v11 = vmul.f32 0.03125, %v232_v10 }
 0x187   :  { %v262_v12 = vadd.f32 1e-12, %v254_v11 }
 0x188   :  { %v235_v13 = vpop.xlane.xlu1 %234  ;;  %v238_v14 = vpop.xlane.xlu0 %237 }
 0x189   :  { %5033 = vrsqrt.f32 %v262_v12  ;;  %v255_v15 = vmul.f32 0.03125, %v235_v13  ;;  %v256_v16 = vmul.f32 0.03125, %v238_v14  ;;  %v342_v12 = vlaneseq }
 0x18b   :  { %v263_v17 = vadd.f32 1e-12, %v255_v15  ;;  %v264_v18 = vadd.f32 1e-12, %v256_v16  ;;  %v5886_v13 = vshrl.u32 %v342_v12, 7 }
 0x18c   :  { %v241_v19 = vpop.xlane.xlu1 %240  ;;  %v244_v22 = vpop.xlane.xlu0 %243  ;;  %v5894_v15 = vld [vmem:[%s7844_s10] sm:$0x3f] }
 0x18d   :  { %5035 = vrsqrt.f32 %v263_v17  ;;  %v257_v23 = vmul.f32 0.03125, %v241_v19  ;;  %v258_v24 = vmul.f32 0.03125, %v244_v22  ;;  %7842 = vst [vmem:[#allocation17_spill] sm:$0xff] %v5886_v13  ;;  %v5889_v14 = vsub.s32 0, %v5886_v13 }
 0x18e   :  { %5037 = vrsqrt.f32 %v264_v18  ;;  %v7728_v16 = vsub.s32 1, %v5886_v13 }
 0x18f   :  { %v265_v25 = vadd.f32 1e-12, %v257_v23  ;;  %v266_v26 = vadd.f32 1e-12, %v258_v24  ;;  %7843 = vst [vmem:[#allocation18_spill] sm:$0xff] %v5889_v14  ;;  %v5899_v17 = vrot.slane %v5894_v15, %v5889_v14  ;;  %v6830_v14 = vld [vmem:[#allocation9 + $0x30] sm:$0xff] }
 0x190   :  { %v247_v27 = vpop.xlane.xlu1 %246  ;;  %v250_v30 = vpop.xlane.xlu0 %249  ;;  %v5904_v18 = vrot.slane %v5894_v15, %v7728_v16  ;;  %v6804_v16 = vld [vmem:[#allocation9 + $0x58] sm:$0xff]  ;;  %7871 = vst [vmem:[#allocation40_spill] sm:$0xff] %v6830_v14 }
 0x191   :  { %5039 = vrsqrt.f32 %v265_v25  ;;  %v259_v31 = vmul.f32 0.03125, %v247_v27  ;;  %v260_v33 = vmul.f32 0.03125, %v250_v30  ;;  %7863 = vst [vmem:[#allocation33_spill] sm:$0xff] %v6804_v16 }
 0x192   :  { %5041 = vrsqrt.f32 %v266_v26 }
 0x193   :  { %v267_v32 = vadd.f32 1e-12, %v259_v31  ;;  %v268_v37 = vadd.f32 1e-12, %v260_v33 }
 0x194   :  { %v253_v34 = vpop.xlane.xlu1 %252 }
 0x195   :  { %5043 = vrsqrt.f32 %v267_v32  ;;  %v261_v40 = vmul.f32 0.03125, %v253_v34 }
 0x196   :  { %v5034_v35 = vpop.eup %5033  ;;  %5045 = vrsqrt.f32 %v268_v37 }
 0x197   :  { %v278_v41 = vmul.f32 %v5034_v35, %v5724_v20  ;;  %v269_v46 = vadd.f32 1e-12, %v261_v40 }
 0x199   :  { %v293_v43 = vmul.f32 %v5769_v36, %v278_v41  ;;  %5047 = vrsqrt.f32 %v269_v46 }
 0x19a   :  { %v5036_v44 = vpop.eup %5035 }
 0x19b   :  { %v5038_v45 = vpop.eup %5037  ;;  %v5779_v47 = vadd.f32 %v5775_v42, %v293_v43  ;;  %v279_v50 = vmul.f32 %v5036_v44, %v5732_v28 }
 0x19c   :  { %v280_v51 = vmul.f32 %v5038_v45, %v5726_v21 }
 0x19d   :  { %4418 = vmatmul.mubr.msk.f32.vlgmr.msra.gmra.mxu0 %vm180_vm0, %v5779_v47  ;;  %4426 = vmatmul.mubr.msk.f32.vlgmr.msra.gmra.mxu1 %vm180_vm0, %v5779_v47  ;;  %v294_v20 = vmul.f32 %v5769_v36, %v279_v50 }
 0x19e   :  { %v5040_v54 = vpop.eup %5039  ;;  %466 = vmatprep.mubr.f32.mxu0 %v7729_v8  ;;  %579 = vmatprep.mubr.f32.mxu1 %v7729_v8  ;;  %v295_v21 = vmul.f32 %v5769_v36, %v280_v51 }
 0x19f   :  { %v5791_v28 = vadd.f32 %v5775_v42, %v294_v20  ;;  %v281_v55 = vmul.f32 %v5040_v54, %v5734_v29  ;;  %647 = vmatpush1.msra.mxu0 %v338_v52  ;;  %v5042_v56 = vpop.eup %5041 }
 0x1a0   :  { %648 = vmatprep.subr.mxu0 %v333_v53  ;;  %v5802_v59 = vadd.f32 %v5775_v42, %v295_v21  ;;  %v282_v60 = vmul.f32 %v5042_v56, %v5742_v38  ;;  %v5941_v53 = vsub.s32 2, %v5886_v13 }
 0x1a1   :  { %4419 = vmatmul.mubr.msk.f32.gmra.mxu0 %vm180_vm0, %v5791_v28  ;;  %4427 = vmatmul.mubr.msk.f32.gmra.mxu1 %vm180_vm0, %v5791_v28  ;;  %v296_v29 = vmul.f32 %v5769_v36, %v281_v55  ;;  %v5946_v55 = vsub.s32 3, %v5886_v13 }
 0x1a2   :  { %472 = vmatprep.mubr.f32.mxu0 %v7729_v8  ;;  %585 = vmatprep.mubr.f32.mxu1 %v7729_v8  ;;  %v5044_v61 = vpop.eup %5043  ;;  %v297_v38 = vmul.f32 %v5769_v36, %v282_v60  ;;  %7845 = vst [vmem:[#allocation19_spill] sm:$0xff] %v5941_v53 }
 0x1a3   :  { %649 = vmatpush1.msra.mxu0 %v332_v57  ;;  %v5813_v0 = vadd.f32 %v5775_v42, %v296_v29  ;;  %v283_v1 = vmul.f32 %v5044_v61, %v5744_v39  ;;  %v5046_v2 = vpop.eup %5045  ;;  %7846 = vst [vmem:[#allocation20_spill] sm:$0xff] %v5946_v55  ;;  %v364_v29 = vsub.s32 5, %v5886_v13 }
 0x1a4   :  { %650 = vmatprep.subr.mxu0 %v327_v58  ;;  %v5824_v4 = vadd.f32 %v5775_v42, %v297_v38  ;;  %v284_v39 = vmul.f32 %v5046_v2, %v5752_v48  ;;  %v5952_v58 = vrot.slane %v5894_v15, %v5941_v53  ;;  %v6828_v53 = vld [vmem:[#allocation9 + $0x20] sm:$0xff] }
 0x1a5   :  { %4420 = vmatmul.mubr.msk.f32.gmra.mxu0 %vm180_vm0, %v5802_v59  ;;  %4428 = vmatmul.mubr.msk.f32.gmra.mxu1 %vm180_vm0, %v5802_v59  ;;  %v298_v5 = vmul.f32 %v5769_v36, %v283_v1  ;;  %7870 = vst [vmem:[#allocation39_spill] sm:$0xff] %v6828_v53 }
 0x1a6   :  { %478 = vmatprep.mubr.f32.mxu0 %v7729_v8  ;;  %591 = vmatprep.mubr.f32.mxu1 %v7729_v8  ;;  %v5048_v6 = vpop.eup %5047  ;;  %v299_v9 = vmul.f32 %v5769_v36, %v284_v39 }
 0x1a7   :  { %651 = vmatpush1.msra.mxu0 %v326_v62  ;;  %v5835_v7 = vadd.f32 %v5775_v42, %v298_v5  ;;  %v285_v10 = vmul.f32 %v5048_v6, %v5754_v49  ;;  %v5959_v62 = vrot.slane %v5894_v15, %v5946_v55  ;;  %v5967_v5 = vrot.slane %v5894_v15, %v364_v29  ;;  %v6813_v55 = vld [vmem:[#allocation9 + $0x50] sm:$0xff] }
 0x1a8   :  { %652 = vmatprep.subr.mxu0 %v321_v63  ;;  %v5846_v48 = vadd.f32 %v5775_v42, %v299_v9  ;;  %7865 = vst [vmem:[#allocation35_spill] sm:$0xff] %v6813_v55 }
 0x1a9   :  { %4421 = vmatmul.mubr.msk.f32.gmra.mxu0 %vm180_vm0, %v5813_v0  ;;  %4429 = vmatmul.mubr.msk.f32.gmra.mxu1 %vm180_vm0, %v5813_v0  ;;  %v300_v11 = vmul.f32 %v5769_v36, %v285_v10 }
 0x1aa   :  { %484 = vmatprep.mubr.f32.mxu0 %v7729_v8  ;;  %597 = vmatprep.mubr.f32.mxu1 %v7729_v8 }
 0x1ab   :  { %653 = vmatpush1.msra.mxu0 %v320_v3  ;;  %v5856_v49 = vadd.f32 %v5775_v42, %v300_v11 }
 0x1ad   :  { %4422 = vmatmul.mubr.msk.f32.gmra.mxu0 %vm180_vm0, %v5824_v4  ;;  %4430 = vmatmul.mubr.msk.f32.gmra.mxu1 %vm180_vm0, %v5824_v4 }
 0x1ae   :  { %490 = vmatprep.mubr.f32.mxu0 %v7729_v8  ;;  %603 = vmatprep.mubr.f32.mxu1 %v7729_v8 }
 0x1b1   :  { %4423 = vmatmul.mubr.msk.f32.gmra.mxu0 %vm180_vm0, %v5835_v7  ;;  %4431 = vmatmul.mubr.msk.f32.gmra.mxu1 %vm180_vm0, %v5835_v7 }
 0x1b2   :  { %496 = vmatprep.mubr.f32.mxu0 %v7729_v8  ;;  %609 = vmatprep.mubr.f32.mxu1 %v7729_v8 }
 0x1b5   :  { %4424 = vmatmul.mubr.msk.f32.gmra.mxu0 %vm180_vm0, %v5846_v48  ;;  %4432 = vmatmul.mubr.msk.f32.gmra.mxu1 %vm180_vm0, %v5846_v48 }
 0x1b6   :  { %502 = vmatprep.mubr.f32.mxu0 %v7729_v8  ;;  %615 = vmatprep.mubr.f32.mxu1 %v7729_v8 }
 0x1b9   :  { %4425 = vmatmul.mubr.msk.f32.gmra.mxu0 %vm180_vm0, %v5856_v49  ;;  %4433 = vmatmul.mubr.msk.f32.gmra.mxu1 %vm180_vm0, %v5856_v49 }
 0x1ba   :  { %686 = vmatprep.mubr.f32.mxu0 %v7729_v8 }
 0x1bd   :  { %4434 = vmatmul.mubr.msk.f32.vlgmr.msra.gmra.mxu0 %vm180_vm0, %v5779_v47 }
 0x1be   :  { %692 = vmatprep.mubr.f32.mxu0 %v7729_v8 }
 0x1c1   :  { %4435 = vmatmul.mubr.msk.f32.gmra.mxu0 %vm180_vm0, %v5791_v28 }
 0x1c2   :  { %698 = vmatprep.mubr.f32.mxu0 %v7729_v8 }
 0x1c5   :  { %4436 = vmatmul.mubr.msk.f32.gmra.mxu0 %vm180_vm0, %v5802_v59 }
 0x1c6   :  { %704 = vmatprep.mubr.f32.mxu0 %v7729_v8 }
 0x1c9   :  { %4437 = vmatmul.mubr.msk.f32.gmra.mxu0 %vm180_vm0, %v5813_v0 }
 0x1ca   :  { %710 = vmatprep.mubr.f32.mxu0 %v7729_v8 }
 0x1cd   :  { %4438 = vmatmul.mubr.msk.f32.gmra.mxu0 %vm180_vm0, %v5824_v4 }
 0x1ce   :  { %716 = vmatprep.mubr.f32.mxu0 %v7729_v8 }
 0x1d1   :  { %4439 = vmatmul.mubr.msk.f32.gmra.mxu0 %vm180_vm0, %v5835_v7 }
 0x1d2   :  { %722 = vmatprep.mubr.f32.mxu0 %v7729_v8 }
 0x1d5   :  { %4440 = vmatmul.mubr.msk.f32.gmra.mxu0 %vm180_vm0, %v5846_v48 }
 0x1d6   :  { %728 = vmatprep.mubr.f32.mxu0 %v7729_v8 }
 0x1d9   :  { %4441 = vmatmul.mubr.msk.f32.gmra.mxu0 %vm180_vm0, %v5856_v49 }
 0x25d   :  { %v462_v19 = vpop.f32.mrf.mxu0  ;;  %v5906_v22 = vpop.f32.mrf.mxu1 }
 0x25e   :  { %v463_v23 = vadd.f32 %v462_v19, %v5899_v17 }
 0x25f   :  { %v464_v24 = vpop.f32.mrf.mxu0  ;;  %v5909_v25 = vpop.f32.mrf.mxu1 }
 0x260   :  { %v465_v26 = vadd.f32 %v464_v24, %v5904_v18  ;;  %4716 = vmatprep.mubr.f32.mxu1 %v463_v23 }
 0x261   :  { %v5912_v27 = vpop.f32.mrf.mxu0  ;;  %v5914_v30 = vpop.f32.mrf.mxu1 }
 0x262   :  { %4772 = vmatprep.mubr.f32.mxu0 %v465_v26 }
 0x263   :  { %v5916_v31 = vpop.f32.mrf.mxu0  ;;  %v5918_v32 = vpop.f32.mrf.mxu1 }
 0x265   :  { %v5920_v33 = vpop.f32.mrf.mxu0  ;;  %v5922_v34 = vpop.f32.mrf.mxu1 }
 0x267   :  { %v5924_v35 = vpop.f32.mrf.mxu0  ;;  %v5926_v36 = vpop.f32.mrf.mxu1 }
 0x269   :  { %v5928_v37 = vpop.f32.mrf.mxu0  ;;  %v593_v40 = vpop.f32.mrf.mxu1 }
 0x26a   :  { %v594_v29 = vadd.f32 %v593_v40, %v5952_v58 }
 0x26b   :  { %v5930_v41 = vpop.f32.mrf.mxu0  ;;  %v595_v42 = vpop.f32.mrf.mxu1 }
 0x26d   :  { %v5932_v43 = vpop.f32.mrf.mxu0  ;;  %v599_v44 = vpop.f32.mrf.mxu1 }
 0x26e   :  { %v600_v24 = vadd.f32 %v599_v44, %v5952_v58  ;;  %v596_v44 = vadd.f32 %v595_v42, %v5959_v62  ;;  %v582_v42 = vadd.f32 %v5914_v30, %v5952_v58 }
 0x26f   :  { %v5934_v45 = vpop.f32.mrf.mxu0  ;;  %v601_v46 = vpop.f32.mrf.mxu1 }
 0x271   :  { %v5936_v50 = vpop.f32.mrf.mxu0  ;;  %v605_v51 = vpop.f32.mrf.mxu1 }
 0x272   :  { %v606_v10 = vadd.f32 %v605_v51, %v5952_v58  ;;  %v602_v51 = vadd.f32 %v601_v46, %v5959_v62  ;;  %v588_v46 = vadd.f32 %v5922_v34, %v5952_v58 }
 0x273   :  { %v5938_v52 = vpop.f32.mrf.mxu0  ;;  %v607_v20 = vpop.f32.mrf.mxu1 }
 0x274   :  { %v608_v19 = vadd.f32 %v607_v20, %v5959_v62 }
 0x275   :  { %v5943_v54 = vpop.f32.mrf.mxu0  ;;  %v611_v21 = vpop.f32.mrf.mxu1 }
 0x276   :  { %v612_v2 = vadd.f32 %v611_v21, %v5952_v58 }
 0x277   :  { %v5948_v56 = vpop.f32.mrf.mxu0  ;;  %v613_v57 = vpop.f32.mrf.mxu1 }
 0x278   :  { %v614_v6 = vadd.f32 %v613_v57, %v5959_v62 }
 0x279   :  { %v5955_v60 = vpop.f32.mrf.mxu0  ;;  %v617_v61 = vpop.f32.mrf.mxu1 }
 0x27a   :  { %v618_v63 = vadd.f32 %v617_v61, %v5952_v58 }
 0x27b   :  { %v5962_v38 = vpop.f32.mrf.mxu0  ;;  %v619_v1 = vpop.f32.mrf.mxu1 }
 0x27c   :  { %v620_v3 = vadd.f32 %v619_v1, %v5959_v62  ;;  %4700 = vmatprep.subr.mxu1 %v618_v63 }
 0x27d   :  { %v5969_v39 = vpop.f32.mrf.mxu0  ;;  %4701 = vmatpush3.xpose.msra.mxu1 %v618_v63 }
 0x27e   :  { %4702 = vmatprep.subr.mxu1 %v612_v2  ;;  %4756 = vmatprep.subr.mxu0 %v620_v3 }
 0x27f   :  { %v690_v9 = vpop.f32.mrf.mxu0  ;;  %4757 = vmatpush3.xpose.msra.mxu0 %v620_v3 }
 0x280   :  { %v5974_v11 = vadd.f32 %v690_v9, %v5967_v5  ;;  %4758 = vmatprep.subr.mxu0 %v614_v6  ;;  %v584_v9 = vadd.f32 %v5918_v32, %v5959_v62 }
 0x281   :  { %v5976_v12 = vpop.f32.mrf.mxu0  ;;  %4703 = vmatpush3.xpose.msra.mxu1 %v612_v2  ;;  %v590_v2 = vadd.f32 %v5926_v36, %v5959_v62  ;;  %v576_v36 = vadd.f32 %v5906_v22, %v5952_v58  ;;  %v469_v58 = vadd.f32 %v5912_v27, %v5899_v17 }
 0x282   :  { %4704 = vmatprep.subr.mxu1 %v606_v10 }
 0x283   :  { %v696_v23 = vpop.f32.mrf.mxu0  ;;  %4759 = vmatpush3.xpose.msra.mxu0 %v614_v6 }
 0x284   :  { %v5981_v26 = vadd.f32 %v696_v23, %v5967_v5  ;;  %4760 = vmatprep.subr.mxu0 %v608_v19 }
 0x285   :  { %v5983_v21 = vpop.f32.mrf.mxu0  ;;  %4705 = vmatpush3.xpose.msra.mxu1 %v606_v10 }
 0x286   :  { %4706 = vmatprep.subr.mxu1 %v600_v24 }
 0x287   :  { %v702_v57 = vpop.f32.mrf.mxu0  ;;  %4761 = vmatpush3.xpose.msra.mxu0 %v608_v19  ;;  %v360_v19 = vsub.s32 4, %v5886_v13  ;;  %v6824_v13 = vld [vmem:[#allocation9 + $0x38] sm:$0xff] }
 0x288   :  { %v5988_v20 = vadd.f32 %v702_v57, %v5967_v5  ;;  %4762 = vmatprep.subr.mxu0 %v602_v51  ;;  %7869 = vst [vmem:[#allocation38_spill] sm:$0xff] %v6824_v13 }
 0x289   :  { %v5990_v61 = vpop.f32.mrf.mxu0  ;;  %4707 = vmatpush3.xpose.msra.mxu1 %v600_v24  ;;  %v578_v24 = vadd.f32 %v5909_v25, %v5959_v62  ;;  %v361_v32 = vrot.slane %v5894_v15, %v360_v19  ;;  %v471_v25 = vadd.f32 %v5916_v31, %v5904_v18  ;;  %v477_v15 = vadd.f32 %v5924_v35, %v5904_v18 }
 0x28a   :  { %4708 = vmatprep.subr.mxu1 %v594_v29  ;;  %v483_v31 = vadd.f32 %v5930_v41, %v5904_v18  ;;  %v489_v35 = vadd.f32 %v5934_v45, %v5904_v18  ;;  %v495_v41 = vadd.f32 %v5938_v52, %v5904_v18  ;;  %v501_v45 = vadd.f32 %v5948_v56, %v5904_v18 }
 0x28b   :  { %v708_v63 = vpop.f32.mrf.mxu0  ;;  %4763 = vmatpush3.xpose.msra.mxu0 %v602_v51  ;;  %v507_v52 = vadd.f32 %v5962_v38, %v5904_v18 }
 0x28c   :  { %v5996_v1 = vadd.f32 %v708_v63, %v5967_v5  ;;  %4764 = vmatprep.subr.mxu0 %v596_v44  ;;  %v481_v63 = vadd.f32 %v5928_v37, %v5899_v17  ;;  %v493_v37 = vadd.f32 %v5936_v50, %v5899_v17  ;;  %v505_v50 = vadd.f32 %v5955_v60, %v5899_v17  ;;  %v736_v60 = vld [vmem:[%s7847_s21 + $0x8] sm:$0xff] }
 0x28d   :  { %v712_v40 = vpop.f32.mrf.mxu0  ;;  %4709 = vmatpush3.xpose.msra.mxu1 %v594_v29 }
 0x28e   :  { %4710 = vmatprep.subr.mxu1 %v588_v46 }
 0x28f   :  { %v714_v3 = vpop.f32.mrf.mxu0  ;;  %4765 = vmatpush3.xpose.msra.mxu0 %v596_v44  ;;  %v475_v44 = vadd.f32 %v5920_v33, %v5899_v17  ;;  %v487_v33 = vadd.f32 %v5932_v43, %v5899_v17  ;;  %v499_v43 = vadd.f32 %v5943_v54, %v5899_v17 }
 0x290   :  { %v6003_v6 = vadd.f32 %v714_v3, %v5967_v5  ;;  %4766 = vmatprep.subr.mxu0 %v590_v2 }
 0x291   :  { %v718_v34 = vpop.f32.mrf.mxu0  ;;  %4711 = vmatpush3.xpose.msra.mxu1 %v588_v46  ;;  %v713_v46 = vadd.f32 %v712_v40, %v361_v32  ;;  %v701_v40 = vadd.f32 %v5983_v21, %v361_v32  ;;  %v689_v21 = vadd.f32 %v5969_v39, %v361_v32  ;;  %v735_v39 = vld [vmem:[%s7847_s21] sm:$0xff] }
 0x292   :  { %4712 = vmatprep.subr.mxu1 %v582_v42  ;;  %v719_v27 = vadd.f32 %v718_v34, %v361_v32 }
 0x293   :  { %v720_v10 = vpop.f32.mrf.mxu0  ;;  %4767 = vmatpush3.xpose.msra.mxu0 %v590_v2  ;;  %v707_v2 = vadd.f32 %v5990_v61, %v361_v32  ;;  %v695_v61 = vadd.f32 %v5976_v12, %v361_v32 }
 0x294   :  { %v6011_v23 = vadd.f32 %v720_v10, %v5967_v5  ;;  %4768 = vmatprep.subr.mxu0 %v584_v9 }
 0x295   :  { %v724_v30 = vpop.f32.mrf.mxu0  ;;  %4713 = vmatpush3.xpose.msra.mxu1 %v582_v42 }
 0x296   :  { %4714 = vmatprep.subr.mxu1 %v576_v36  ;;  %v725_v62 = vadd.f32 %v724_v30, %v361_v32 }
 0x297   :  { %v726_v51 = vpop.f32.mrf.mxu0  ;;  %4769 = vmatpush3.xpose.msra.mxu0 %v584_v9  ;;  %v738_v9 = vld [vmem:[%s7847_s21 + $0x18] sm:$0xff] }
 0x298   :  { %v6017_v57 = vadd.f32 %v726_v51, %v5967_v5  ;;  %4770 = vmatprep.subr.mxu0 %v578_v24  ;;  %v737_v51 = vld [vmem:[%s7847_s21 + $0x10] sm:$0xff] }
 0x299   :  { %v730_v22 = vpop.f32.mrf.mxu0  ;;  %4715 = vmatpush3.xpose.msra.mxu1 %v576_v36 }
 0x29a   :  { %v731_v29 = vadd.f32 %v730_v22, %v361_v32 }
 0x29b   :  { %4771 = vmatpush3.xpose.msra.mxu0 %v578_v24  ;;  %v732_v54 = vpop.f32.mrf.mxu0 }
 0x29c   :  { %4717 = vmatmul.mubr.f32.vlgmr.msra.gmra.mxu1 %v469_v58  ;;  %4728 = vmatprep.subr.mxu1 %v731_v29  ;;  %v6052_v56 = vadd.f32 %v732_v54, %v5967_v5  ;;  %v741_v54 = vld [vmem:[%s7847_s21 + $0x30] sm:$0xff] }
 0x29d   :  { %4719 = vmatprep.mubr.f32.mxu1 %v475_v44  ;;  %4729 = vmatpush3.msra.mxu1 %v731_v29 }
 0x29e   :  { %4730 = vmatprep.subr.mxu1 %v725_v62  ;;  %4773 = vmatmul.mubr.f32.vlgmr.msra.gmra.mxu0 %v471_v25  ;;  %v740_v25 = vld [vmem:[%s7847_s21 + $0x28] sm:$0xff] }
 0x29f   :  { %4731 = vmatpush3.msra.mxu1 %v725_v62  ;;  %4775 = vmatprep.mubr.f32.mxu0 %v477_v15 }
 0x2a0   :  { %4720 = vmatmul.mubr.f32.gmra.mxu1 %v481_v63  ;;  %4732 = vmatprep.subr.mxu1 %v719_v27 }
 0x2a1   :  { %4722 = vmatprep.mubr.f32.mxu1 %v487_v33  ;;  %4733 = vmatpush3.msra.mxu1 %v719_v27  ;;  %v739_v33 = vld [vmem:[%s7847_s21 + $0x20] sm:$0xff] }
 0x2a2   :  { %4734 = vmatprep.subr.mxu1 %v713_v46  ;;  %4776 = vmatmul.mubr.f32.gmra.mxu0 %v483_v31 }
 0x2a3   :  { %4735 = vmatpush3.msra.mxu1 %v713_v46  ;;  %4778 = vmatprep.mubr.f32.mxu0 %v489_v35 }
 0x2a4   :  { %4723 = vmatmul.mubr.f32.gmra.mxu1 %v493_v37  ;;  %4736 = vmatprep.subr.mxu1 %v707_v2 }
 0x2a5   :  { %4725 = vmatprep.mubr.f32.mxu1 %v499_v43  ;;  %4737 = vmatpush3.msra.mxu1 %v707_v2  ;;  %v742_v43 = vld [vmem:[%s7847_s21 + $0x38] sm:$0xff]  ;;  %s7849_s21 = sld [smem:[#allocation78_spill]] }
 0x2a6   :  { %4738 = vmatprep.subr.mxu1 %v701_v40  ;;  %4779 = vmatmul.mubr.f32.gmra.mxu0 %v495_v41 }
 0x2a7   :  { %4739 = vmatpush3.msra.mxu1 %v701_v40  ;;  %4781 = vmatprep.mubr.f32.mxu0 %v501_v45 }
 0x2a8   :  { %4726 = vmatmul.mubr.f32.gmra.mxu1 %v505_v50  ;;  %4740 = vmatprep.subr.mxu1 %v695_v61 }
 0x2a9   :  { %4741 = vmatpush3.msra.mxu1 %v695_v61 }
 0x2aa   :  { %4742 = vmatprep.subr.mxu1 %v689_v21  ;;  %4782 = vmatmul.mubr.f32.gmra.mxu0 %v507_v52 }
 0x2ab   :  { %4743 = vmatpush3.msra.mxu1 %v689_v21 }
 0x2ac   :  { %4784 = vmatprep.subr.mxu1 %v6052_v56 }
 0x35c   :  { %v4718_v17 = vpop.f32.mrf.mxu1 }
 0x35d   :  { %v881_v12 = vmul.f32 0.25, %v4718_v17 }
 0x35e   :  { %v841_v18 = vpop.f32.mrf.mxu1  ;;  %v4774_v38 = vpop.f32.mrf.mxu0 }
 0x35f   :  { %v880_v5 = vmul.f32 0.25, %v841_v18  ;;  %v6061_v3 = vadd.f32 %v881_v12, %v736_v60  ;;  %v1220_v41 = vmul.f32 0.25, %v4774_v38 }
 0x360   :  { %v4721_v42 = vpop.f32.mrf.mxu1  ;;  %v1180_v34 = vpop.f32.mrf.mxu0 }
 0x361   :  { %v883_v10 = vmul.f32 0.25, %v4721_v42  ;;  %v900_v36 = vsel %vm896_vm1, %v6061_v3, -inf  ;;  %v6068_v19 = vadd.f32 %v880_v5, %v735_v39  ;;  %v1219_v52 = vmul.f32 0.25, %v1180_v34 }
 0x362   :  { %901 = vmax.xlane.f32.xlu1 %v900_v36  ;;  %v851_v30 = vpop.f32.mrf.mxu1  ;;  %v4777_v24 = vpop.f32.mrf.mxu0 }
 0x363   :  { %v882_v32 = vmul.f32 0.25, %v851_v30  ;;  %v897_v22 = vsel %vm896_vm1, %v6068_v19, -inf  ;;  %v6075_v58 = vadd.f32 %v883_v10, %v738_v9  ;;  %v1222_v38 = vmul.f32 0.25, %v4777_v24 }
 0x364   :  { %898 = vmax.xlane.f32.xlu0 %v897_v22  ;;  %v4724_v29 = vpop.f32.mrf.mxu1  ;;  %v1190_v44 = vpop.f32.mrf.mxu0  ;;  %v6109_v10 = vadd.f32 %v1220_v41, %v736_v60  ;;  %v6113_v30 = vadd.f32 %v1219_v52, %v735_v39 }
 0x365   :  { %v885_v62 = vmul.f32 0.25, %v4724_v29  ;;  %v906_v15 = vsel %vm896_vm1, %v6075_v58, -inf  ;;  %v6082_v63 = vadd.f32 %v882_v32, %v737_v51  ;;  %v1221_v36 = vmul.f32 0.25, %v1190_v44 }
 0x366   :  { %907 = vmax.xlane.f32.xlu1 %v906_v15  ;;  %v861_v27 = vpop.f32.mrf.mxu1  ;;  %v4780_v37 = vpop.f32.mrf.mxu0  ;;  %v1238_v24 = vsel %vm896_vm1, %v6109_v10, -inf  ;;  %v6117_v29 = vadd.f32 %v1222_v38, %v738_v9  ;;  %v1235_v60 = vsel %vm896_vm1, %v6113_v30, -inf }
 0x367   :  { %v884_v31 = vmul.f32 0.25, %v861_v27  ;;  %v903_v46 = vsel %vm896_vm1, %v6082_v63, -inf  ;;  %v6089_v35 = vadd.f32 %v885_v62, %v740_v25  ;;  %v1224_v22 = vmul.f32 0.25, %v4780_v37 }
 0x368   :  { %904 = vmax.xlane.f32.xlu0 %v903_v46  ;;  %v4727_v2 = vpop.f32.mrf.mxu1  ;;  %v1200_v18 = vpop.f32.mrf.mxu0  ;;  %v6121_v15 = vadd.f32 %v1221_v36, %v737_v51  ;;  %v1244_v39 = vsel %vm896_vm1, %v6117_v29, -inf }
 0x369   :  { %v887_v40 = vmul.f32 0.25, %v4727_v2  ;;  %v912_v45 = vsel %vm896_vm1, %v6089_v35, -inf  ;;  %v6096_v50 = vadd.f32 %v884_v31, %v739_v33  ;;  %v1223_v62 = vmul.f32 0.25, %v1200_v18 }
 0x36a   :  { %913 = vmax.xlane.f32.xlu1 %v912_v45  ;;  %v871_v61 = vpop.f32.mrf.mxu1  ;;  %v4783_v32 = vpop.f32.mrf.mxu0  ;;  %v6125_v31 = vadd.f32 %v1224_v22, %v740_v25  ;;  %v1241_v9 = vsel %vm896_vm1, %v6121_v15, -inf }
 0x36b   :  { %v886_v21 = vmul.f32 0.25, %v871_v61  ;;  %v909_v17 = vsel %vm896_vm1, %v6096_v50, -inf  ;;  %v6103_v12 = vadd.f32 %v887_v40, %v742_v43  ;;  %v1226_v27 = vmul.f32 0.25, %v4783_v32 }
 0x36c   :  { %910 = vmax.xlane.f32.xlu0 %v909_v17  ;;  %v1210_v44 = vpop.f32.mrf.mxu0  ;;  %v6129_v37 = vadd.f32 %v1223_v62, %v739_v33  ;;  %v1250_v51 = vsel %vm896_vm1, %v6125_v31, -inf }
 0x36d   :  { %v918_v5 = vsel %vm896_vm1, %v6103_v12, -inf  ;;  %v6107_v42 = vadd.f32 %v886_v21, %v741_v54  ;;  %v1225_v46 = vmul.f32 0.25, %v1210_v44  ;;  %v6133_v2 = vadd.f32 %v1226_v27, %v742_v43 }
 0x36e   :  { %919 = vmax.xlane.f32.xlu1 %v918_v5  ;;  %v1247_v41 = vsel %vm896_vm1, %v6129_v37, -inf }
 0x36f   :  { %v915_v34 = vsel %vm896_vm1, %v6107_v42, -inf  ;;  %v6137_v40 = vadd.f32 %v1225_v46, %v741_v54  ;;  %v1256_v25 = vsel %vm896_vm1, %v6133_v2, -inf }
 0x370   :  { %916 = vmax.xlane.f32.xlu0 %v915_v34 }
 0x371   :  { %v1253_v33 = vsel %vm896_vm1, %v6137_v40, -inf }
 0x372   :  { %1239 = vmax.xlane.f32.xlu1 %v1238_v24 }
 0x374   :  { %1236 = vmax.xlane.f32.xlu0 %v1235_v60 }
 0x376   :  { %1245 = vmax.xlane.f32.xlu1 %v1244_v39 }
 0x378   :  { %1242 = vmax.xlane.f32.xlu0 %v1241_v9 }
 0x37a   :  { %1251 = vmax.xlane.f32.xlu1 %v1250_v51 }
 0x37c   :  { %1248 = vmax.xlane.f32.xlu0 %v1247_v41 }
 0x37e   :  { %1257 = vmax.xlane.f32.xlu1 %v1256_v25 }
 0x380   :  { %1254 = vmax.xlane.f32.xlu0 %v1253_v33 }
 0x3eb   :  { %v902_v45 = vpop.xlane.xlu1 %901 }
 0x3ec   :  { %v922_v61 = vsub.f32 %v6061_v3, %v902_v45 }
 0x3ed   :  { %v899_v43 = vpop.xlane.xlu0 %898 }
 0x3ee   :  { %v931_v52 = vmul.f32 1.442695, %v922_v61  ;;  %v921_v21 = vsub.f32 %v6068_v19, %v899_v43 }
 0x3ef   :  { %v908_v17 = vpop.xlane.xlu1 %907 }
 0x3f0   :  { %5049 = vpow2.f32 %v931_v52  ;;  %v929_v54 = vmul.f32 1.442695, %v921_v21  ;;  %v924_v18 = vsub.f32 %v6075_v58, %v908_v17 }
 0x3f1   :  { %v905_v38 = vpop.xlane.xlu0 %904 }
 0x3f2   :  { %5051 = vpow2.f32 %v929_v54  ;;  %v935_v5 = vmul.f32 1.442695, %v924_v18  ;;  %v923_v36 = vsub.f32 %v6082_v63, %v905_v38 }
 0x3f3   :  { %v914_v34 = vpop.xlane.xlu1 %913 }
 0x3f4   :  { %5053 = vpow2.f32 %v935_v5  ;;  %v933_v32 = vmul.f32 1.442695, %v923_v36  ;;  %v926_v22 = vsub.f32 %v6089_v35, %v914_v34 }
 0x3f5   :  { %v911_v3 = vpop.xlane.xlu0 %910 }
 0x3f6   :  { %5055 = vpow2.f32 %v933_v32  ;;  %v939_v24 = vmul.f32 1.442695, %v926_v22  ;;  %v925_v19 = vsub.f32 %v6096_v50, %v911_v3 }
 0x3f7   :  { %v920_v62 = vpop.xlane.xlu1 %919 }
 0x3f8   :  { %5057 = vpow2.f32 %v939_v24  ;;  %v937_v60 = vmul.f32 1.442695, %v925_v19  ;;  %v928_v58 = vsub.f32 %v6103_v12, %v920_v62 }
 0x3f9   :  { %v917_v44 = vpop.xlane.xlu0 %916 }
 0x3fa   :  { %5059 = vpow2.f32 %v937_v60  ;;  %v943_v27 = vmul.f32 1.442695, %v928_v58  ;;  %v927_v63 = vsub.f32 %v6107_v42, %v917_v44 }
 0x3fb   :  { %v1240_v39 = vpop.xlane.xlu1 %1239 }
 0x3fc   :  { %5061 = vpow2.f32 %v943_v27  ;;  %v941_v46 = vmul.f32 1.442695, %v927_v63  ;;  %v1260_v35 = vsub.f32 %v6109_v10, %v1240_v39 }
 0x3fd   :  { %v6152_v9 = vpop.eup %5049  ;;  %v1237_v51 = vpop.xlane.xlu0 %1236 }
 0x3fe   :  { %5063 = vpow2.f32 %v941_v46  ;;  %v1269_v50 = vmul.f32 1.442695, %v1260_v35  ;;  %v1259_v41 = vsub.f32 %v6113_v30, %v1237_v51  ;;  %v948_v12 = vsel %vm896_vm1, %v6152_v9, 0.0 }
 0x3ff   :  { %v6157_v25 = vpop.eup %5051  ;;  %949 = vadd.xlane.f32.xlu1 %v948_v12  ;;  %v1246_v33 = vpop.xlane.xlu1 %1245 }
 0x400   :  { %5065 = vpow2.f32 %v1269_v50  ;;  %v1267_v42 = vmul.f32 1.442695, %v1259_v41  ;;  %v1262_v45 = vsub.f32 %v6117_v29, %v1246_v33  ;;  %v945_v10 = vsel %vm896_vm1, %v6157_v25, 0.0 }
 0x401   :  { %v6162_v61 = vpop.eup %5053  ;;  %946 = vadd.xlane.f32.xlu0 %v945_v10  ;;  %v1243_v43 = vpop.xlane.xlu0 %1242 }
 0x402   :  { %5067 = vpow2.f32 %v1267_v42  ;;  %v1273_v30 = vmul.f32 1.442695, %v1262_v45  ;;  %v1261_v52 = vsub.f32 %v6121_v15, %v1243_v43  ;;  %v954_v21 = vsel %vm896_vm1, %v6162_v61, 0.0 }
 0x403   :  { %v6167_v17 = vpop.eup %5055  ;;  %955 = vadd.xlane.f32.xlu1 %v954_v21  ;;  %v1252_v54 = vpop.xlane.xlu1 %1251 }
 0x404   :  { %5069 = vpow2.f32 %v1273_v30  ;;  %v1271_v29 = vmul.f32 1.442695, %v1261_v52  ;;  %v1264_v18 = vsub.f32 %v6125_v31, %v1252_v54  ;;  %v951_v38 = vsel %vm896_vm1, %v6167_v17, 0.0  ;;  %v774_v54 = vld [vmem:[%s7848_s25 + $0xf8] sm:$0xff] }
 0x405   :  { %v6172_v5 = vpop.eup %5057  ;;  %952 = vadd.xlane.f32.xlu0 %v951_v38  ;;  %v1249_v36 = vpop.xlane.xlu0 %1248  ;;  %4812 = vmatprep.subr.mxu0 %v774_v54  ;;  %v771_v38 = vld [vmem:[%s7848_s25 + $0xe0] sm:$0xff] }
 0x406   :  { %5071 = vpow2.f32 %v1271_v29  ;;  %v1277_v15 = vmul.f32 1.442695, %v1264_v18  ;;  %v1263_v34 = vsub.f32 %v6129_v37, %v1249_v36  ;;  %v960_v32 = vsel %vm896_vm1, %v6172_v5, 0.0  ;;  %4813 = vmatpush3.msra.mxu0 %v774_v54  ;;  %v773_v29 = vld [vmem:[%s7848_s25 + $0xf0] sm:$0xff]  ;;  %v772_v18 = vld [vmem:[%s7848_s25 + $0xe8] sm:$0xff]  ;;  %v770_v36 = vld [vmem:[%s7848_s25 + $0xd8] sm:$0xff] }
 0x407   :  { %v6177_v22 = vpop.eup %5059  ;;  %961 = vadd.xlane.f32.xlu1 %v960_v32  ;;  %v1258_v3 = vpop.xlane.xlu1 %1257  ;;  %4814 = vmatprep.subr.mxu0 %v773_v29 }
 0x408   :  { %5073 = vpow2.f32 %v1277_v15  ;;  %v1275_v31 = vmul.f32 1.442695, %v1263_v34  ;;  %v1266_v24 = vsub.f32 %v6133_v2, %v1258_v3  ;;  %v957_v19 = vsel %vm896_vm1, %v6177_v22, 0.0  ;;  %4815 = vmatpush3.msra.mxu0 %v773_v29  ;;  %v769_v15 = vld [vmem:[%s7848_s25 + $0xd0] sm:$0xff] }
 0x409   :  { %v6182_v62 = vpop.eup %5061  ;;  %958 = vadd.xlane.f32.xlu0 %v957_v19  ;;  %v1255_v60 = vpop.xlane.xlu0 %1254  ;;  %4816 = vmatprep.subr.mxu0 %v772_v18 }
 0x40a   :  { %5075 = vpow2.f32 %v1275_v31  ;;  %v1281_v37 = vmul.f32 1.442695, %v1266_v24  ;;  %v1265_v58 = vsub.f32 %v6137_v40, %v1255_v60  ;;  %v966_v44 = vsel %vm896_vm1, %v6182_v62, 0.0  ;;  %4817 = vmatpush3.msra.mxu0 %v772_v18 }
 0x40b   :  { %v6187_v27 = vpop.eup %5063  ;;  %967 = vadd.xlane.f32.xlu1 %v966_v44  ;;  %4818 = vmatprep.subr.mxu0 %v771_v38 }
 0x40c   :  { %5077 = vpow2.f32 %v1281_v37  ;;  %v1279_v63 = vmul.f32 1.442695, %v1265_v58  ;;  %v963_v2 = vsel %vm896_vm1, %v6187_v27, 0.0  ;;  %4819 = vmatpush3.msra.mxu0 %v771_v38 }
 0x40d   :  { %v6191_v39 = vpop.eup %5065  ;;  %964 = vadd.xlane.f32.xlu0 %v963_v2  ;;  %4820 = vmatprep.subr.mxu0 %v770_v36 }
 0x40e   :  { %5079 = vpow2.f32 %v1279_v63  ;;  %v1286_v46 = vsel %vm896_vm1, %v6191_v39, 0.0  ;;  %4821 = vmatpush3.msra.mxu0 %v770_v36  ;;  %v757_v36 = vld [vmem:[%s7848_s25 + $0x70] sm:$0xff] }
 0x40f   :  { %v6195_v35 = vpop.eup %5067  ;;  %1287 = vadd.xlane.f32.xlu1 %v1286_v46  ;;  %4822 = vmatprep.subr.mxu0 %v769_v15 }
 0x410   :  { %v1283_v40 = vsel %vm896_vm1, %v6195_v35, 0.0  ;;  %4823 = vmatpush3.msra.mxu0 %v769_v15 }
 0x411   :  { %v6199_v51 = vpop.eup %5069  ;;  %1284 = vadd.xlane.f32.xlu0 %v1283_v40 }
 0x412   :  { %v1292_v50 = vsel %vm896_vm1, %v6199_v51, 0.0 }
 0x413   :  { %v6203_v41 = vpop.eup %5071  ;;  %1293 = vadd.xlane.f32.xlu1 %v1292_v50 }
 0x414   :  { %v1289_v12 = vsel %vm896_vm1, %v6203_v41, 0.0 }
 0x415   :  { %v6207_v33 = vpop.eup %5073  ;;  %1290 = vadd.xlane.f32.xlu0 %v1289_v12 }
 0x416   :  { %v1298_v42 = vsel %vm896_vm1, %v6207_v33, 0.0 }
 0x417   :  { %v6211_v45 = vpop.eup %5075  ;;  %1299 = vadd.xlane.f32.xlu1 %v1298_v42 }
 0x418   :  { %v1295_v10 = vsel %vm896_vm1, %v6211_v45, 0.0 }
 0x419   :  { %v6215_v43 = vpop.eup %5077  ;;  %1296 = vadd.xlane.f32.xlu0 %v1295_v10 }
 0x41a   :  { %v1304_v30 = vsel %vm896_vm1, %v6215_v43, 0.0 }
 0x41b   :  { %v6219_v52 = vpop.eup %5079  ;;  %1305 = vadd.xlane.f32.xlu1 %v1304_v30 }
 0x41c   :  { %v1301_v21 = vsel %vm896_vm1, %v6219_v52, 0.0 }
 0x41d   :  { %1302 = vadd.xlane.f32.xlu0 %v1301_v21 }
 0x488   :  { %v950_v34 = vpop.xlane.xlu1 %949 }
 0x489   :  { %5081 = vrcp.f32 %v950_v34  ;;  %v755_v34 = vld [vmem:[%s7848_s25 + $0x60] sm:$0xff] }
 0x48a   :  { %v947_v32 = vpop.xlane.xlu0 %946 }
 0x48b   :  { %5083 = vrcp.f32 %v947_v32 }
 0x48c   :  { %v956_v3 = vpop.xlane.xlu1 %955 }
 0x48d   :  { %5085 = vrcp.f32 %v956_v3 }
 0x48e   :  { %v953_v31 = vpop.xlane.xlu0 %952 }
 0x48f   :  { %5087 = vrcp.f32 %v953_v31 }
 0x490   :  { %v962_v24 = vpop.xlane.xlu1 %961 }
 0x491   :  { %5089 = vrcp.f32 %v962_v24  ;;  %v753_v24 = vld [vmem:[%s7848_s25 + $0x50] sm:$0xff] }
 0x492   :  { %v959_v19 = vpop.xlane.xlu0 %958 }
 0x493   :  { %5091 = vrcp.f32 %v959_v19 }
 0x494   :  { %v968_v60 = vpop.xlane.xlu1 %967 }
 0x495   :  { %5093 = vrcp.f32 %v968_v60 }
 0x496   :  { %v965_v37 = vpop.xlane.xlu0 %964  ;;  %v5082_v58 = vpop.eup %5081 }
 0x497   :  { %5095 = vrcp.f32 %v965_v37  ;;  %v978_v46 = vmul.f32 %v5082_v58, %v6152_v9  ;;  %v751_v37 = vld [vmem:[%s7848_s25 + $0x40] sm:$0xff]  ;;  %v748_v58 = vld [vmem:[%s7848_s25 + $0x28] sm:$0xff] }
 0x498   :  { %v5084_v44 = vpop.eup %5083  ;;  %v1288_v63 = vpop.xlane.xlu1 %1287 }
 0x499   :  { %v977_v2 = vmul.f32 %v5084_v44, %v6157_v25  ;;  %5097 = vrcp.f32 %v1288_v63  ;;  %v747_v44 = vld [vmem:[%s7848_s25 + $0x20] sm:$0xff]  ;;  %v746_v63 = vld [vmem:[%s7848_s25 + $0x18] sm:$0xff] }
 0x49a   :  { %v1285_v40 = vpop.xlane.xlu0 %1284  ;;  %v5086_v50 = vpop.eup %5085 }
 0x49b   :  { %5099 = vrcp.f32 %v1285_v40  ;;  %4744 = vmatprep.mubr.msk.f32.mxu1 %vm896_vm1, %v977_v2  ;;  %v980_v9 = vmul.f32 %v5086_v50, %v6162_v61  ;;  %v745_v2 = vld [vmem:[%s7848_s25 + $0x10] sm:$0xff]  ;;  %v744_v40 = vld [vmem:[%s7848_s25 + $0x8] sm:$0xff]  ;;  %v767_v50 = vld [vmem:[%s7848_s25 + $0xc0] sm:$0xff] }
 0x49c   :  { %v5088_v12 = vpop.eup %5087  ;;  %v1294_v42 = vpop.xlane.xlu1 %1293  ;;  %4745 = vmatmul.mubr.msk.f32.vlgmr.msra.gmra.mxu1 %vm896_vm1, %v978_v46  ;;  %v768_v46 = vld [vmem:[%s7848_s25 + $0xc8] sm:$0xff] }
 0x49d   :  { %4785 = vmatpush3.msra.mxu1 %v6052_v56  ;;  %v979_v10 = vmul.f32 %v5088_v12, %v6167_v17  ;;  %5101 = vrcp.f32 %v1294_v42  ;;  %4824 = vmatprep.subr.mxu0 %v768_v46  ;;  %v743_v12 = vld [vmem:[%s7848_s25] sm:$0xff]  ;;  %v766_v42 = vld [vmem:[%s7848_s25 + $0xb8] sm:$0xff] }
 0x49e   :  { %4786 = vmatprep.subr.mxu1 %v6017_v57  ;;  %v1291_v25 = vpop.xlane.xlu0 %1290  ;;  %v5090_v30 = vpop.eup %5089  ;;  %4825 = vmatpush3.msra.mxu0 %v768_v46 }
 0x49f   :  { %4787 = vmatpush3.msra.mxu1 %v6017_v57  ;;  %5103 = vrcp.f32 %v1291_v25  ;;  %4747 = vmatprep.mubr.msk.f32.mxu1 %vm896_vm1, %v979_v10  ;;  %v982_v17 = vmul.f32 %v5090_v30, %v6172_v5  ;;  %v765_v10 = vld [vmem:[%s7848_s25 + $0xb0] sm:$0xff]  ;;  %v764_v25 = vld [vmem:[%s7848_s25 + $0xa8] sm:$0xff]  ;;  %v762_v30 = vld [vmem:[%s7848_s25 + $0x98] sm:$0xff] }
 0x4a0   :  { %v5092_v21 = vpop.eup %5091  ;;  %4788 = vmatprep.subr.mxu1 %v6011_v23  ;;  %v1300_v54 = vpop.xlane.xlu1 %1299  ;;  %4748 = vmatmul.mubr.msk.f32.gmra.mxu1 %vm896_vm1, %v980_v9  ;;  %v763_v9 = vld [vmem:[%s7848_s25 + $0xa0] sm:$0xff] }
 0x4a1   :  { %4789 = vmatpush3.msra.mxu1 %v6011_v23  ;;  %v981_v56 = vmul.f32 %v5092_v21, %v6177_v22  ;;  %5105 = vrcp.f32 %v1300_v54  ;;  %4826 = vmatprep.subr.mxu0 %v767_v50  ;;  %v761_v21 = vld [vmem:[%s7848_s25 + $0x90] sm:$0xff]  ;;  %v760_v54 = vld [vmem:[%s7848_s25 + $0x88] sm:$0xff] }
 0x4a2   :  { %4790 = vmatprep.subr.mxu1 %v6003_v6  ;;  %v1297_v61 = vpop.xlane.xlu0 %1296  ;;  %v5094_v57 = vpop.eup %5093  ;;  %4827 = vmatpush3.msra.mxu0 %v767_v50 }
 0x4a3   :  { %4791 = vmatpush3.msra.mxu1 %v6003_v6  ;;  %5107 = vrcp.f32 %v1297_v61  ;;  %4750 = vmatprep.mubr.msk.f32.mxu1 %vm896_vm1, %v981_v56  ;;  %v984_v22 = vmul.f32 %v5094_v57, %v6182_v62  ;;  %v759_v56 = vld [vmem:[%s7848_s25 + $0x80] sm:$0xff] }
 0x4a4   :  { %v5096_v29 = vpop.eup %5095  ;;  %4792 = vmatprep.subr.mxu1 %v5996_v1  ;;  %v1306_v18 = vpop.xlane.xlu1 %1305  ;;  %4751 = vmatmul.mubr.msk.f32.gmra.mxu1 %vm896_vm1, %v982_v17 }
 0x4a5   :  { %4793 = vmatpush3.msra.mxu1 %v5996_v1  ;;  %v983_v23 = vmul.f32 %v5096_v29, %v6187_v27  ;;  %5109 = vrcp.f32 %v1306_v18  ;;  %v758_v27 = vld [vmem:[%s7848_s25 + $0x78] sm:$0xff]  ;;  %4828 = vmatprep.subr.mxu0 %v766_v42 }
 0x4a6   :  { %4794 = vmatprep.subr.mxu1 %v5988_v20  ;;  %v1303_v5 = vpop.xlane.xlu0 %1302  ;;  %v5098_v6 = vpop.eup %5097  ;;  %4829 = vmatpush3.msra.mxu0 %v766_v42 }
 0x4a7   :  { %4795 = vmatpush3.msra.mxu1 %v5988_v20  ;;  %5111 = vrcp.f32 %v1303_v5  ;;  %4753 = vmatprep.mubr.msk.f32.mxu1 %vm896_vm1, %v983_v23  ;;  %v1316_v62 = vmul.f32 %v5098_v6, %v6191_v39  ;;  %v756_v39 = vld [vmem:[%s7848_s25 + $0x68] sm:$0xff] }
 0x4a8   :  { %v5100_v38 = vpop.eup %5099  ;;  %4796 = vmatprep.subr.mxu1 %v5981_v26  ;;  %4754 = vmatmul.mubr.msk.f32.gmra.mxu1 %vm896_vm1, %v984_v22 }
 0x4a9   :  { %4797 = vmatpush3.msra.mxu1 %v5981_v26  ;;  %v1315_v1 = vmul.f32 %v5100_v38, %v6195_v35  ;;  %4830 = vmatprep.subr.mxu0 %v765_v10 }
 0x4aa   :  { %4798 = vmatprep.subr.mxu1 %v5974_v11  ;;  %v5102_v20 = vpop.eup %5101  ;;  %4831 = vmatpush3.msra.mxu0 %v765_v10 }
 0x4ab   :  { %4799 = vmatpush3.msra.mxu1 %v5974_v11  ;;  %4800 = vmatprep.mubr.msk.f32.mxu1 %vm896_vm1, %v1315_v1  ;;  %v1318_v15 = vmul.f32 %v5102_v20, %v6199_v51  ;;  %v754_v51 = vld [vmem:[%s7848_s25 + $0x58] sm:$0xff] }
 0x4ac   :  { %v5104_v26 = vpop.eup %5103  ;;  %4801 = vmatmul.mubr.msk.f32.vlgmr.msra.gmra.mxu1 %vm896_vm1, %v1316_v62  ;;  %4856 = vmatprep.subr.mxu1 %v758_v27 }
 0x4ad   :  { %v1317_v35 = vmul.f32 %v5104_v26, %v6203_v41  ;;  %4857 = vmatpush3.msra.mxu1 %v758_v27  ;;  %4832 = vmatprep.subr.mxu0 %v764_v25 }
 0x4ae   :  { %4858 = vmatprep.subr.mxu1 %v757_v36  ;;  %v5106_v11 = vpop.eup %5105  ;;  %4833 = vmatpush3.msra.mxu0 %v764_v25 }
 0x4af   :  { %4803 = vmatprep.mubr.msk.f32.mxu1 %vm896_vm1, %v1317_v35  ;;  %4859 = vmatpush3.msra.mxu1 %v757_v36  ;;  %v1320_v3 = vmul.f32 %v5106_v11, %v6207_v33  ;;  %v752_v33 = vld [vmem:[%s7848_s25 + $0x48] sm:$0xff] }
 0x4b0   :  { %v5108_v32 = vpop.eup %5107  ;;  %4804 = vmatmul.mubr.msk.f32.gmra.mxu1 %vm896_vm1, %v1318_v15  ;;  %4860 = vmatprep.subr.mxu1 %v756_v39 }
 0x4b1   :  { %v1319_v41 = vmul.f32 %v5108_v32, %v6211_v45  ;;  %4861 = vmatpush3.msra.mxu1 %v756_v39  ;;  %4834 = vmatprep.subr.mxu0 %v763_v9 }
 0x4b2   :  { %4862 = vmatprep.subr.mxu1 %v755_v34  ;;  %v5110_v31 = vpop.eup %5109  ;;  %4835 = vmatpush3.msra.mxu0 %v763_v9 }
 0x4b3   :  { %4806 = vmatprep.mubr.msk.f32.mxu1 %vm896_vm1, %v1319_v41  ;;  %4863 = vmatpush3.msra.mxu1 %v755_v34  ;;  %v1322_v60 = vmul.f32 %v5110_v31, %v6215_v43  ;;  %v749_v43 = vld [vmem:[%s7848_s25 + $0x30] sm:$0xff] }
 0x4b4   :  { %v5112_v19 = vpop.eup %5111  ;;  %4807 = vmatmul.mubr.msk.f32.gmra.mxu1 %vm896_vm1, %v1320_v3  ;;  %4864 = vmatprep.subr.mxu1 %v754_v51  ;;  %v4458_v3 = vld [vmem:[%s7849_s21] ss:$0 sm:$0xff] }
 0x4b5   :  { %v1321_v45 = vmul.f32 %v5112_v19, %v6219_v52  ;;  %4865 = vmatpush3.msra.mxu1 %v754_v51  ;;  %v750_v52 = vld [vmem:[%s7848_s25 + $0x38] sm:$0xff]  ;;  %4836 = vmatprep.subr.mxu0 %v762_v30 }
 0x4b6   :  { %4866 = vmatprep.subr.mxu1 %v753_v24  ;;  %4837 = vmatpush3.msra.mxu0 %v762_v30 }
 0x4b7   :  { %4809 = vmatprep.mubr.msk.f32.mxu1 %vm896_vm1, %v1321_v45  ;;  %4867 = vmatpush3.msra.mxu1 %v753_v24 }
 0x4b8   :  { %4810 = vmatmul.mubr.msk.f32.gmra.mxu1 %vm896_vm1, %v1322_v60  ;;  %4868 = vmatprep.subr.mxu1 %v752_v33 }
 0x4b9   :  { %4869 = vmatpush3.msra.mxu1 %v752_v33  ;;  %4838 = vmatprep.subr.mxu0 %v761_v21 }
 0x4ba   :  { %4870 = vmatprep.subr.mxu1 %v751_v37  ;;  %4839 = vmatpush3.msra.mxu0 %v761_v21 }
 0x4bb   :  { %4871 = vmatpush3.msra.mxu1 %v751_v37  ;;  %4840 = vmatprep.subr.mxu0 %v760_v54 }
 0x4bc   :  { %4872 = vmatprep.subr.mxu1 %v750_v52  ;;  %4841 = vmatpush3.msra.mxu0 %v760_v54 }
 0x4bd   :  { %4873 = vmatpush3.msra.mxu1 %v750_v52  ;;  %4842 = vmatprep.subr.mxu0 %v759_v56 }
 0x4be   :  { %4874 = vmatprep.subr.mxu1 %v749_v43  ;;  %4843 = vmatpush3.msra.mxu0 %v759_v56 }
 0x4bf   :  { %4875 = vmatpush3.msra.mxu1 %v749_v43 }
 0x4c0   :  { %4876 = vmatprep.subr.mxu1 %v748_v58 }
 0x4c1   :  { %4877 = vmatpush3.msra.mxu1 %v748_v58 }
 0x4c2   :  { %4878 = vmatprep.subr.mxu1 %v747_v44 }
 0x4c3   :  { %4879 = vmatpush3.msra.mxu1 %v747_v44 }
 0x4c4   :  { %4880 = vmatprep.subr.mxu1 %v746_v63 }
 0x4c5   :  { %4881 = vmatpush3.msra.mxu1 %v746_v63 }
 0x4c6   :  { %4882 = vmatprep.subr.mxu1 %v745_v2 }
 0x4c7   :  { %4883 = vmatpush3.msra.mxu1 %v745_v2 }
 0x4c8   :  { %4884 = vmatprep.subr.mxu1 %v744_v40 }
 0x4c9   :  { %4885 = vmatpush3.msra.mxu1 %v744_v40 }
 0x4ca   :  { %4886 = vmatprep.subr.mxu1 %v743_v12 }
 0x4cb   :  { %4887 = vmatpush3.msra.mxu1 %v743_v12 }
 0x55c   :  { %v4746_v61 = vpop.f32.mrf.mxu1 }
 0x55e   :  { %v1075_v17 = vpop.f32.mrf.mxu1 }
 0x55f   :  { %4888 = vmatprep.mubr.f32.mxu1 %v1075_v17 }
 0x560   :  { %v4749_v57 = vpop.f32.mrf.mxu1  ;;  %4889 = vmatmul.mubr.f32.vlgmr.msra.gmra.mxu1 %v4746_v61 }
 0x562   :  { %v1085_v29 = vpop.f32.mrf.mxu1 }
 0x563   :  { %4891 = vmatprep.mubr.f32.mxu1 %v1085_v29 }
 0x564   :  { %v4752_v18 = vpop.f32.mrf.mxu1  ;;  %4892 = vmatmul.mubr.f32.gmra.mxu1 %v4749_v57 }
 0x566   :  { %v1095_v23 = vpop.f32.mrf.mxu1 }
 0x567   :  { %4894 = vmatprep.mubr.f32.mxu1 %v1095_v23 }
 0x568   :  { %v4755_v5 = vpop.f32.mrf.mxu1  ;;  %4895 = vmatmul.mubr.f32.gmra.mxu1 %v4752_v18 }
 0x56a   :  { %v1105_v22 = vpop.f32.mrf.mxu1 }
 0x56b   :  { %4897 = vmatprep.mubr.f32.mxu1 %v1105_v22 }
 0x56c   :  { %v4802_v6 = vpop.f32.mrf.mxu1  ;;  %4898 = vmatmul.mubr.f32.gmra.mxu1 %v4755_v5 }
 0x56e   :  { %v1413_v38 = vpop.f32.mrf.mxu1 }
 0x56f   :  { %4844 = vmatprep.mubr.f32.mxu0 %v1413_v38 }
 0x570   :  { %v4805_v1 = vpop.f32.mrf.mxu1  ;;  %4845 = vmatmul.mubr.f32.vlgmr.msra.gmra.mxu0 %v4802_v6 }
 0x572   :  { %v1423_v27 = vpop.f32.mrf.mxu1 }
 0x573   :  { %4847 = vmatprep.mubr.f32.mxu0 %v1423_v27 }
 0x574   :  { %v4808_v62 = vpop.f32.mrf.mxu1  ;;  %4848 = vmatmul.mubr.f32.gmra.mxu0 %v4805_v1 }
 0x576   :  { %v1433_v20 = vpop.f32.mrf.mxu1 }
 0x577   :  { %4850 = vmatprep.mubr.f32.mxu0 %v1433_v20 }
 0x578   :  { %v4811_v36 = vpop.f32.mrf.mxu1  ;;  %4851 = vmatmul.mubr.f32.gmra.mxu0 %v4808_v62 }
 0x57a   :  { %v1443_v26 = vpop.f32.mrf.mxu1 }
 0x57b   :  { %4853 = vmatprep.mubr.f32.mxu0 %v1443_v26 }
 0x57c   :  { %4854 = vmatmul.mubr.f32.gmra.mxu0 %v4811_v36 }
 0x620   :  { %v4890_v35 = vpop.f32.mrf.mxu1 }
 0x622   :  { %v1623_v39 = vpop.f32.mrf.mxu1 }
 0x624   :  { %v4893_v15 = vpop.f32.mrf.mxu1 }
 0x626   :  { %v1633_v11 = vpop.f32.mrf.mxu1 }
 0x628   :  { %v4896_v41 = vpop.f32.mrf.mxu1 }
 0x62a   :  { %v1643_v37 = vpop.f32.mrf.mxu1 }
 0x62c   :  { %v4899_v12 = vpop.f32.mrf.mxu1 }
 0x62e   :  { %v1653_v56 = vpop.f32.mrf.mxu1 }
 0x630   :  { %v4846_v34 = vpop.f32.mrf.mxu0 }
 0x631   :  { %v1629_v32 = vadd.f32 %v4890_v35, %v4846_v34 }
 0x632   :  { %v1518_v51 = vpop.f32.mrf.mxu0 }
 0x633   :  { %v1663_v31 = vadd.f32 %v1629_v32, %v5791_v28  ;;  %v1624_v24 = vadd.f32 %v1623_v39, %v1518_v51 }
 0x634   :  { %v4849_v19 = vpop.f32.mrf.mxu0 }
 0x635   :  { %v1662_v45 = vadd.f32 %v1624_v24, %v5779_v47  ;;  %v1639_v33 = vadd.f32 %v4893_v15, %v4849_v19  ;;  %v1678_v60 = vadd.f32 %v4458_v3, %v1663_v31 }
 0x636   :  { %v1528_v52 = vpop.f32.mrf.mxu0 }
 0x637   :  { %v1665_v43 = vadd.f32 %v1639_v33, %v5813_v0  ;;  %v1634_v58 = vadd.f32 %v1633_v11, %v1528_v52  ;;  %v1688_v44 = vsel %vm180_vm0, %v1678_v60, 0.0  ;;  %v1677_v63 = vadd.f32 %v4458_v3, %v1662_v45 }
 0x638   :  { %v4852_v2 = vpop.f32.mrf.mxu0  ;;  %1689 = vadd.xlane.f32.xlu1 %v1688_v44 }
 0x639   :  { %v1664_v46 = vadd.f32 %v1634_v58, %v5802_v59  ;;  %v1649_v40 = vadd.f32 %v4896_v41, %v4852_v2  ;;  %v1685_v28 = vsel %vm180_vm0, %v1677_v63, 0.0  ;;  %v1680_v50 = vadd.f32 %v4458_v3, %v1665_v43 }
 0x63a   :  { %v1538_v47 = vpop.f32.mrf.mxu0  ;;  %1686 = vadd.xlane.f32.xlu0 %v1685_v28 }
 0x63b   :  { %v1667_v42 = vadd.f32 %v1649_v40, %v5835_v7  ;;  %v1644_v10 = vadd.f32 %v1643_v37, %v1538_v47  ;;  %v1694_v0 = vsel %vm180_vm0, %v1680_v50, 0.0  ;;  %v1679_v25 = vadd.f32 %v4458_v3, %v1664_v46 }
 0x63c   :  { %1695 = vadd.xlane.f32.xlu1 %v1694_v0  ;;  %v4855_v9 = vpop.f32.mrf.mxu0 }
 0x63d   :  { %v1666_v30 = vadd.f32 %v1644_v10, %v5824_v4  ;;  %v1659_v21 = vadd.f32 %v4899_v12, %v4855_v9  ;;  %v1691_v59 = vsel %vm180_vm0, %v1679_v25, 0.0  ;;  %v1682_v54 = vadd.f32 %v4458_v3, %v1667_v42  ;;  %v1821_v9 = vld [vmem:[#allocation4 + $0x10] sm:$0xff] }
 0x63e   :  { %1692 = vadd.xlane.f32.xlu0 %v1691_v59  ;;  %v1548_v61 = vpop.f32.mrf.mxu0 }
 0x63f   :  { %v1669_v17 = vadd.f32 %v1659_v21, %v5856_v49  ;;  %v1654_v57 = vadd.f32 %v1653_v56, %v1548_v61  ;;  %v1700_v7 = vsel %vm180_vm0, %v1682_v54, 0.0  ;;  %v1681_v29 = vadd.f32 %v4458_v3, %v1666_v30  ;;  %v1820_v30 = vld [vmem:[#allocation4 + $0x8] sm:$0xff]  ;;  %v1819_v21 = vld [vmem:[#allocation4] sm:$0xff] }
 0x640   :  { %1701 = vadd.xlane.f32.xlu1 %v1700_v7 }
 0x641   :  { %v1668_v18 = vadd.f32 %v1654_v57, %v5846_v48  ;;  %v1697_v23 = vsel %vm180_vm0, %v1681_v29, 0.0  ;;  %v1684_v5 = vadd.f32 %v4458_v3, %v1669_v17 }
 0x642   :  { %1698 = vadd.xlane.f32.xlu0 %v1697_v23 }
 0x643   :  { %v1706_v4 = vsel %vm180_vm0, %v1684_v5, 0.0  ;;  %v1683_v22 = vadd.f32 %v4458_v3, %v1668_v18 }
 0x644   :  { %1707 = vadd.xlane.f32.xlu1 %v1706_v4 }
 0x645   :  { %v1703_v6 = vsel %vm180_vm0, %v1683_v22, 0.0 }
 0x646   :  { %1704 = vadd.xlane.f32.xlu0 %v1703_v6 }
 0x6c1   :  { %v1690_v38 = vpop.xlane.xlu1 %1689 }
 0x6c2   :  { %v1710_v49 = vmul.f32 0.03125, %v1690_v38 }
 0x6c3   :  { %v1687_v1 = vpop.xlane.xlu0 %1686 }
 0x6c4   :  { %v6385_v27 = vsub.f32 %v1678_v60, %v1710_v49  ;;  %v1709_v62 = vmul.f32 0.03125, %v1687_v1 }
 0x6c5   :  { %v1696_v20 = vpop.xlane.xlu1 %1695 }
 0x6c6   :  { %v6387_v36 = vsub.f32 %v1677_v63, %v1709_v62  ;;  %v1712_v48 = vmul.f32 0.03125, %v1696_v20  ;;  %v1726_v26 = vmul.f32 %v6385_v27, %v6385_v27 }
 0x6c7   :  { %v1693_v35 = vpop.xlane.xlu0 %1692 }
 0x6c8   :  { %v6391_v39 = vsub.f32 %v1680_v50, %v1712_v48  ;;  %v1711_v15 = vmul.f32 0.03125, %v1693_v35  ;;  %v1736_v11 = vsel %vm180_vm0, %v1726_v26, 0.0  ;;  %v1725_v34 = vmul.f32 %v6387_v36, %v6387_v36 }
 0x6c9   :  { %v1702_v32 = vpop.xlane.xlu1 %1701  ;;  %1737 = vadd.xlane.f32.xlu1 %v1736_v11 }
 0x6ca   :  { %v6396_v41 = vsub.f32 %v1679_v25, %v1711_v15  ;;  %v1714_v51 = vmul.f32 0.03125, %v1702_v32  ;;  %v1733_v3 = vsel %vm180_vm0, %v1725_v34, 0.0  ;;  %v1728_v31 = vmul.f32 %v6391_v39, %v6391_v39  ;;  %v1822_v25 = vld [vmem:[#allocation4 + $0x18] sm:$0xff]  ;;  %v4459_v32 = vld [vmem:[%s7850_s1] ss:$0 sm:$0xff] }
 0x6cb   :  { %v1699_v24 = vpop.xlane.xlu0 %1698  ;;  %1734 = vadd.xlane.f32.xlu0 %v1733_v3  ;;  %4900 = vmatprep.subr.mxu0 %v1822_v25 }
 0x6cc   :  { %v6401_v19 = vsub.f32 %v1682_v54, %v1714_v51  ;;  %v1713_v45 = vmul.f32 0.03125, %v1699_v24  ;;  %v1742_v33 = vsel %vm180_vm0, %v1728_v31, 0.0  ;;  %v1727_v60 = vmul.f32 %v6396_v41, %v6396_v41  ;;  %4901 = vmatpush3.msra.mxu0 %v1822_v25 }
 0x6cd   :  { %1743 = vadd.xlane.f32.xlu1 %v1742_v33  ;;  %v1708_v37 = vpop.xlane.xlu1 %1707  ;;  %4902 = vmatprep.subr.mxu0 %v1821_v9 }
 0x6ce   :  { %v6406_v52 = vsub.f32 %v1681_v29, %v1713_v45  ;;  %v1716_v43 = vmul.f32 0.03125, %v1708_v37  ;;  %v1739_v58 = vsel %vm180_vm0, %v1727_v60, 0.0  ;;  %v1730_v44 = vmul.f32 %v6401_v19, %v6401_v19  ;;  %4903 = vmatpush3.msra.mxu0 %v1821_v9  ;;  %v4460_v60 = vld [vmem:[%s7707_s9] ss:$0 sm:$0xff] }
 0x6cf   :  { %1740 = vadd.xlane.f32.xlu0 %v1739_v58  ;;  %v1705_v63 = vpop.xlane.xlu0 %1704  ;;  %4904 = vmatprep.subr.mxu0 %v1820_v30 }
 0x6d0   :  { %v6411_v2 = vsub.f32 %v1684_v5, %v1716_v43  ;;  %v1715_v46 = vmul.f32 0.03125, %v1705_v63  ;;  %v1748_v40 = vsel %vm180_vm0, %v1730_v44, 0.0  ;;  %v1729_v28 = vmul.f32 %v6406_v52, %v6406_v52  ;;  %4905 = vmatpush3.msra.mxu0 %v1820_v30 }
 0x6d1   :  { %1749 = vadd.xlane.f32.xlu1 %v1748_v40  ;;  %4906 = vmatprep.subr.mxu0 %v1819_v21 }
 0x6d2   :  { %v6416_v50 = vsub.f32 %v1683_v22, %v1715_v46  ;;  %v1745_v12 = vsel %vm180_vm0, %v1729_v28, 0.0  ;;  %v1732_v47 = vmul.f32 %v6411_v2, %v6411_v2  ;;  %4907 = vmatpush3.msra.mxu0 %v1819_v21 }
 0x6d3   :  { %1746 = vadd.xlane.f32.xlu0 %v1745_v12 }
 0x6d4   :  { %v1754_v42 = vsel %vm180_vm0, %v1732_v47, 0.0  ;;  %v1731_v10 = vmul.f32 %v6416_v50, %v6416_v50 }
 0x6d5   :  { %1755 = vadd.xlane.f32.xlu1 %v1754_v42 }
 0x6d6   :  { %v1751_v0 = vsel %vm180_vm0, %v1731_v10, 0.0 }
 0x6d7   :  { %1752 = vadd.xlane.f32.xlu0 %v1751_v0 }
 0x752   :  { %v1738_v59 = vpop.xlane.xlu1 %1737 }
 0x753   :  { %v1758_v54 = vmul.f32 0.03125, %v1738_v59 }
 0x754   :  { %v1735_v56 = vpop.xlane.xlu0 %1734 }
 0x755   :  { %v1766_v61 = vadd.f32 1e-12, %v1758_v54  ;;  %v1757_v17 = vmul.f32 0.03125, %v1735_v56  ;;  %v2037_v54 = vld [vmem:[#allocation6 + $0x30] sm:$0xff]  ;;  %v2036_v56 = vld [vmem:[#allocation6 + $0x28] sm:$0xff] }
 0x756   :  { %v1744_v57 = vpop.xlane.xlu1 %1743 }
 0x757   :  { %5113 = vrsqrt.f32 %v1766_v61  ;;  %v1765_v7 = vadd.f32 1e-12, %v1757_v17  ;;  %v1760_v29 = vmul.f32 0.03125, %v1744_v57  ;;  %v2035_v61 = vld [vmem:[#allocation6 + $0x20] sm:$0xff]  ;;  %v2034_v17 = vld [vmem:[#allocation6 + $0x18] sm:$0xff]  ;;  %v2033_v57 = vld [vmem:[#allocation6 + $0x10] sm:$0xff] }
 0x758   :  { %v1741_v18 = vpop.xlane.xlu0 %1740 }
 0x759   :  { %5115 = vrsqrt.f32 %v1765_v7  ;;  %v1768_v23 = vadd.f32 1e-12, %v1760_v29  ;;  %v1759_v5 = vmul.f32 0.03125, %v1741_v18  ;;  %v2032_v7 = vld [vmem:[#allocation6 + $0x8] sm:$0xff]  ;;  %v2031_v29 = vld [vmem:[#allocation6] sm:$0xff] }
 0x75a   :  { %v1750_v4 = vpop.xlane.xlu1 %1749  ;;  %v4461_v18 = vld [vmem:[%s7709_s11] ss:$0 sm:$0xff] }
 0x75b   :  { %5117 = vrsqrt.f32 %v1768_v23  ;;  %v1767_v22 = vadd.f32 1e-12, %v1759_v5  ;;  %v1762_v6 = vmul.f32 0.03125, %v1750_v4 }
 0x75c   :  { %v1747_v38 = vpop.xlane.xlu0 %1746 }
 0x75d   :  { %5119 = vrsqrt.f32 %v1767_v22  ;;  %v1770_v49 = vadd.f32 1e-12, %v1762_v6  ;;  %v1761_v1 = vmul.f32 0.03125, %v1747_v38 }
 0x75e   :  { %v1756_v62 = vpop.xlane.xlu1 %1755 }
 0x75f   :  { %5121 = vrsqrt.f32 %v1770_v49  ;;  %v1769_v20 = vadd.f32 1e-12, %v1761_v1  ;;  %v1764_v48 = vmul.f32 0.03125, %v1756_v62 }
 0x760   :  { %v1753_v26 = vpop.xlane.xlu0 %1752 }
 0x761   :  { %5123 = vrsqrt.f32 %v1769_v20  ;;  %v1772_v35 = vadd.f32 1e-12, %v1764_v48  ;;  %v1763_v15 = vmul.f32 0.03125, %v1753_v26 }
 0x763   :  { %5125 = vrsqrt.f32 %v1772_v35  ;;  %v1771_v11 = vadd.f32 1e-12, %v1763_v15 }
 0x764   :  { %v5114_v34 = vpop.eup %5113 }
 0x765   :  { %v1782_v51 = vmul.f32 %v5114_v34, %v6385_v27  ;;  %5127 = vrsqrt.f32 %v1771_v11 }
 0x766   :  { %v5116_v3 = vpop.eup %5115 }
 0x767   :  { %v1781_v31 = vmul.f32 %v5116_v3, %v6387_v36  ;;  %v1797_v45 = vmul.f32 %v4459_v32, %v1782_v51 }
 0x768   :  { %v5118_v24 = vpop.eup %5117 }
 0x769   :  { %v1796_v33 = vmul.f32 %v4459_v32, %v1781_v31  ;;  %v1784_v37 = vmul.f32 %v5118_v24, %v6391_v39  ;;  %v6437_v27 = vadd.f32 %v4460_v60, %v1797_v45 }
 0x76a   :  { %v5120_v43 = vpop.eup %5119 }
 0x76b   :  { %v6434_v58 = vadd.f32 %v4460_v60, %v1796_v33  ;;  %v1783_v44 = vmul.f32 %v5120_v43, %v6396_v41  ;;  %v1799_v46 = vmul.f32 %v4459_v32, %v1784_v37 }
 0x76c   :  { %v5122_v63 = vpop.eup %5121 }
 0x76d   :  { %4908 = vmatprep.mubr.msk.f32.mxu0 %vm180_vm0, %v6434_v58  ;;  %v1798_v36 = vmul.f32 %v4459_v32, %v1783_v44  ;;  %v1786_v40 = vmul.f32 %v5122_v63, %v6401_v19  ;;  %v6447_v41 = vadd.f32 %v4460_v60, %v1799_v46 }
 0x76e   :  { %v5124_v28 = vpop.eup %5123  ;;  %4909 = vmatmul.mubr.msk.f32.vlgmr.msra.gmra.mxu0 %vm180_vm0, %v6437_v27 }
 0x76f   :  { %v6444_v39 = vadd.f32 %v4460_v60, %v1798_v36  ;;  %v1785_v12 = vmul.f32 %v5124_v28, %v6406_v52  ;;  %v1801_v42 = vmul.f32 %v4459_v32, %v1786_v40 }
 0x770   :  { %v5126_v47 = vpop.eup %5125 }
 0x771   :  { %4911 = vmatprep.mubr.msk.f32.mxu0 %vm180_vm0, %v6444_v39  ;;  %v1800_v10 = vmul.f32 %v4459_v32, %v1785_v12  ;;  %v1788_v0 = vmul.f32 %v5126_v47, %v6411_v2  ;;  %v6457_v30 = vadd.f32 %v4460_v60, %v1801_v42 }
 0x772   :  { %v5128_v25 = vpop.eup %5127  ;;  %4912 = vmatmul.mubr.msk.f32.gmra.mxu0 %vm180_vm0, %v6447_v41 }
 0x773   :  { %v6454_v19 = vadd.f32 %v4460_v60, %v1800_v10  ;;  %v1787_v9 = vmul.f32 %v5128_v25, %v6416_v50  ;;  %v1803_v52 = vmul.f32 %v4459_v32, %v1788_v0  ;;  %v2038_v50 = vld [vmem:[#allocation6 + $0x38] sm:$0xff] }
 0x774   :  { %4920 = vmatprep.subr.mxu1 %v2038_v50 }
 0x775   :  { %4914 = vmatprep.mubr.msk.f32.mxu0 %vm180_vm0, %v6454_v19  ;;  %v1802_v21 = vmul.f32 %v4459_v32, %v1787_v9  ;;  %v6465_v2 = vadd.f32 %v4460_v60, %v1803_v52  ;;  %4921 = vmatpush3.msra.mxu1 %v2038_v50 }
 0x776   :  { %4915 = vmatmul.mubr.msk.f32.gmra.mxu0 %vm180_vm0, %v6457_v30  ;;  %4922 = vmatprep.subr.mxu1 %v2037_v54 }
 0x777   :  { %v6463_v59 = vadd.f32 %v4460_v60, %v1802_v21  ;;  %4923 = vmatpush3.msra.mxu1 %v2037_v54 }
 0x778   :  { %4924 = vmatprep.subr.mxu1 %v2036_v56 }
 0x779   :  { %4917 = vmatprep.mubr.msk.f32.mxu0 %vm180_vm0, %v6463_v59  ;;  %4925 = vmatpush3.msra.mxu1 %v2036_v56 }
 0x77a   :  { %4918 = vmatmul.mubr.msk.f32.gmra.mxu0 %vm180_vm0, %v6465_v2  ;;  %4926 = vmatprep.subr.mxu1 %v2035_v61 }
 0x77b   :  { %2451 = vmatprep.mubr.f32.mxu0 %v7729_v8  ;;  %4927 = vmatpush3.msra.mxu1 %v2035_v61 }
 0x77c   :  { %4928 = vmatprep.subr.mxu1 %v2034_v17 }
 0x77d   :  { %4929 = vmatpush3.msra.mxu1 %v2034_v17 }
 0x77e   :  { %4930 = vmatprep.subr.mxu1 %v2033_v57 }
 0x77f   :  { %4931 = vmatpush3.msra.mxu1 %v2033_v57 }
 0x780   :  { %4932 = vmatprep.subr.mxu1 %v2032_v7 }
 0x781   :  { %4933 = vmatpush3.msra.mxu1 %v2032_v7 }
 0x782   :  { %4934 = vmatprep.subr.mxu1 %v2031_v29 }
 0x783   :  { %4935 = vmatpush3.msra.mxu1 %v2031_v29 }
 0x82e   :  { %v4910_v23 = vpop.f32.mrf.mxu0 }
 0x82f   :  { %v6475_v5 = vadd.f32 %v4910_v23, %v4461_v18 }
 0x830   :  { %v1920_v4 = vpop.f32.mrf.mxu0 }
 0x831   :  { %v1960_v22 = vmul.f32 %v6475_v5, %v6475_v5  ;;  %v6479_v6 = vadd.f32 %v4461_v18, %v1920_v4 }
 0x832   :  { %v4913_v38 = vpop.f32.mrf.mxu0 }
 0x833   :  { %v1968_v49 = vmul.f32 %v1960_v22, %v6475_v5  ;;  %v1959_v1 = vmul.f32 %v6479_v6, %v6479_v6  ;;  %v6484_v62 = vadd.f32 %v4913_v38, %v4461_v18 }
 0x834   :  { %v1930_v20 = vpop.f32.mrf.mxu0 }
 0x835   :  { %v1976_v48 = vmul.f32 0.044715, %v1968_v49  ;;  %v1967_v26 = vmul.f32 %v1959_v1, %v6479_v6  ;;  %v1962_v35 = vmul.f32 %v6484_v62, %v6484_v62  ;;  %v6489_v15 = vadd.f32 %v4461_v18, %v1930_v20 }
 0x836   :  { %v4916_v11 = vpop.f32.mrf.mxu0 }
 0x837   :  { %v1984_v34 = vadd.f32 %v1976_v48, %v6475_v5  ;;  %v1975_v32 = vmul.f32 0.044715, %v1967_v26  ;;  %v1970_v51 = vmul.f32 %v1962_v35, %v6484_v62  ;;  %v1961_v3 = vmul.f32 %v6489_v15, %v6489_v15 }
 0x838   :  { %v6495_v31 = vadd.f32 %v4916_v11, %v4461_v18  ;;  %v1940_v24 = vpop.f32.mrf.mxu0 }
 0x839   :  { %v1992_v45 = vmul.f32 0.7978846, %v1984_v34  ;;  %v1983_v33 = vadd.f32 %v1975_v32, %v6479_v6  ;;  %v1978_v60 = vmul.f32 0.044715, %v1970_v51  ;;  %v1969_v37 = vmul.f32 %v1961_v3, %v6489_v15 }
 0x83a   :  { %v1964_v43 = vmul.f32 %v6495_v31, %v6495_v31  ;;  %v6501_v44 = vadd.f32 %v4461_v18, %v1940_v24  ;;  %v4919_v63 = vpop.f32.mrf.mxu0 }
 0x83b   :  { %5129 = vtanh.f32 %v1992_v45  ;;  %v1991_v46 = vmul.f32 0.7978846, %v1983_v33  ;;  %v1986_v36 = vadd.f32 %v1978_v60, %v6484_v62  ;;  %v1977_v40 = vmul.f32 0.044715, %v1969_v37 }
 0x83c   :  { %v1972_v28 = vmul.f32 %v1964_v43, %v6495_v31  ;;  %v1963_v12 = vmul.f32 %v6501_v44, %v6501_v44  ;;  %v6507_v47 = vadd.f32 %v4919_v63, %v4461_v18  ;;  %v1950_v42 = vpop.f32.mrf.mxu0 }
 0x83d   :  { %5131 = vtanh.f32 %v1991_v46  ;;  %v1994_v10 = vmul.f32 0.7978846, %v1986_v36  ;;  %v1985_v0 = vadd.f32 %v1977_v40, %v6489_v15  ;;  %v1951_v25 = vadd.f32 %v4461_v18, %v1950_v42 }
 0x83e   :  { %v1980_v9 = vmul.f32 0.044715, %v1972_v28  ;;  %v1971_v52 = vmul.f32 %v1963_v12, %v6501_v44  ;;  %v1966_v21 = vmul.f32 %v6507_v47, %v6507_v47 }
 0x83f   :  { %5133 = vtanh.f32 %v1994_v10  ;;  %v1993_v50 = vmul.f32 0.7978846, %v1985_v0  ;;  %v1965_v54 = vmul.f32 %v1951_v25, %v1951_v25 }
 0x840   :  { %v1988_v56 = vadd.f32 %v1980_v9, %v6495_v31  ;;  %v1979_v61 = vmul.f32 0.044715, %v1971_v52  ;;  %v1974_v17 = vmul.f32 %v1966_v21, %v6507_v47 }
 0x841   :  { %5135 = vtanh.f32 %v1993_v50  ;;  %v1973_v57 = vmul.f32 %v1965_v54, %v1951_v25 }
 0x842   :  { %v1996_v7 = vmul.f32 0.7978846, %v1988_v56  ;;  %v1987_v29 = vadd.f32 %v1979_v61, %v6501_v44  ;;  %v1982_v18 = vmul.f32 0.044715, %v1974_v17 }
 0x843   :  { %v1981_v23 = vmul.f32 0.044715, %v1973_v57 }
 0x844   :  { %5137 = vtanh.f32 %v1996_v7  ;;  %v1995_v4 = vmul.f32 0.7978846, %v1987_v29  ;;  %v1990_v22 = vadd.f32 %v1982_v18, %v6507_v47 }
 0x845   :  { %v1989_v38 = vadd.f32 %v1981_v23, %v1951_v25 }
 0x846   :  { %5139 = vtanh.f32 %v1995_v4  ;;  %v1998_v49 = vmul.f32 0.7978846, %v1990_v22 }
 0x847   :  { %v1997_v1 = vmul.f32 0.7978846, %v1989_v38 }
 0x848   :  { %v5130_v20 = vpop.eup %5129  ;;  %5141 = vtanh.f32 %v1998_v49 }
 0x849   :  { %v2008_v48 = vadd.f32 1.0, %v5130_v20  ;;  %5143 = vtanh.f32 %v1997_v1 }
 0x84a   :  { %v5132_v26 = vpop.eup %5131 }
 0x84b   :  { %v2007_v35 = vadd.f32 1.0, %v5132_v26  ;;  %v2016_v34 = vmul.f32 0.5, %v2008_v48 }
 0x84c   :  { %v5134_v11 = vpop.eup %5133 }
 0x84d   :  { %v2015_v32 = vmul.f32 0.5, %v2007_v35  ;;  %v2010_v51 = vadd.f32 1.0, %v5134_v11  ;;  %v2024_v33 = vmul.f32 %v2016_v34, %v6475_v5 }
 0x84e   :  { %v5136_v3 = vpop.eup %5135 }
 0x84f   :  { %v2023_v24 = vmul.f32 %v2015_v32, %v6479_v6  ;;  %v2009_v45 = vadd.f32 1.0, %v5136_v3  ;;  %v2018_v60 = vmul.f32 0.5, %v2010_v51 }
 0x851   :  { %v5138_v37 = vpop.eup %5137  ;;  %4936 = vmatprep.mubr.msk.f32.mxu1 %vm896_vm1, %v2023_v24  ;;  %v2017_v43 = vmul.f32 0.5, %v2009_v45  ;;  %v2026_v40 = vmul.f32 %v2018_v60, %v6484_v62 }
 0x852   :  { %4937 = vmatmul.mubr.msk.f32.vlgmr.msra.gmra.mxu1 %vm896_vm1, %v2024_v33  ;;  %v2012_v63 = vadd.f32 1.0, %v5138_v37 }
 0x853   :  { %v5140_v46 = vpop.eup %5139  ;;  %v2025_v36 = vmul.f32 %v2017_v43, %v6489_v15 }
 0x854   :  { %v2011_v28 = vadd.f32 1.0, %v5140_v46  ;;  %v2020_v6 = vmul.f32 0.5, %v2012_v63 }
 0x855   :  { %v5142_v12 = vpop.eup %5141  ;;  %4939 = vmatprep.mubr.msk.f32.mxu1 %vm896_vm1, %v2025_v36 }
 0x856   :  { %v5144_v42 = vpop.eup %5143  ;;  %4940 = vmatmul.mubr.msk.f32.gmra.mxu1 %vm896_vm1, %v2026_v40  ;;  %v2019_v5 = vmul.f32 0.5, %v2011_v28  ;;  %v2014_v10 = vadd.f32 1.0, %v5142_v12  ;;  %v2028_v52 = vmul.f32 %v2020_v6, %v6495_v31  ;;  %v4478_v31 = vld [vmem:[%s7711_s13] ss:$0 sm:$0xff] }
 0x857   :  { %v2013_v0 = vadd.f32 1.0, %v5144_v42 }
 0x858   :  { %v2027_v9 = vmul.f32 %v2019_v5, %v6501_v44  ;;  %v2022_v50 = vmul.f32 0.5, %v2014_v10 }
 0x859   :  { %v2021_v21 = vmul.f32 0.5, %v2013_v0 }
 0x85a   :  { %4942 = vmatprep.mubr.msk.f32.mxu1 %vm896_vm1, %v2027_v9  ;;  %v2030_v15 = vmul.f32 %v2022_v50, %v6507_v47 }
 0x85b   :  { %4943 = vmatmul.mubr.msk.f32.gmra.mxu1 %vm896_vm1, %v2028_v52  ;;  %v2029_v62 = vmul.f32 %v2021_v21, %v1951_v25 }
 0x85d   :  { %4945 = vmatprep.mubr.msk.f32.mxu1 %vm896_vm1, %v2029_v62 }
 0x85f   :  { %4946 = vmatmul.mubr.msk.f32.gmra.mxu1 %vm896_vm1, %v2030_v15 }
 0x860   :  { %2564 = vmatprep.mubr.f32.mxu1 %v7729_v8 }
 0x912   :  { %v4938_v54 = vpop.f32.mrf.mxu1 }
 0x913   :  { %v2169_v44 = vadd.f32 %v4938_v54, %v6437_v27 }
 0x914   :  { %v2129_v56 = vpop.f32.mrf.mxu1 }
 0x915   :  { %v2168_v61 = vadd.f32 %v2129_v56, %v6434_v58  ;;  %v2184_v17 = vadd.f32 %v4478_v31, %v2169_v44 }
 0x916   :  { %v4941_v25 = vpop.f32.mrf.mxu1 }
 0x917   :  { %v2171_v57 = vadd.f32 %v4941_v25, %v6447_v41  ;;  %v2194_v47 = vsel %vm180_vm0, %v2184_v17, 0.0  ;;  %v2183_v7 = vadd.f32 %v4478_v31, %v2168_v61 }
 0x918   :  { %2195 = vadd.xlane.f32.xlu1 %v2194_v47  ;;  %v2139_v29 = vpop.f32.mrf.mxu1 }
 0x919   :  { %v2170_v18 = vadd.f32 %v2139_v29, %v6444_v39  ;;  %v2191_v23 = vsel %vm180_vm0, %v2183_v7, 0.0  ;;  %v2186_v4 = vadd.f32 %v4478_v31, %v2171_v57 }
 0x91a   :  { %2192 = vadd.xlane.f32.xlu0 %v2191_v23 }
 0x91b   :  { %v4944_v22 = vpop.f32.mrf.mxu1  ;;  %v2200_v27 = vsel %vm180_vm0, %v2186_v4, 0.0  ;;  %v2185_v38 = vadd.f32 %v4478_v31, %v2170_v18 }
 0x91c   :  { %v2173_v58 = vadd.f32 %v4944_v22, %v6457_v30  ;;  %2201 = vadd.xlane.f32.xlu1 %v2200_v27  ;;  %v2338_v27 = vld [vmem:[#allocation7 + $0x68] sm:$0xff] }
 0x91d   :  { %v2149_v49 = vpop.f32.mrf.mxu1  ;;  %v2197_v41 = vsel %vm180_vm0, %v2185_v38, 0.0  ;;  %2411 = vmatprep.subr.mxu0 %v2338_v27  ;;  %v6625_v27 = vld [vmem:[#allocation9 + $0x1c0] sm:$0xff] }
 0x91e   :  { %v2172_v1 = vadd.f32 %v2149_v49, %v6454_v19  ;;  %2198 = vadd.xlane.f32.xlu0 %v2197_v41  ;;  %v2188_v20 = vadd.f32 %v4478_v31, %v2173_v58  ;;  %v2337_v58 = vld [vmem:[#allocation7 + $0x60] sm:$0xff]  ;;  %v2339_v49 = vld [vmem:[#allocation7 + $0x70] sm:$0xff]  ;;  %v2334_v41 = vld [vmem:[#allocation7 + $0x48] sm:$0xff] }
 0x91f   :  { %v4947_v48 = vpop.f32.mrf.mxu1  ;;  %2412 = vmatpush1.msra.mxu0 %v2337_v58 }
 0x920   :  { %v2175_v39 = vadd.f32 %v4947_v48, %v6465_v2  ;;  %v2206_v26 = vsel %vm180_vm0, %v2188_v20, 0.0  ;;  %v2187_v35 = vadd.f32 %v4478_v31, %v2172_v1  ;;  %v2336_v1 = vld [vmem:[#allocation7 + $0x58] sm:$0xff]  ;;  %2413 = vmatprep.subr.mxu0 %v2334_v41  ;;  %v2335_v48 = vld [vmem:[#allocation7 + $0x50] sm:$0xff]  ;;  %v6635_v41 = vld [vmem:[#allocation9 + $0x1a8] sm:$0xff] }
 0x921   :  { %2207 = vadd.xlane.f32.xlu1 %v2206_v26  ;;  %v2159_v11 = vpop.f32.mrf.mxu1  ;;  %v2329_v26 = vld [vmem:[#allocation7 + $0x20] sm:$0xff] }
 0x922   :  { %v2174_v34 = vadd.f32 %v2159_v11, %v6463_v59  ;;  %v2203_v30 = vsel %vm180_vm0, %v2187_v35, 0.0  ;;  %v2190_v32 = vadd.f32 %v4478_v31, %v2175_v39  ;;  %v2330_v39 = vld [vmem:[#allocation7 + $0x28] sm:$0xff]  ;;  %v2332_v11 = vld [vmem:[#allocation7 + $0x38] sm:$0xff] }
 0x923   :  { %2204 = vadd.xlane.f32.xlu0 %v2203_v30  ;;  %v2331_v30 = vld [vmem:[#allocation7 + $0x30] sm:$0xff] }
 0x924   :  { %v2212_v51 = vsel %vm180_vm0, %v2190_v32, 0.0  ;;  %v2189_v3 = vadd.f32 %v4478_v31, %v2174_v34  ;;  %v2325_v34 = vld [vmem:[#allocation7] sm:$0xff] }
 0x925   :  { %2213 = vadd.xlane.f32.xlu1 %v2212_v51  ;;  %v2327_v51 = vld [vmem:[#allocation7 + $0x10] sm:$0xff] }
 0x926   :  { %v2209_v19 = vsel %vm180_vm0, %v2189_v3, 0.0 }
 0x927   :  { %2210 = vadd.xlane.f32.xlu0 %v2209_v19  ;;  %v6594_v19 = vld [vmem:[#allocation9 + $0x1f8] sm:$0xff] }
 0x928   :  { %7852 = vst [vmem:[#allocation22_spill] sm:$0xff] %v6594_v19 }
 0x9a1   :  { %v2196_v24 = vpop.xlane.xlu1 %2195 }
 0x9a2   :  { %v2216_v2 = vmul.f32 0.03125, %v2196_v24 }
 0x9a3   :  { %v2193_v45 = vpop.xlane.xlu0 %2192 }
 0x9a4   :  { %v6552_v33 = vsub.f32 %v2184_v17, %v2216_v2  ;;  %v2215_v60 = vmul.f32 0.03125, %v2193_v45 }
 0x9a5   :  { %v2202_v37 = vpop.xlane.xlu1 %2201 }
 0x9a6   :  { %v6554_v43 = vsub.f32 %v2183_v7, %v2215_v60  ;;  %v2218_v59 = vmul.f32 0.03125, %v2202_v37  ;;  %v2232_v63 = vmul.f32 %v6552_v33, %v6552_v33 }
 0x9a7   :  { %v2199_v46 = vpop.xlane.xlu0 %2198 }
 0x9a8   :  { %v6558_v36 = vsub.f32 %v2186_v4, %v2218_v59  ;;  %v2217_v40 = vmul.f32 0.03125, %v2199_v46  ;;  %v2242_v28 = vsel %vm180_vm0, %v2232_v63, 0.0  ;;  %v2231_v12 = vmul.f32 %v6554_v43, %v6554_v43 }
 0x9a9   :  { %2243 = vadd.xlane.f32.xlu1 %v2242_v28 }
 0x9aa   :  { %v6563_v6 = vsub.f32 %v2185_v38, %v2217_v40  ;;  %v2208_v42 = vpop.xlane.xlu1 %2207  ;;  %v2239_v5 = vsel %vm180_vm0, %v2231_v12, 0.0  ;;  %v2234_v10 = vmul.f32 %v6558_v36, %v6558_v36  ;;  %v2340_v38 = vld [vmem:[#allocation7 + $0x78] sm:$0xff] }
 0x9ab   :  { %v2220_v0 = vmul.f32 0.03125, %v2208_v42  ;;  %2240 = vadd.xlane.f32.xlu0 %v2239_v5  ;;  %2524 = vmatprep.subr.mxu1 %v2340_v38  ;;  %v6627_v38 = vld [vmem:[#allocation9 + $0x1d0] sm:$0xff] }
 0x9ac   :  { %v2205_v9 = vpop.xlane.xlu0 %2204  ;;  %v2248_v52 = vsel %vm180_vm0, %v2234_v10, 0.0  ;;  %v2233_v21 = vmul.f32 %v6563_v6, %v6563_v6  ;;  %2525 = vmatpush1.msra.mxu1 %v2339_v49 }
 0x9ad   :  { %v6571_v50 = vsub.f32 %v2188_v20, %v2220_v0  ;;  %v2219_v62 = vmul.f32 0.03125, %v2205_v9  ;;  %2249 = vadd.xlane.f32.xlu1 %v2248_v52  ;;  %v2333_v20 = vld [vmem:[#allocation7 + $0x40] sm:$0xff]  ;;  %2526 = vmatprep.subr.mxu1 %v2336_v1  ;;  %v6637_v1 = vld [vmem:[#allocation9 + $0x1b8] sm:$0xff] }
 0x9ae   :  { %v2214_v15 = vpop.xlane.xlu1 %2213  ;;  %v2245_v54 = vsel %vm180_vm0, %v2233_v21, 0.0  ;;  %2414 = vmatpush1.msra.mxu0 %v2333_v20  ;;  %2527 = vmatpush1.msra.mxu1 %v2335_v48 }
 0x9af   :  { %v6574_v31 = vsub.f32 %v2187_v35, %v2219_v62  ;;  %v2222_v44 = vmul.f32 0.03125, %v2214_v15  ;;  %2246 = vadd.xlane.f32.xlu0 %v2245_v54  ;;  %v2236_v56 = vmul.f32 %v6571_v50, %v6571_v50  ;;  %v2326_v35 = vld [vmem:[#allocation7 + $0x8] sm:$0xff]  ;;  %2415 = vmatprep.subr.mxu0 %v2330_v39  ;;  %v6602_v15 = vld [vmem:[%s7712_s14] ss:$0 sm:$0xff]  ;;  %v6643_v39 = vld [vmem:[#allocation9 + $0x1b0] sm:$0xff] }
 0x9b0   :  { %v2211_v61 = vpop.xlane.xlu0 %2210  ;;  %2416 = vmatpush1.msra.mxu0 %v2329_v26  ;;  %2528 = vmatprep.subr.mxu1 %v2332_v11  ;;  %v6649_v11 = vld [vmem:[#allocation9 + $0x198] sm:$0xff] }
 0x9b1   :  { %v6578_v17 = vsub.f32 %v2190_v32, %v2222_v44  ;;  %v2221_v25 = vmul.f32 0.03125, %v2211_v61  ;;  %v2254_v57 = vsel %vm180_vm0, %v2236_v56, 0.0  ;;  %v2235_v47 = vmul.f32 %v6574_v31, %v6574_v31  ;;  %v2328_v32 = vld [vmem:[#allocation7 + $0x18] sm:$0xff]  ;;  %2417 = vmatprep.subr.mxu0 %v2326_v35  ;;  %2529 = vmatpush1.msra.mxu1 %v2331_v30  ;;  %v6609_v61 = vld [vmem:[%s7713_s15] ss:$0 sm:$0xff]  ;;  %v6647_v35 = vld [vmem:[#allocation9 + $0x188] sm:$0xff] }
 0x9b2   :  { %2255 = vadd.xlane.f32.xlu1 %v2254_v57  ;;  %2418 = vmatpush1.msra.mxu0 %v2325_v34 }
 0x9b3   :  { %v6583_v7 = vsub.f32 %v2189_v3, %v2221_v25  ;;  %v2251_v29 = vsel %vm180_vm0, %v2235_v47, 0.0  ;;  %v2238_v18 = vmul.f32 %v6578_v17, %v6578_v17  ;;  %2530 = vmatprep.subr.mxu1 %v2328_v32  ;;  %v6592_v3 = vld [vmem:[#allocation9 + $0x1e8] sm:$0xff]  ;;  %v6612_v47 = vld [vmem:[#allocation9 + $0x1e0] sm:$0xff] }
 0x9b4   :  { %2252 = vadd.xlane.f32.xlu0 %v2251_v29  ;;  %7851 = vst [vmem:[#allocation21_spill] sm:$0xff] %v6592_v3  ;;  %2531 = vmatpush1.msra.mxu1 %v2327_v51  ;;  %v6614_v29 = vld [vmem:[#allocation9 + $0x1f0] sm:$0xff]  ;;  %v6656_v32 = vld [vmem:[#allocation9 + $0x180] sm:$0xff] }
 0x9b5   :  { %v2260_v23 = vsel %vm180_vm0, %v2238_v18, 0.0  ;;  %v2237_v4 = vmul.f32 %v6583_v7, %v6583_v7  ;;  %2677 = vmatprep.subr.mxu0 %v6592_v3  ;;  %2748 = vmatprep.subr.mxu1 %v6594_v19  ;;  %v6658_v51 = vld [vmem:[#allocation9 + $0x190] sm:$0xff] }
 0x9b6   :  { %2261 = vadd.xlane.f32.xlu1 %v2260_v23  ;;  %v6616_v23 = vld [vmem:[#allocation9 + $0x1c8] sm:$0xff] }
 0x9b7   :  { %v2257_v22 = vsel %vm180_vm0, %v2237_v4, 0.0 }
 0x9b8   :  { %2258 = vadd.xlane.f32.xlu0 %v2257_v22 }
 0xa32   :  { %v2244_v24 = vpop.xlane.xlu1 %2243 }
 0xa33   :  { %v2264_v2 = vmul.f32 0.03125, %v2244_v24 }
 0xa34   :  { %v2241_v45 = vpop.xlane.xlu0 %2240 }
 0xa35   :  { %v2272_v60 = vadd.f32 1e-12, %v2264_v2  ;;  %v2263_v37 = vmul.f32 0.03125, %v2241_v45  ;;  %v6666_v45 = vld [vmem:[#allocation9 + $0x168] sm:$0xff] }
 0xa36   :  { %v2250_v46 = vpop.xlane.xlu1 %2249 }
 0xa37   :  { %v2271_v59 = vadd.f32 1e-12, %v2263_v37  ;;  %5145 = vrsqrt.f32 %v2272_v60  ;;  %v2266_v12 = vmul.f32 0.03125, %v2250_v46  ;;  %v6668_v60 = vld [vmem:[#allocation9 + $0x178] sm:$0xff]  ;;  %v6678_v46 = vld [vmem:[#allocation9 + $0x148] sm:$0xff] }
 0xa38   :  { %v2247_v63 = vpop.xlane.xlu0 %2246 }
 0xa39   :  { %5147 = vrsqrt.f32 %v2271_v59  ;;  %v2265_v40 = vmul.f32 0.03125, %v2247_v63  ;;  %v2274_v5 = vadd.f32 1e-12, %v2266_v12  ;;  %v6674_v59 = vld [vmem:[#allocation9 + $0x170] sm:$0xff]  ;;  %v6687_v12 = vld [vmem:[#allocation9 + $0x140] sm:$0xff] }
 0xa3b   :  { %v2273_v28 = vadd.f32 1e-12, %v2265_v40  ;;  %v2256_v9 = vpop.xlane.xlu1 %2255  ;;  %v6680_v40 = vld [vmem:[#allocation9 + $0x158] sm:$0xff] }
 0xa3c   :  { %v2268_v54 = vmul.f32 0.03125, %v2256_v9  ;;  %v6699_v9 = vld [vmem:[#allocation9 + $0x138] sm:$0xff] }
 0xa3d   :  { %5149 = vrsqrt.f32 %v2273_v28  ;;  %v2253_v42 = vpop.xlane.xlu0 %2252 }
 0xa3e   :  { %v2267_v10 = vmul.f32 0.03125, %v2253_v42  ;;  %5151 = vrsqrt.f32 %v2274_v5  ;;  %v2276_v18 = vadd.f32 1e-12, %v2268_v54  ;;  %v6689_v42 = vld [vmem:[#allocation9 + $0x150] sm:$0xff]  ;;  %v6711_v54 = vld [vmem:[#allocation9 + $0x118] sm:$0xff] }
 0xa3f   :  { %v2262_v48 = vpop.xlane.xlu1 %2261 }
 0xa40   :  { %v2275_v21 = vadd.f32 1e-12, %v2267_v10  ;;  %v2270_v30 = vmul.f32 0.03125, %v2262_v48 }
 0xa41   :  { %v2259_v57 = vpop.xlane.xlu0 %2258 }
 0xa42   :  { %5153 = vrsqrt.f32 %v2275_v21  ;;  %v2269_v22 = vmul.f32 0.03125, %v2259_v57  ;;  %v2278_v63 = vadd.f32 1e-12, %v2270_v30  ;;  %v6705_v21 = vld [vmem:[#allocation9 + $0x130] sm:$0xff] }
 0xa43   :  { %5155 = vrsqrt.f32 %v2276_v18  ;;  %v6728_v18 = vld [vmem:[#allocation9 + $0xe8] sm:$0xff] }
 0xa44   :  { %v5146_v0 = vpop.eup %5145  ;;  %v2277_v26 = vadd.f32 1e-12, %v2269_v22 }
 0xa45   :  { %v2288_v44 = vmul.f32 %v5146_v0, %v6552_v33  ;;  %v6618_v33 = vld [vmem:[#allocation9 + $0x1d8] sm:$0xff]  ;;  %v6697_v0 = vld [vmem:[#allocation9 + $0x128] sm:$0xff] }
 0xa46   :  { %v5148_v52 = vpop.eup %5147  ;;  %5157 = vrsqrt.f32 %v2277_v26  ;;  %v6749_v26 = vld [vmem:[#allocation9 + $0xc0] sm:$0xff] }
 0xa47   :  { %v2287_v62 = vmul.f32 %v5148_v52, %v6554_v43  ;;  %v2303_v4 = vmul.f32 %v6602_v15, %v2288_v44  ;;  %5159 = vrsqrt.f32 %v2278_v63 }
 0xa49   :  { %v2302_v56 = vmul.f32 %v6602_v15, %v2287_v62  ;;  %v2318_v49 = vadd.f32 %v6609_v61, %v2303_v4  ;;  %v6709_v62 = vld [vmem:[#allocation9 + $0x108] sm:$0xff]  ;;  %v6730_v4 = vld [vmem:[#allocation9 + $0xf8] sm:$0xff] }
 0xa4a   :  { %v5150_v25 = vpop.eup %5149 }
 0xa4b   :  { %v2317_v43 = vadd.f32 %v6609_v61, %v2302_v56  ;;  %v2289_v58 = vmul.f32 %v5150_v25, %v6563_v6  ;;  %v5152_v20 = vpop.eup %5151  ;;  %v6641_v6 = vld [vmem:[#allocation9 + $0x1a0] sm:$0xff]  ;;  %v6720_v25 = vld [vmem:[#allocation9 + $0x110] sm:$0xff] }
 0xa4c   :  { %v2290_v24 = vmul.f32 %v5152_v20, %v6558_v36  ;;  %v6672_v36 = vld [vmem:[#allocation9 + $0x160] sm:$0xff]  ;;  %v6742_v20 = vld [vmem:[#allocation9 + $0xd8] sm:$0xff] }
 0xa4d   :  { %4481 = vmatmul.mubr.msk.f32.vlgmr.msra.gmra.mxu0 %vm180_vm0, %v2317_v43  ;;  %4489 = vmatmul.mubr.msk.f32.vlgmr.msra.gmra.mxu1 %vm180_vm0, %v2317_v43  ;;  %v2304_v34 = vmul.f32 %v6602_v15, %v2289_v58  ;;  %v6718_v56 = vld [vmem:[#allocation9 + $0x100] sm:$0xff]  ;;  %v6736_v58 = vld [vmem:[#allocation9 + $0xf0] sm:$0xff] }
 0xa4e   :  { %2678 = vmatpush1.msra.mxu0 %v6612_v47  ;;  %2749 = vmatpush1.msra.mxu1 %v6614_v29  ;;  %v2305_v28 = vmul.f32 %v6602_v15, %v2290_v24 }
 0xa4f   :  { %2679 = vmatprep.subr.mxu0 %v6616_v23  ;;  %2750 = vmatprep.subr.mxu1 %v6618_v33  ;;  %v2319_v2 = vadd.f32 %v6609_v61, %v2304_v34  ;;  %v5154_v37 = vpop.eup %5153  ;;  %v6751_v34 = vld [vmem:[#allocation9 + $0xd0] sm:$0xff] }
 0xa50   :  { %2457 = vmatprep.mubr.f32.mxu0 %v7729_v8  ;;  %2570 = vmatprep.mubr.f32.mxu1 %v7729_v8  ;;  %v2291_v5 = vmul.f32 %v5154_v37, %v6574_v31  ;;  %v2320_v10 = vadd.f32 %v6609_v61, %v2305_v28  ;;  %v5156_v52 = vpop.eup %5155  ;;  %v6703_v31 = vld [vmem:[#allocation9 + $0x120] sm:$0xff]  ;;  %v6761_v37 = vld [vmem:[#allocation9 + $0xb8] sm:$0xff]  ;;  %v6767_v28 = vld [vmem:[#allocation9 + $0xb0] sm:$0xff] }
 0xa51   :  { %2680 = vmatpush1.msra.mxu0 %v6625_v27  ;;  %2751 = vmatpush1.msra.mxu1 %v6627_v38  ;;  %v2292_v57 = vmul.f32 %v5156_v52, %v6571_v50  ;;  %v6734_v50 = vld [vmem:[#allocation9 + $0xe0] sm:$0xff]  ;;  %7853 = vst [vmem:[#allocation23_spill] sm:$0xff] %v6767_v28 }
 0xa52   :  { %4482 = vmatmul.mubr.msk.f32.gmra.mxu0 %vm180_vm0, %v2318_v49  ;;  %4490 = vmatmul.mubr.msk.f32.gmra.mxu1 %vm180_vm0, %v2318_v49  ;;  %v2306_v44 = vmul.f32 %v6602_v15, %v2291_v5  ;;  %v6740_v49 = vld [vmem:[#allocation9 + $0xc8] sm:$0xff] }
 0xa53   :  { %2681 = vmatprep.subr.mxu0 %v6635_v41  ;;  %2752 = vmatprep.subr.mxu1 %v6637_v1  ;;  %v5158_v22 = vpop.eup %5157  ;;  %v2307_v48 = vmul.f32 %v6602_v15, %v2292_v57  ;;  %v6771_v5 = vld [vmem:[#allocation9 + $0x88] sm:$0xff]  ;;  %v6782_v57 = vld [vmem:[#allocation9 + $0x90] sm:$0xff] }
 0xa54   :  { %2682 = vmatpush1.msra.mxu0 %v6641_v6  ;;  %2753 = vmatpush1.msra.mxu1 %v6643_v39  ;;  %v2321_v43 = vadd.f32 %v6609_v61, %v2306_v44  ;;  %v2293_v30 = vmul.f32 %v5158_v22, %v6583_v7  ;;  %v5160_v63 = vpop.eup %5159  ;;  %v6765_v7 = vld [vmem:[#allocation9 + $0xa0] sm:$0xff]  ;;  %7854 = vst [vmem:[#allocation24_spill] sm:$0xff] %v6771_v5  ;;  %7857 = vst [vmem:[#allocation27_spill] sm:$0xff] %v6782_v57 }
 0xa55   :  { %2683 = vmatprep.subr.mxu0 %v6647_v35  ;;  %2754 = vmatprep.subr.mxu1 %v6649_v11  ;;  %v2322_v24 = vadd.f32 %v6609_v61, %v2307_v48  ;;  %v6780_v44 = vld [vmem:[#allocation9 + $0x80] sm:$0xff]  ;;  %v6790_v48 = vld [vmem:[#allocation9 + $0x68] sm:$0xff] }
 0xa56   :  { %2463 = vmatprep.mubr.f32.mxu0 %v7729_v8  ;;  %2576 = vmatprep.mubr.f32.mxu1 %v7729_v8  ;;  %v2308_v52 = vmul.f32 %v6602_v15, %v2293_v30  ;;  %7856 = vst [vmem:[#allocation26_spill] sm:$0xff] %v6780_v44  ;;  %7858 = vst [vmem:[#allocation28_spill] sm:$0xff] %v6790_v48  ;;  %v6792_v30 = vld [vmem:[#allocation9 + $0x78] sm:$0xff] }
 0xa57   :  { %2684 = vmatpush1.msra.mxu0 %v6656_v32  ;;  %2755 = vmatpush1.msra.mxu1 %v6658_v51  ;;  %7859 = vst [vmem:[#allocation29_spill] sm:$0xff] %v6792_v30 }
 0xa58   :  { %4483 = vmatmul.mubr.msk.f32.gmra.mxu0 %vm180_vm0, %v2319_v2  ;;  %4491 = vmatmul.mubr.msk.f32.gmra.mxu1 %vm180_vm0, %v2319_v2  ;;  %v6759_v2 = vld [vmem:[#allocation9 + $0xa8] sm:$0xff]  ;;  %v2323_v22 = vadd.f32 %v6609_v61, %v2308_v52 }
 0xa59   :  { %2685 = vmatprep.subr.mxu0 %v6666_v45  ;;  %2756 = vmatprep.subr.mxu1 %v6668_v60 }
 0xa5a   :  { %2686 = vmatpush1.msra.mxu0 %v6672_v36  ;;  %2757 = vmatpush1.msra.mxu1 %v6674_v59 }
 0xa5b   :  { %2687 = vmatprep.subr.mxu0 %v6678_v46  ;;  %2758 = vmatprep.subr.mxu1 %v6680_v40 }
 0xa5c   :  { %2469 = vmatprep.mubr.f32.mxu0 %v7729_v8  ;;  %2582 = vmatprep.mubr.f32.mxu1 %v7729_v8 }
 0xa5d   :  { %2688 = vmatpush1.msra.mxu0 %v6687_v12  ;;  %2759 = vmatpush1.msra.mxu1 %v6689_v42 }
 0xa5e   :  { %4484 = vmatmul.mubr.msk.f32.gmra.mxu0 %vm180_vm0, %v2320_v10  ;;  %4492 = vmatmul.mubr.msk.f32.gmra.mxu1 %vm180_vm0, %v2320_v10  ;;  %v6773_v10 = vld [vmem:[#allocation9 + $0x98] sm:$0xff] }
 0xa5f   :  { %2689 = vmatprep.subr.mxu0 %v6697_v0  ;;  %2760 = vmatprep.subr.mxu1 %v6699_v9  ;;  %7855 = vst [vmem:[#allocation25_spill] sm:$0xff] %v6773_v10 }
 0xa60   :  { %2690 = vmatpush1.msra.mxu0 %v6703_v31  ;;  %2761 = vmatpush1.msra.mxu1 %v6705_v21 }
 0xa61   :  { %2691 = vmatprep.subr.mxu0 %v6709_v62  ;;  %2762 = vmatprep.subr.mxu1 %v6711_v54 }
 0xa62   :  { %2475 = vmatprep.mubr.f32.mxu0 %v7729_v8  ;;  %2588 = vmatprep.mubr.f32.mxu1 %v7729_v8 }
 0xa63   :  { %2692 = vmatpush1.msra.mxu0 %v6718_v56  ;;  %2763 = vmatpush1.msra.mxu1 %v6720_v25 }
 0xa64   :  { %4485 = vmatmul.mubr.msk.f32.gmra.mxu0 %vm180_vm0, %v2321_v43  ;;  %4493 = vmatmul.mubr.msk.f32.gmra.mxu1 %vm180_vm0, %v2321_v43  ;;  %v2294_v43 = vmul.f32 %v5160_v63, %v6578_v17  ;;  %v6798_v17 = vld [vmem:[#allocation9 + $0x70] sm:$0xff]  ;;  %v6802_v63 = vld [vmem:[#allocation9 + $0x48] sm:$0xff] }
 0xa65   :  { %2693 = vmatprep.subr.mxu0 %v6728_v18  ;;  %2764 = vmatprep.subr.mxu1 %v6730_v4  ;;  %7861 = vst [vmem:[#allocation31_spill] sm:$0xff] %v6798_v17  ;;  %7862 = vst [vmem:[#allocation32_spill] sm:$0xff] %v6802_v63 }
 0xa66   :  { %2694 = vmatpush1.msra.mxu0 %v6734_v50  ;;  %2765 = vmatpush1.msra.mxu1 %v6736_v58  ;;  %v2309_v52 = vmul.f32 %v6602_v15, %v2294_v43  ;;  %v6822_v43 = vld [vmem:[#allocation9 + $0x28] sm:$0xff] }
 0xa67   :  { %2695 = vmatprep.subr.mxu0 %v6740_v49  ;;  %2766 = vmatprep.subr.mxu1 %v6742_v20  ;;  %7868 = vst [vmem:[#allocation37_spill] sm:$0xff] %v6822_v43 }
 0xa68   :  { %2481 = vmatprep.mubr.f32.mxu0 %v7729_v8  ;;  %2594 = vmatprep.mubr.f32.mxu1 %v7729_v8  ;;  %v6820_v15 = vadd.f32 %v6609_v61, %v2309_v52  ;;  %v6836_v61 = vld [vmem:[#allocation9 + $0x8] sm:$0xff]  ;;  %v6838_v52 = vld [vmem:[#allocation9 + $0x18] sm:$0xff] }
 0xa69   :  { %2696 = vmatpush1.msra.mxu0 %v6749_v26  ;;  %2767 = vmatpush1.msra.mxu1 %v6751_v34  ;;  %7872 = vst [vmem:[#allocation41_spill] sm:$0xff] %v6836_v61  ;;  %7873 = vst [vmem:[#allocation42_spill] sm:$0xff] %v6838_v52 }
 0xa6a   :  { %4486 = vmatmul.mubr.msk.f32.gmra.mxu0 %vm180_vm0, %v2322_v24  ;;  %4494 = vmatmul.mubr.msk.f32.gmra.mxu1 %vm180_vm0, %v2322_v24  ;;  %v6796_v24 = vld [vmem:[#allocation9 + $0x60] sm:$0xff]  ;;  %7867 = vst [vmem:[#allocation36_spill] sm:$0xff] %v6820_v15 }
 0xa6b   :  { %2697 = vmatprep.subr.mxu0 %v6759_v2  ;;  %2768 = vmatprep.subr.mxu1 %v6761_v37  ;;  %7860 = vst [vmem:[#allocation30_spill] sm:$0xff] %v6796_v24 }
 0xa6c   :  { %2698 = vmatpush1.msra.mxu0 %v6765_v7  ;;  %2769 = vmatpush1.msra.mxu1 %v6767_v28 }
 0xa6d   :  { %2699 = vmatprep.subr.mxu0 %v6771_v5  ;;  %2770 = vmatprep.subr.mxu1 %v6773_v10 }
 0xa6e   :  { %2487 = vmatprep.mubr.f32.mxu0 %v7729_v8  ;;  %2600 = vmatprep.mubr.f32.mxu1 %v7729_v8  ;;  %v6811_v8 = vld [vmem:[#allocation9 + $0x40] sm:$0xff] }
 0xa6f   :  { %2700 = vmatpush1.msra.mxu0 %v6780_v44  ;;  %2771 = vmatpush1.msra.mxu1 %v6782_v57  ;;  %7864 = vst [vmem:[#allocation34_spill] sm:$0xff] %v6811_v8 }
 0xa70   :  { %4487 = vmatmul.mubr.msk.f32.gmra.mxu0 %vm180_vm0, %v2323_v22  ;;  %4495 = vmatmul.mubr.msk.f32.gmra.mxu1 %vm180_vm0, %v2323_v22  ;;  %v7866_v22 = vmov 0.0  }
 0xa71   :  { %2701 = vmatprep.subr.mxu0 %v6790_v48  ;;  %2772 = vmatprep.subr.mxu1 %v6792_v30 }
 0xa72   :  { %2702 = vmatpush1.msra.mxu0 %v6796_v24  ;;  %2773 = vmatpush1.msra.mxu1 %v6798_v17 }
 0xa73   :  { %2703 = vmatprep.subr.mxu0 %v6802_v63  ;;  %2774 = vmatprep.subr.mxu1 %v6804_v16 }
 0xa74   :  { %2493 = vmatprep.mubr.f32.mxu0 %v7866_v22  ;;  %2606 = vmatprep.mubr.f32.mxu1 %v7866_v22 }
 0xa75   :  { %2704 = vmatpush1.msra.mxu0 %v6811_v8  ;;  %2775 = vmatpush1.msra.mxu1 %v6813_v55  ;;  %v6842_v8 = vld [vmem:[#allocation9] sm:$0xff]  ;;  %v6846_v55 = vld [vmem:[#allocation9 + $0x10] sm:$0xff] }
 0xa76   :  { %4488 = vmatmul.mubr.msk.f32.gmra.mxu0 %vm180_vm0, %v6820_v15  ;;  %4496 = vmatmul.mubr.msk.f32.gmra.mxu1 %vm180_vm0, %v6820_v15  ;;  %7874 = vst [vmem:[#allocation43_spill] sm:$0xff] %v6842_v8  ;;  %7875 = vst [vmem:[#allocation44_spill] sm:$0xff] %v6846_v55  ;;  %v7876_v15 = vld [vmem:[#allocation34_spill] sm:$0xff] }
 0xa77   :  { %2705 = vmatprep.subr.mxu0 %v6822_v43  ;;  %2776 = vmatprep.subr.mxu1 %v6824_v13 }
 0xa78   :  { %2706 = vmatpush1.msra.mxu0 %v6828_v53  ;;  %2777 = vmatpush1.msra.mxu1 %v6830_v14 }
 0xa79   :  { %2707 = vmatprep.subr.mxu0 %v6836_v61  ;;  %2778 = vmatprep.subr.mxu1 %v6838_v52 }
 0xa7a   :  { %2708 = vmatpush1.msra.mxu0 %v6842_v8  ;;  %2741 = vmatprep.mubr.f32.mxu0 %v7866_v22 }
 0xa7b   :  { %2779 = vmatpush1.msra.mxu1 %v6846_v55  ;;  %2812 = vmatprep.mubr.f32.mxu1 %v7866_v22 }
 0xa7c   :  { %2742 = vmatmul.mubr.f32.vlgmr.msra.gmra.mxu0 %v7866_v22  ;;  %2813 = vmatmul.mubr.f32.vlgmr.msra.gmra.mxu1 %v7866_v22 }
 0xa7d   :  { %2847 = vmatprep.subr.mxu0 %v6592_v3  ;;  %2918 = vmatprep.subr.mxu1 %v6594_v19 }
 0xa7e   :  { %2848 = vmatpush1.msra.mxu0 %v6612_v47  ;;  %2919 = vmatpush1.msra.mxu1 %v6614_v29 }
 0xa7f   :  { %2849 = vmatprep.subr.mxu0 %v6616_v23  ;;  %2920 = vmatprep.subr.mxu1 %v6618_v33 }
 0xa80   :  { %2850 = vmatpush1.msra.mxu0 %v6625_v27  ;;  %2921 = vmatpush1.msra.mxu1 %v6627_v38 }
 0xa81   :  { %2851 = vmatprep.subr.mxu0 %v6635_v41  ;;  %2922 = vmatprep.subr.mxu1 %v6637_v1 }
 0xa82   :  { %2852 = vmatpush1.msra.mxu0 %v6641_v6  ;;  %2923 = vmatpush1.msra.mxu1 %v6643_v39 }
 0xa83   :  { %2853 = vmatprep.subr.mxu0 %v6647_v35  ;;  %2924 = vmatprep.subr.mxu1 %v6649_v11 }
 0xa84   :  { %2854 = vmatpush1.msra.mxu0 %v6656_v32  ;;  %2925 = vmatpush1.msra.mxu1 %v6658_v51 }
 0xa85   :  { %2855 = vmatprep.subr.mxu0 %v6666_v45  ;;  %2926 = vmatprep.subr.mxu1 %v6668_v60 }
 0xa86   :  { %2856 = vmatpush1.msra.mxu0 %v6672_v36  ;;  %2927 = vmatpush1.msra.mxu1 %v6674_v59 }
 0xa87   :  { %2857 = vmatprep.subr.mxu0 %v6678_v46  ;;  %2928 = vmatprep.subr.mxu1 %v6680_v40 }
 0xa88   :  { %2858 = vmatpush1.msra.mxu0 %v6687_v12  ;;  %2929 = vmatpush1.msra.mxu1 %v6689_v42 }
 0xa89   :  { %2859 = vmatprep.subr.mxu0 %v6697_v0  ;;  %2930 = vmatprep.subr.mxu1 %v6699_v9 }
 0xa8a   :  { %2860 = vmatpush1.msra.mxu0 %v6703_v31  ;;  %2931 = vmatpush1.msra.mxu1 %v6705_v21 }
 0xa8b   :  { %2861 = vmatprep.subr.mxu0 %v6709_v62  ;;  %2932 = vmatprep.subr.mxu1 %v6711_v54 }
 0xa8c   :  { %2862 = vmatpush1.msra.mxu0 %v6718_v56  ;;  %2933 = vmatpush1.msra.mxu1 %v6720_v25 }
 0xa8d   :  { %2863 = vmatprep.subr.mxu0 %v6728_v18  ;;  %2934 = vmatprep.subr.mxu1 %v6730_v4 }
 0xa8e   :  { %2864 = vmatpush1.msra.mxu0 %v6734_v50  ;;  %2935 = vmatpush1.msra.mxu1 %v6736_v58 }
 0xa8f   :  { %2865 = vmatprep.subr.mxu0 %v6740_v49  ;;  %2936 = vmatprep.subr.mxu1 %v6742_v20 }
 0xa90   :  { %2866 = vmatpush1.msra.mxu0 %v6749_v26  ;;  %2937 = vmatpush1.msra.mxu1 %v6751_v34 }
 0xa91   :  { %2867 = vmatprep.subr.mxu0 %v6759_v2  ;;  %2938 = vmatprep.subr.mxu1 %v6761_v37 }
 0xa92   :  { %2868 = vmatpush1.msra.mxu0 %v6765_v7  ;;  %2939 = vmatpush1.msra.mxu1 %v6767_v28 }
 0xa93   :  { %2869 = vmatprep.subr.mxu0 %v6771_v5  ;;  %2940 = vmatprep.subr.mxu1 %v6773_v10  ;;  %v7877_v5 = vld [vmem:[#allocation35_spill] sm:$0xff] }
 0xa94   :  { %2870 = vmatpush1.msra.mxu0 %v6780_v44  ;;  %2941 = vmatpush1.msra.mxu1 %v6782_v57 }
 0xa95   :  { %2871 = vmatprep.subr.mxu0 %v6790_v48  ;;  %2942 = vmatprep.subr.mxu1 %v6792_v30 }
 0xa96   :  { %2872 = vmatpush1.msra.mxu0 %v6796_v24  ;;  %2943 = vmatpush1.msra.mxu1 %v6798_v17 }
 0xa97   :  { %2873 = vmatprep.subr.mxu0 %v6802_v63  ;;  %2944 = vmatprep.subr.mxu1 %v6804_v16  ;;  %v7882_v63 = vld [vmem:[#allocation20_spill] sm:$0xff] }
 0xa98   :  { %2874 = vmatpush1.msra.mxu0 %v7876_v15  ;;  %2945 = vmatpush1.msra.mxu1 %v7877_v5 }
 0xa99   :  { %2875 = vmatprep.subr.mxu0 %v6822_v43  ;;  %2946 = vmatprep.subr.mxu1 %v6824_v13  ;;  %v7879_v43 = vld [vmem:[#allocation19_spill] sm:$0xff] }
 0xa9a   :  { %2876 = vmatpush1.msra.mxu0 %v6828_v53  ;;  %2947 = vmatpush1.msra.mxu1 %v6830_v14  ;;  %v7878_v14 = vld [vmem:[#allocation18_spill] sm:$0xff] }
 0xa9b   :  { %2877 = vmatprep.subr.mxu0 %v6836_v61  ;;  %2948 = vmatprep.subr.mxu1 %v6838_v52  ;;  %v2341_v52 = vld [vmem:[%s7716_s18] sm:$0xf] }
 0xa9c   :  { %2878 = vmatpush1.msra.mxu0 %v6842_v8  ;;  %2911 = vmatprep.mubr.f32.mxu0 %v7866_v22  ;;  %v6942_v17 = vrot.slane %v2341_v52, %v7882_v63 }
 0xa9d   :  { %2949 = vmatpush1.msra.mxu1 %v6846_v55  ;;  %2982 = vmatprep.mubr.f32.mxu1 %v7866_v22  ;;  %v2346_v55 = vrot.slane %v2341_v52, %v7878_v14  ;;  %v6937_v22 = vrot.slane %v2341_v52, %v7879_v43 }
 0xa9e   :  { %3017 = vmatprep.subr.mxu0 %v6592_v3  ;;  %3088 = vmatprep.subr.mxu1 %v6594_v19  ;;  %v7880_v19 = vld [vmem:[#allocation17_spill] sm:$0xff] }
 0xa9f   :  { %v7881_v15 = vsub.s32 1, %v7880_v19 }
 0xaa1   :  { %v2350_v16 = vrot.slane %v2341_v52, %v7881_v15 }
 0xb0d   :  { %v6924_v13 = vpop.f32.mrf.mxu0  ;;  %v6926_v53 = vpop.f32.mrf.mxu1 }
 0xb0f   :  { %v6931_v61 = vpop.f32.mrf.mxu0  ;;  %v6933_v8 = vpop.f32.mrf.mxu1 }
 0xb12   :  { %v2459_v3 = vpop.f32.mrf.mxu0  ;;  %v2572_v5 = vpop.f32.mrf.mxu1 }
 0xb13   :  { %v6944_v24 = vadd.f32 %v2459_v3, %v2346_v55  ;;  %v6947_v30 = vadd.f32 %v2572_v5, %v6937_v22 }
 0xb14   :  { %v2461_v48 = vpop.f32.mrf.mxu0  ;;  %v2574_v57 = vpop.f32.mrf.mxu1 }
 0xb15   :  { %7883 = vst [vmem:[#allocation17_spill] sm:$0xff] %v6947_v30  ;;  %v6949_v44 = vadd.f32 %v2461_v48, %v2350_v16  ;;  %v6952_v43 = vadd.f32 %v2574_v57, %v6942_v17 }
 0xb17   :  { %7884 = vst [vmem:[#allocation45_spill] sm:$0xff] %v6949_v44  ;;  %7885 = vst [vmem:[#allocation46_spill] sm:$0xff] %v6952_v43 }
 0xb18   :  { %v2465_v14 = vpop.f32.mrf.mxu0  ;;  %v2578_v10 = vpop.f32.mrf.mxu1 }
 0xb19   :  { %v6954_v28 = vadd.f32 %v2465_v14, %v2346_v55  ;;  %v6957_v19 = vadd.f32 %v2578_v10, %v6937_v22 }
 0xb1a   :  { %v2467_v15 = vpop.f32.mrf.mxu0  ;;  %v2580_v3 = vpop.f32.mrf.mxu1 }
 0xb1b   :  { %7886 = vst [vmem:[#allocation47_spill] sm:$0xff] %v6954_v28  ;;  %7887 = vst [vmem:[#allocation48_spill] sm:$0xff] %v6957_v19  ;;  %v6959_v52 = vadd.f32 %v2467_v15, %v2350_v16  ;;  %v6962_v5 = vadd.f32 %v2580_v3, %v6942_v17 }
 0xb1d   :  { %7888 = vst [vmem:[#allocation49_spill] sm:$0xff] %v6959_v52  ;;  %7889 = vst [vmem:[#allocation50_spill] sm:$0xff] %v6962_v5 }
 0xb1e   :  { %v2471_v63 = vpop.f32.mrf.mxu0  ;;  %v2584_v48 = vpop.f32.mrf.mxu1 }
 0xb1f   :  { %v6964_v30 = vadd.f32 %v2471_v63, %v2346_v55  ;;  %v6967_v57 = vadd.f32 %v2584_v48, %v6937_v22 }
 0xb20   :  { %v2473_v43 = vpop.f32.mrf.mxu0  ;;  %v2586_v14 = vpop.f32.mrf.mxu1 }
 0xb21   :  { %7890 = vst [vmem:[#allocation51_spill] sm:$0xff] %v6964_v30  ;;  %7891 = vst [vmem:[#allocation52_spill] sm:$0xff] %v6967_v57  ;;  %v6969_v28 = vadd.f32 %v2473_v43, %v2350_v16  ;;  %v6972_v10 = vadd.f32 %v2586_v14, %v6942_v17 }
 0xb23   :  { %7892 = vst [vmem:[#allocation53_spill] sm:$0xff] %v6969_v28  ;;  %7893 = vst [vmem:[#allocation54_spill] sm:$0xff] %v6972_v10 }
 0xb24   :  { %v2477_v19 = vpop.f32.mrf.mxu0  ;;  %v2590_v15 = vpop.f32.mrf.mxu1 }
 0xb25   :  { %v6974_v52 = vadd.f32 %v2477_v19, %v2346_v55  ;;  %v6977_v3 = vadd.f32 %v2590_v15, %v6937_v22 }
 0xb26   :  { %v2479_v5 = vpop.f32.mrf.mxu0  ;;  %v2592_v63 = vpop.f32.mrf.mxu1 }
 0xb27   :  { %7894 = vst [vmem:[#allocation55_spill] sm:$0xff] %v6974_v52  ;;  %7895 = vst [vmem:[#allocation56_spill] sm:$0xff] %v6977_v3  ;;  %v6979_v30 = vadd.f32 %v2479_v5, %v2350_v16  ;;  %v6982_v48 = vadd.f32 %v2592_v63, %v6942_v17 }
 0xb29   :  { %7896 = vst [vmem:[#allocation57_spill] sm:$0xff] %v6979_v30  ;;  %7897 = vst [vmem:[#allocation58_spill] sm:$0xff] %v6982_v48 }
 0xb2a   :  { %v2483_v57 = vpop.f32.mrf.mxu0  ;;  %v2596_v43 = vpop.f32.mrf.mxu1 }
 0xb2b   :  { %v6984_v28 = vadd.f32 %v2483_v57, %v2346_v55  ;;  %v6987_v14 = vadd.f32 %v2596_v43, %v6937_v22 }
 0xb2c   :  { %v2485_v10 = vpop.f32.mrf.mxu0  ;;  %v2598_v19 = vpop.f32.mrf.mxu1 }
 0xb2d   :  { %7898 = vst [vmem:[#allocation59_spill] sm:$0xff] %v6984_v28  ;;  %7899 = vst [vmem:[#allocation60_spill] sm:$0xff] %v6987_v14  ;;  %v6989_v52 = vadd.f32 %v2485_v10, %v2350_v16  ;;  %v6992_v15 = vadd.f32 %v2598_v19, %v6942_v17 }
 0xb2f   :  { %7900 = vst [vmem:[#allocation61_spill] sm:$0xff] %v6989_v52  ;;  %7901 = vst [vmem:[#allocation62_spill] sm:$0xff] %v6992_v15 }
 0xb30   :  { %v2489_v3 = vpop.f32.mrf.mxu0  ;;  %v2602_v5 = vpop.f32.mrf.mxu1 }
 0xb31   :  { %v6994_v30 = vadd.f32 %v2489_v3, %v2346_v55  ;;  %v6997_v63 = vadd.f32 %v2602_v5, %v6937_v22 }
 0xb32   :  { %v2491_v48 = vpop.f32.mrf.mxu0  ;;  %v2604_v57 = vpop.f32.mrf.mxu1 }
 0xb33   :  { %7902 = vst [vmem:[#allocation63_spill] sm:$0xff] %v6994_v30  ;;  %7903 = vst [vmem:[#allocation64_spill] sm:$0xff] %v6997_v63  ;;  %v6999_v28 = vadd.f32 %v2491_v48, %v2350_v16  ;;  %v7002_v43 = vadd.f32 %v2604_v57, %v6942_v17  ;;  %v2454_v48 = vadd.f32 %v6924_v13, %v2346_v55 }
 0xb34   :  { %v2456_v57 = vadd.f32 %v6931_v61, %v2350_v16 }
 0xb35   :  { %7904 = vst [vmem:[#allocation65_spill] sm:$0xff] %v6999_v28  ;;  %7905 = vst [vmem:[#allocation66_spill] sm:$0xff] %v7002_v43 }
 0xb36   :  { %v2495_v14 = vpop.f32.mrf.mxu0  ;;  %v2608_v10 = vpop.f32.mrf.mxu1 }
 0xb37   :  { %v7004_v52 = vadd.f32 %v2495_v14, %v2346_v55  ;;  %v7007_v19 = vadd.f32 %v2608_v10, %v6937_v22 }
 0xb38   :  { %v2497_v15 = vpop.f32.mrf.mxu0  ;;  %v2610_v3 = vpop.f32.mrf.mxu1 }
 0xb39   :  { %7906 = vst [vmem:[#allocation67_spill] sm:$0xff] %v7004_v52  ;;  %7907 = vst [vmem:[#allocation68_spill] sm:$0xff] %v7007_v19  ;;  %v7009_v30 = vadd.f32 %v2497_v15, %v2350_v16  ;;  %v7012_v5 = vadd.f32 %v2610_v3, %v6942_v17  ;;  %v2569_v15 = vadd.f32 %v6933_v8, %v6942_v17 }
 0xb3a   :  { %v2567_v3 = vadd.f32 %v6926_v53, %v6937_v22 }
 0xb3b   :  { %7908 = vst [vmem:[#allocation69_spill] sm:$0xff] %v7009_v30  ;;  %7909 = vst [vmem:[#allocation70_spill] sm:$0xff] %v7012_v5 }
 0xb3c   :  { %v2743_v63 = vpop.f32.mrf.mxu0  ;;  %v2814_v52 = vpop.f32.mrf.mxu1 }
 0xb3d   :  { %v2819_v43 = vadd.f32 %v2743_v63, %v2454_v48  ;;  %v2821_v5 = vadd.f32 %v2814_v52, %v2567_v3  ;;  %v7910_v52 = vld [vmem:[#allocation23_spill] sm:$0xff]  ;;  %v7915_v3 = vld [vmem:[#allocation28_spill] sm:$0xff] }
 0xb3e   :  { %v2745_v28 = vpop.f32.mrf.mxu0  ;;  %v2816_v19 = vpop.f32.mrf.mxu1 }
 0xb3f   :  { %v4497_v44 = vmul.f32 -1.442695, %v2819_v43  ;;  %v2820_v14 = vadd.f32 %v2745_v28, %v2456_v57  ;;  %v2822_v30 = vadd.f32 %v2816_v19, %v2569_v15  ;;  %v7914_v15 = vld [vmem:[#allocation27_spill] sm:$0xff] }
 0xb41   :  { %5161 = vpow2.f32 %v4497_v44  ;;  %v4498_v10 = vmul.f32 -1.442695, %v2820_v14  ;;  %v4499_v13 = vmul.f32 -1.442695, %v2822_v30  ;;  %v7912_v14 = vld [vmem:[#allocation25_spill] sm:$0xff] }
 0xb43   :  { %5163 = vpow2.f32 %v4498_v10  ;;  %v7913_v10 = vld [vmem:[#allocation26_spill] sm:$0xff] }
 0xb44   :  { %5165 = vpow2.f32 %v4499_v13  ;;  %v7916_v13 = vld [vmem:[#allocation29_spill] sm:$0xff] }
 0xb4e   :  { %v5162_v55 = vpop.eup %5161 }
 0xb4f   :  { %v2832_v16 = vadd.f32 1.0, %v5162_v55  ;;  %v7917_v55 = vld [vmem:[#allocation30_spill] sm:$0xff] }
 0xb50   :  { %v5164_v61 = vpop.eup %5163 }
 0xb51   :  { %5167 = vrcp.f32 %v2832_v16  ;;  %v2833_v28 = vadd.f32 1.0, %v5164_v61  ;;  %v5166_v44 = vpop.eup %5165  ;;  %v7918_v16 = vld [vmem:[#allocation31_spill] sm:$0xff]  ;;  %v7919_v61 = vld [vmem:[#allocation32_spill] sm:$0xff] }
 0xb52   :  { %5169 = vtanh.f32 %v2821_v5  ;;  %v2834_v57 = vadd.f32 1.0, %v5166_v44  ;;  %v7911_v5 = vld [vmem:[#allocation24_spill] sm:$0xff]  ;;  %v7921_v44 = vld [vmem:[#allocation34_spill] sm:$0xff] }
 0xb53   :  { %5171 = vrcp.f32 %v2833_v28  ;;  %v7920_v28 = vld [vmem:[#allocation33_spill] sm:$0xff] }
 0xb54   :  { %5173 = vrcp.f32 %v2834_v57  ;;  %v7925_v57 = vld [vmem:[#allocation39_spill] sm:$0xff] }
 0xb5e   :  { %v5168_v63 = vpop.eup %5167 }
 0xb5f   :  { %v5170_v43 = vpop.eup %5169 }
 0xb60   :  { %v5172_v48 = vpop.eup %5171  ;;  %v2843_v17 = vmul.f32 %v5170_v43, %v5168_v63  ;;  %v7922_v63 = vld [vmem:[#allocation35_spill] sm:$0xff]  ;;  %v7923_v43 = vld [vmem:[#allocation37_spill] sm:$0xff] }
 0xb61   :  { %v2842_v8 = vmul.f32 0.0, %v5172_v48  ;;  %v5174_v53 = vpop.eup %5173  ;;  %v7924_v48 = vld [vmem:[#allocation38_spill] sm:$0xff] }
 0xb63   :  { %v7020_v19 = vadd.f32 %v2843_v17, %v2842_v8  ;;  %v7926_v8 = vld [vmem:[#allocation40_spill] sm:$0xff]  ;;  %v7927_v17 = vld [vmem:[#allocation41_spill] sm:$0xff] }
 0xb65   :  { %5175 = vtanh.f32 %v7020_v19 }
 0xb72   :  { %v5176_v30 = vpop.eup %5175 }
 0xb73   :  { %v2846_v22 = vmul.f32 %v5176_v30, %v5174_v53  ;;  %v7928_v53 = vld [vmem:[#allocation42_spill] sm:$0xff]  ;;  %v7929_v30 = vld [vmem:[#allocation43_spill] sm:$0xff] }
 0xb75   :  { %2912 = vmatmul.mubr.f32.vlgmr.msra.gmra.mxu0 %v2846_v22  ;;  %2983 = vmatmul.mubr.f32.vlgmr.msra.gmra.mxu1 %v2846_v22  ;;  %v7930_v22 = vmov 0.0  }
 0xb76   :  { %3018 = vmatpush1.msra.mxu0 %v6612_v47  ;;  %3089 = vmatpush1.msra.mxu1 %v6614_v29 }
 0xb77   :  { %3019 = vmatprep.subr.mxu0 %v6616_v23  ;;  %3090 = vmatprep.subr.mxu1 %v6618_v33 }
 0xb78   :  { %3020 = vmatpush1.msra.mxu0 %v6625_v27  ;;  %3091 = vmatpush1.msra.mxu1 %v6627_v38 }
 0xb79   :  { %3021 = vmatprep.subr.mxu0 %v6635_v41  ;;  %3092 = vmatprep.subr.mxu1 %v6637_v1 }
 0xb7a   :  { %3022 = vmatpush1.msra.mxu0 %v6641_v6  ;;  %3093 = vmatpush1.msra.mxu1 %v6643_v39 }
 0xb7b   :  { %3023 = vmatprep.subr.mxu0 %v6647_v35  ;;  %3094 = vmatprep.subr.mxu1 %v6649_v11 }
 0xb7c   :  { %3024 = vmatpush1.msra.mxu0 %v6656_v32  ;;  %3095 = vmatpush1.msra.mxu1 %v6658_v51 }
 0xb7d   :  { %3025 = vmatprep.subr.mxu0 %v6666_v45  ;;  %3096 = vmatprep.subr.mxu1 %v6668_v60 }
 0xb7e   :  { %3026 = vmatpush1.msra.mxu0 %v6672_v36  ;;  %3097 = vmatpush1.msra.mxu1 %v6674_v59 }
 0xb7f   :  { %3027 = vmatprep.subr.mxu0 %v6678_v46  ;;  %3098 = vmatprep.subr.mxu1 %v6680_v40 }
 0xb80   :  { %3028 = vmatpush1.msra.mxu0 %v6687_v12  ;;  %3099 = vmatpush1.msra.mxu1 %v6689_v42 }
 0xb81   :  { %3029 = vmatprep.subr.mxu0 %v6697_v0  ;;  %3100 = vmatprep.subr.mxu1 %v6699_v9 }
 0xb82   :  { %3030 = vmatpush1.msra.mxu0 %v6703_v31  ;;  %3101 = vmatpush1.msra.mxu1 %v6705_v21 }
 0xb83   :  { %3031 = vmatprep.subr.mxu0 %v6709_v62  ;;  %3102 = vmatprep.subr.mxu1 %v6711_v54 }
 0xb84   :  { %3032 = vmatpush1.msra.mxu0 %v6718_v56  ;;  %3103 = vmatpush1.msra.mxu1 %v6720_v25 }
 0xb85   :  { %3033 = vmatprep.subr.mxu0 %v6728_v18  ;;  %3104 = vmatprep.subr.mxu1 %v6730_v4 }
 0xb86   :  { %3034 = vmatpush1.msra.mxu0 %v6734_v50  ;;  %3105 = vmatpush1.msra.mxu1 %v6736_v58 }
 0xb87   :  { %3035 = vmatprep.subr.mxu0 %v6740_v49  ;;  %3106 = vmatprep.subr.mxu1 %v6742_v20 }
 0xb88   :  { %3036 = vmatpush1.msra.mxu0 %v6749_v26  ;;  %3107 = vmatpush1.msra.mxu1 %v6751_v34 }
 0xb89   :  { %3037 = vmatprep.subr.mxu0 %v6759_v2  ;;  %3108 = vmatprep.subr.mxu1 %v6761_v37 }
 0xb8a   :  { %3038 = vmatpush1.msra.mxu0 %v6765_v7  ;;  %3109 = vmatpush1.msra.mxu1 %v7910_v52 }
 0xb8b   :  { %3039 = vmatprep.subr.mxu0 %v7911_v5  ;;  %3110 = vmatprep.subr.mxu1 %v7912_v14 }
 0xb8c   :  { %3040 = vmatpush1.msra.mxu0 %v7913_v10  ;;  %3111 = vmatpush1.msra.mxu1 %v7914_v15 }
 0xb8d   :  { %3041 = vmatprep.subr.mxu0 %v7915_v3  ;;  %3112 = vmatprep.subr.mxu1 %v7916_v13  ;;  %v7936_v13 = vld [vmem:[#allocation17_spill] sm:$0xff] }
 0xb8e   :  { %3042 = vmatpush1.msra.mxu0 %v7917_v55  ;;  %3113 = vmatpush1.msra.mxu1 %v7918_v16  ;;  %v7935_v55 = vld [vmem:[#allocation46_spill] sm:$0xff] }
 0xb8f   :  { %3043 = vmatprep.subr.mxu0 %v7919_v61  ;;  %3114 = vmatprep.subr.mxu1 %v7920_v28  ;;  %v7931_v28 = vld [vmem:[#allocation44_spill] sm:$0xff] }
 0xb90   :  { %3044 = vmatpush1.msra.mxu0 %v7921_v44  ;;  %3115 = vmatpush1.msra.mxu1 %v7922_v63  ;;  %v7932_v63 = vld [vmem:[#allocation21_spill] sm:$0xff] }
 0xb91   :  { %3045 = vmatprep.subr.mxu0 %v7923_v43  ;;  %3116 = vmatprep.subr.mxu1 %v7924_v48  ;;  %v7933_v43 = vld [vmem:[#allocation22_spill] sm:$0xff] }
 0xb92   :  { %3046 = vmatpush1.msra.mxu0 %v7925_v57  ;;  %3117 = vmatpush1.msra.mxu1 %v7926_v8 }
 0xb93   :  { %3047 = vmatprep.subr.mxu0 %v7927_v17  ;;  %3118 = vmatprep.subr.mxu1 %v7928_v53  ;;  %v7934_v17 = vld [vmem:[#allocation45_spill] sm:$0xff] }
 0xb94   :  { %3048 = vmatpush1.msra.mxu0 %v7929_v30  ;;  %3081 = vmatprep.mubr.f32.mxu0 %v7930_v22 }
 0xb95   :  { %3119 = vmatpush1.msra.mxu1 %v7931_v28  ;;  %3152 = vmatprep.mubr.f32.mxu1 %v7930_v22 }
 0xb96   :  { %3187 = vmatprep.subr.mxu0 %v7932_v63  ;;  %3258 = vmatprep.subr.mxu1 %v7933_v43 }
 0xc35   :  { %v2913_v48 = vpop.f32.mrf.mxu0  ;;  %v2984_v53 = vpop.f32.mrf.mxu1 }
 0xc36   :  { %v2989_v57 = vadd.f32 %v2913_v48, %v6944_v24  ;;  %v2991_v22 = vadd.f32 %v2984_v53, %v7936_v13 }
 0xc37   :  { %v2915_v8 = vpop.f32.mrf.mxu0  ;;  %v2986_v16 = vpop.f32.mrf.mxu1 }
 0xc38   :  { %v4500_v44 = vmul.f32 -1.442695, %v2989_v57  ;;  %v2990_v61 = vadd.f32 %v2915_v8, %v7934_v17  ;;  %v2992_v28 = vadd.f32 %v2986_v16, %v7935_v55 }
 0xc3a   :  { %5177 = vpow2.f32 %v4500_v44  ;;  %v4501_v30 = vmul.f32 -1.442695, %v2990_v61  ;;  %v4502_v3 = vmul.f32 -1.442695, %v2992_v28 }
 0xc3c   :  { %5179 = vpow2.f32 %v4501_v30 }
 0xc3d   :  { %5181 = vtanh.f32 %v2991_v22  ;;  %v7960_v22 = vld [vmem:[#allocation48_spill] sm:$0xff] }
 0xc3e   :  { %5183 = vpow2.f32 %v4502_v3  ;;  %v7959_v3 = vld [vmem:[#allocation50_spill] sm:$0xff] }
 0xc47   :  { %v5178_v63 = vpop.eup %5177 }
 0xc48   :  { %v3002_v15 = vadd.f32 1.0, %v5178_v63 }
 0xc49   :  { %v5180_v43 = vpop.eup %5179 }
 0xc4a   :  { %5185 = vrcp.f32 %v3002_v15  ;;  %v3003_v24 = vadd.f32 1.0, %v5180_v43  ;;  %v5182_v48 = vpop.eup %5181 }
 0xc4b   :  { %v5184_v57 = vpop.eup %5183 }
 0xc4c   :  { %5187 = vrcp.f32 %v3003_v24  ;;  %v3004_v17 = vadd.f32 1.0, %v5184_v57 }
 0xc4e   :  { %5189 = vrcp.f32 %v3004_v17 }
 0xc57   :  { %v5186_v44 = vpop.eup %5185 }
 0xc58   :  { %v3013_v8 = vmul.f32 %v5186_v44, %v5182_v48 }
 0xc59   :  { %v5188_v61 = vpop.eup %5187 }
 0xc5a   :  { %v3012_v30 = vmul.f32 %v5188_v61, %v7020_v19 }
 0xc5b   :  { %v5190_v13 = vpop.eup %5189 }
 0xc5c   :  { %v7094_v55 = vadd.f32 %v3013_v8, %v3012_v30 }
 0xc5e   :  { %5191 = vtanh.f32 %v7094_v55 }
 0xc6b   :  { %v5192_v16 = vpop.eup %5191 }
 0xc6c   :  { %v3016_v28 = vmul.f32 %v5192_v16, %v5190_v13 }
 0xc6e   :  { %3082 = vmatmul.mubr.f32.vlgmr.msra.gmra.mxu0 %v3016_v28  ;;  %3153 = vmatmul.mubr.f32.vlgmr.msra.gmra.mxu1 %v3016_v28 }
 0xc6f   :  { %3188 = vmatpush1.msra.mxu0 %v6612_v47  ;;  %3259 = vmatpush1.msra.mxu1 %v6614_v29  ;;  %v7937_v47 = vld [vmem:[#allocation27_spill] sm:$0xff]  ;;  %v7938_v29 = vld [vmem:[#allocation28_spill] sm:$0xff] }
 0xc70   :  { %3189 = vmatprep.subr.mxu0 %v6616_v23  ;;  %3260 = vmatprep.subr.mxu1 %v6618_v33  ;;  %v7939_v23 = vld [vmem:[#allocation29_spill] sm:$0xff]  ;;  %v7940_v33 = vld [vmem:[#allocation30_spill] sm:$0xff] }
 0xc71   :  { %3190 = vmatpush1.msra.mxu0 %v6625_v27  ;;  %3261 = vmatpush1.msra.mxu1 %v6627_v38  ;;  %v7941_v27 = vld [vmem:[#allocation31_spill] sm:$0xff]  ;;  %v7942_v38 = vld [vmem:[#allocation32_spill] sm:$0xff] }
 0xc72   :  { %3191 = vmatprep.subr.mxu0 %v6635_v41  ;;  %3262 = vmatprep.subr.mxu1 %v6637_v1  ;;  %v7943_v41 = vld [vmem:[#allocation33_spill] sm:$0xff]  ;;  %v7944_v1 = vld [vmem:[#allocation34_spill] sm:$0xff] }
 0xc73   :  { %3192 = vmatpush1.msra.mxu0 %v6641_v6  ;;  %3263 = vmatpush1.msra.mxu1 %v6643_v39  ;;  %v7945_v6 = vld [vmem:[#allocation35_spill] sm:$0xff]  ;;  %v7946_v39 = vld [vmem:[#allocation37_spill] sm:$0xff] }
 0xc74   :  { %3193 = vmatprep.subr.mxu0 %v6647_v35  ;;  %3264 = vmatprep.subr.mxu1 %v6649_v11  ;;  %v7947_v35 = vld [vmem:[#allocation38_spill] sm:$0xff]  ;;  %v7948_v11 = vld [vmem:[#allocation39_spill] sm:$0xff] }
 0xc75   :  { %3194 = vmatpush1.msra.mxu0 %v6656_v32  ;;  %3265 = vmatpush1.msra.mxu1 %v6658_v51  ;;  %v7949_v32 = vld [vmem:[#allocation40_spill] sm:$0xff]  ;;  %v7950_v51 = vld [vmem:[#allocation41_spill] sm:$0xff] }
 0xc76   :  { %3195 = vmatprep.subr.mxu0 %v6666_v45  ;;  %3266 = vmatprep.subr.mxu1 %v6668_v60  ;;  %v7951_v45 = vld [vmem:[#allocation42_spill] sm:$0xff]  ;;  %v7952_v60 = vld [vmem:[#allocation43_spill] sm:$0xff] }
 0xc77   :  { %3196 = vmatpush1.msra.mxu0 %v6672_v36  ;;  %3267 = vmatpush1.msra.mxu1 %v6674_v59  ;;  %v7953_v36 = vmov 0.0   ;;  %v7954_v59 = vld [vmem:[#allocation44_spill] sm:$0xff] }
 0xc78   :  { %3197 = vmatprep.subr.mxu0 %v6678_v46  ;;  %3268 = vmatprep.subr.mxu1 %v6680_v40  ;;  %v7161_v46 = vld [vmem:[#allocation9 + $0x1e8] sm:$0xff]  ;;  %v7164_v40 = vld [vmem:[#allocation9 + $0x1f8] sm:$0xff] }
 0xc79   :  { %3198 = vmatpush1.msra.mxu0 %v6687_v12  ;;  %3269 = vmatpush1.msra.mxu1 %v6689_v42  ;;  %7955 = vst [vmem:[#allocation23_spill] sm:$0xff] %v7161_v46  ;;  %7956 = vst [vmem:[#allocation24_spill] sm:$0xff] %v7164_v40  ;;  %v7957_v42 = vld [vmem:[#allocation47_spill] sm:$0xff] }
 0xc7a   :  { %3199 = vmatprep.subr.mxu0 %v6697_v0  ;;  %3270 = vmatprep.subr.mxu1 %v6699_v9 }
 0xc7b   :  { %3200 = vmatpush1.msra.mxu0 %v6703_v31  ;;  %3271 = vmatpush1.msra.mxu1 %v6705_v21  ;;  %v7958_v21 = vld [vmem:[#allocation49_spill] sm:$0xff] }
 0xc7c   :  { %3201 = vmatprep.subr.mxu0 %v6709_v62  ;;  %3272 = vmatprep.subr.mxu1 %v6711_v54 }
 0xc7d   :  { %3202 = vmatpush1.msra.mxu0 %v6718_v56  ;;  %3273 = vmatpush1.msra.mxu1 %v6720_v25 }
 0xc7e   :  { %3203 = vmatprep.subr.mxu0 %v6728_v18  ;;  %3274 = vmatprep.subr.mxu1 %v6730_v4 }
 0xc7f   :  { %3204 = vmatpush1.msra.mxu0 %v6734_v50  ;;  %3275 = vmatpush1.msra.mxu1 %v6736_v58 }
 0xc80   :  { %3205 = vmatprep.subr.mxu0 %v6740_v49  ;;  %3276 = vmatprep.subr.mxu1 %v6742_v20 }
 0xc81   :  { %3206 = vmatpush1.msra.mxu0 %v6749_v26  ;;  %3277 = vmatpush1.msra.mxu1 %v6751_v34 }
 0xc82   :  { %3207 = vmatprep.subr.mxu0 %v6759_v2  ;;  %3278 = vmatprep.subr.mxu1 %v6761_v37 }
 0xc83   :  { %3208 = vmatpush1.msra.mxu0 %v6765_v7  ;;  %3279 = vmatpush1.msra.mxu1 %v7910_v52 }
 0xc84   :  { %3209 = vmatprep.subr.mxu0 %v7911_v5  ;;  %3280 = vmatprep.subr.mxu1 %v7912_v14 }
 0xc85   :  { %3210 = vmatpush1.msra.mxu0 %v7913_v10  ;;  %3281 = vmatpush1.msra.mxu1 %v7937_v47 }
 0xc86   :  { %3211 = vmatprep.subr.mxu0 %v7938_v29  ;;  %3282 = vmatprep.subr.mxu1 %v7939_v23 }
 0xc87   :  { %3212 = vmatpush1.msra.mxu0 %v7940_v33  ;;  %3283 = vmatpush1.msra.mxu1 %v7941_v27 }
 0xc88   :  { %3213 = vmatprep.subr.mxu0 %v7942_v38  ;;  %3284 = vmatprep.subr.mxu1 %v7943_v41 }
 0xc89   :  { %3214 = vmatpush1.msra.mxu0 %v7944_v1  ;;  %3285 = vmatpush1.msra.mxu1 %v7945_v6 }
 0xc8a   :  { %3215 = vmatprep.subr.mxu0 %v7946_v39  ;;  %3286 = vmatprep.subr.mxu1 %v7947_v35 }
 0xc8b   :  { %3216 = vmatpush1.msra.mxu0 %v7948_v11  ;;  %3287 = vmatpush1.msra.mxu1 %v7949_v32 }
 0xc8c   :  { %3217 = vmatprep.subr.mxu0 %v7950_v51  ;;  %3288 = vmatprep.subr.mxu1 %v7951_v45 }
 0xc8d   :  { %3218 = vmatpush1.msra.mxu0 %v7952_v60  ;;  %3251 = vmatprep.mubr.f32.mxu0 %v7953_v36 }
 0xc8e   :  { %3289 = vmatpush1.msra.mxu1 %v7954_v59  ;;  %3322 = vmatprep.mubr.f32.mxu1 %v7953_v36 }
 0xc8f   :  { %3357 = vmatprep.subr.mxu0 %v7161_v46  ;;  %3428 = vmatprep.subr.mxu1 %v7164_v40 }
 0xd2e   :  { %v3083_v12 = vpop.f32.mrf.mxu0  ;;  %v3154_v54 = vpop.f32.mrf.mxu1 }
 0xd2f   :  { %v3159_v0 = vadd.f32 %v3083_v12, %v7957_v42  ;;  %v3161_v63 = vadd.f32 %v3154_v54, %v7960_v22  ;;  %v7187_v54 = vld [vmem:[#allocation9 + $0x1c0] sm:$0xff]  ;;  %v7202_v22 = vld [vmem:[#allocation9 + $0x1b0] sm:$0xff] }
 0xd30   :  { %v3085_v9 = vpop.f32.mrf.mxu0  ;;  %v3156_v15 = vpop.f32.mrf.mxu1 }
 0xd31   :  { %v4503_v31 = vmul.f32 -1.442695, %v3159_v0  ;;  %v3160_v62 = vadd.f32 %v3085_v9, %v7958_v21  ;;  %v3162_v53 = vadd.f32 %v3156_v15, %v7959_v3  ;;  %v7178_v21 = vld [vmem:[#allocation9 + $0x1f0] sm:$0xff]  ;;  %v7193_v15 = vld [vmem:[#allocation9 + $0x1a8] sm:$0xff]  ;;  %v7196_v3 = vld [vmem:[#allocation9 + $0x1b8] sm:$0xff] }
 0xd33   :  { %5193 = vpow2.f32 %v4503_v31  ;;  %v4504_v19 = vmul.f32 -1.442695, %v3160_v62  ;;  %v4505_v43 = vmul.f32 -1.442695, %v3162_v53  ;;  %v7175_v31 = vld [vmem:[#allocation9 + $0x1e0] sm:$0xff]  ;;  %v7181_v62 = vld [vmem:[#allocation9 + $0x1c8] sm:$0xff] }
 0xd34   :  { %v7199_v53 = vld [vmem:[#allocation9 + $0x1a0] sm:$0xff] }
 0xd35   :  { %5195 = vpow2.f32 %v4504_v19  ;;  %v7190_v19 = vld [vmem:[#allocation9 + $0x1d0] sm:$0xff] }
 0xd36   :  { %5197 = vtanh.f32 %v3161_v63  ;;  %v7205_v63 = vld [vmem:[#allocation9 + $0x188] sm:$0xff] }
 0xd37   :  { %5199 = vpow2.f32 %v4505_v43  ;;  %v7208_v43 = vld [vmem:[#allocation9 + $0x198] sm:$0xff] }
 0xd40   :  { %v5194_v24 = vpop.eup %5193 }
 0xd41   :  { %v3172_v48 = vadd.f32 1.0, %v5194_v24  ;;  %v7211_v24 = vld [vmem:[#allocation9 + $0x180] sm:$0xff] }
 0xd42   :  { %v5196_v57 = vpop.eup %5195 }
 0xd43   :  { %5201 = vrcp.f32 %v3172_v48  ;;  %v3173_v44 = vadd.f32 1.0, %v5196_v57  ;;  %v5198_v8 = vpop.eup %5197  ;;  %v7214_v48 = vld [vmem:[#allocation9 + $0x190] sm:$0xff]  ;;  %v7217_v57 = vld [vmem:[#allocation9 + $0x168] sm:$0xff] }
 0xd44   :  { %v5200_v61 = vpop.eup %5199 }
 0xd45   :  { %5203 = vrcp.f32 %v3173_v44  ;;  %v3174_v16 = vadd.f32 1.0, %v5200_v61  ;;  %v7220_v44 = vld [vmem:[#allocation9 + $0x178] sm:$0xff]  ;;  %v7226_v61 = vld [vmem:[#allocation9 + $0x170] sm:$0xff] }
 0xd47   :  { %5205 = vrcp.f32 %v3174_v16  ;;  %v7238_v16 = vld [vmem:[#allocation9 + $0x150] sm:$0xff] }
 0xd48   :  { %7962 = vst [vmem:[#allocation26_spill] sm:$0xff] %v7238_v16 }
 0xd50   :  { %v5202_v17 = vpop.eup %5201 }
 0xd51   :  { %v3183_v30 = vmul.f32 %v5202_v17, %v5198_v8  ;;  %v7223_v8 = vld [vmem:[#allocation9 + $0x160] sm:$0xff]  ;;  %v7229_v17 = vld [vmem:[#allocation9 + $0x148] sm:$0xff] }
 0xd52   :  { %v5204_v13 = vpop.eup %5203 }
 0xd53   :  { %v3182_v28 = vmul.f32 %v5204_v13, %v7094_v55  ;;  %v7184_v55 = vld [vmem:[#allocation9 + $0x1d8] sm:$0xff]  ;;  %v7235_v13 = vld [vmem:[#allocation9 + $0x140] sm:$0xff] }
 0xd54   :  { %v5206_v42 = vpop.eup %5205  ;;  %7961 = vst [vmem:[#allocation25_spill] sm:$0xff] %v7235_v13 }
 0xd55   :  { %v7172_v12 = vadd.f32 %v3183_v30, %v3182_v28  ;;  %v7232_v30 = vld [vmem:[#allocation9 + $0x158] sm:$0xff]  ;;  %v7241_v28 = vld [vmem:[#allocation9 + $0x128] sm:$0xff] }
 0xd57   :  { %5207 = vtanh.f32 %v7172_v12 }
 0xd64   :  { %v5208_v0 = vpop.eup %5207 }
 0xd65   :  { %v3186_v9 = vmul.f32 %v5208_v0, %v5206_v42  ;;  %v7244_v42 = vld [vmem:[#allocation9 + $0x138] sm:$0xff]  ;;  %v7247_v0 = vld [vmem:[#allocation9 + $0x120] sm:$0xff] }
 0xd67   :  { %3252 = vmatmul.mubr.f32.vlgmr.msra.gmra.mxu0 %v3186_v9  ;;  %3323 = vmatmul.mubr.f32.vlgmr.msra.gmra.mxu1 %v3186_v9  ;;  %v7250_v9 = vld [vmem:[#allocation9 + $0x130] sm:$0xff] }
 0xd68   :  { %3358 = vmatpush1.msra.mxu0 %v7175_v31  ;;  %3429 = vmatpush1.msra.mxu1 %v7178_v21 }
 0xd69   :  { %3359 = vmatprep.subr.mxu0 %v7181_v62  ;;  %3430 = vmatprep.subr.mxu1 %v7184_v55 }
 0xd6a   :  { %3360 = vmatpush1.msra.mxu0 %v7187_v54  ;;  %3431 = vmatpush1.msra.mxu1 %v7190_v19 }
 0xd6b   :  { %3361 = vmatprep.subr.mxu0 %v7193_v15  ;;  %3432 = vmatprep.subr.mxu1 %v7196_v3 }
 0xd6c   :  { %3362 = vmatpush1.msra.mxu0 %v7199_v53  ;;  %3433 = vmatpush1.msra.mxu1 %v7202_v22 }
 0xd6d   :  { %3363 = vmatprep.subr.mxu0 %v7205_v63  ;;  %3434 = vmatprep.subr.mxu1 %v7208_v43 }
 0xd6e   :  { %3364 = vmatpush1.msra.mxu0 %v7211_v24  ;;  %3435 = vmatpush1.msra.mxu1 %v7214_v48 }
 0xd6f   :  { %3365 = vmatprep.subr.mxu0 %v7217_v57  ;;  %3436 = vmatprep.subr.mxu1 %v7220_v44 }
 0xd70   :  { %3366 = vmatpush1.msra.mxu0 %v7223_v8  ;;  %3437 = vmatpush1.msra.mxu1 %v7226_v61 }
 0xd71   :  { %3367 = vmatprep.subr.mxu0 %v7229_v17  ;;  %3438 = vmatprep.subr.mxu1 %v7232_v30 }
 0xd72   :  { %3368 = vmatpush1.msra.mxu0 %v7235_v13  ;;  %3439 = vmatpush1.msra.mxu1 %v7238_v16  ;;  %v7253_v13 = vld [vmem:[#allocation9 + $0x108] sm:$0xff]  ;;  %v7256_v16 = vld [vmem:[#allocation9 + $0x118] sm:$0xff] }
 0xd73   :  { %3369 = vmatprep.subr.mxu0 %v7241_v28  ;;  %3440 = vmatprep.subr.mxu1 %v7244_v42 }
 0xd74   :  { %3370 = vmatpush1.msra.mxu0 %v7247_v0  ;;  %3441 = vmatpush1.msra.mxu1 %v7250_v9 }
 0xd75   :  { %3371 = vmatprep.subr.mxu0 %v7253_v13  ;;  %3442 = vmatprep.subr.mxu1 %v7256_v16 }
 0xd76   :  { %3372 = vmatpush1.msra.mxu0 %v6718_v56  ;;  %3443 = vmatpush1.msra.mxu1 %v6720_v25  ;;  %v7963_v25 = vld [vmem:[#allocation51_spill] sm:$0xff] }
 0xd77   :  { %3373 = vmatprep.subr.mxu0 %v6728_v18  ;;  %3444 = vmatprep.subr.mxu1 %v6730_v4 }
 0xd78   :  { %3374 = vmatpush1.msra.mxu0 %v6734_v50  ;;  %3445 = vmatpush1.msra.mxu1 %v6736_v58  ;;  %v7964_v58 = vld [vmem:[#allocation53_spill] sm:$0xff] }
 0xd79   :  { %3375 = vmatprep.subr.mxu0 %v6740_v49  ;;  %3446 = vmatprep.subr.mxu1 %v6742_v20 }
 0xd7a   :  { %3376 = vmatpush1.msra.mxu0 %v6749_v26  ;;  %3447 = vmatpush1.msra.mxu1 %v6751_v34 }
 0xd7b   :  { %3377 = vmatprep.subr.mxu0 %v6759_v2  ;;  %3448 = vmatprep.subr.mxu1 %v6761_v37  ;;  %v7965_v2 = vld [vmem:[#allocation54_spill] sm:$0xff] }
 0xd7c   :  { %3378 = vmatpush1.msra.mxu0 %v6765_v7  ;;  %3449 = vmatpush1.msra.mxu1 %v7910_v52  ;;  %v7966_v7 = vld [vmem:[#allocation52_spill] sm:$0xff] }
 0xd7d   :  { %3379 = vmatprep.subr.mxu0 %v7911_v5  ;;  %3450 = vmatprep.subr.mxu1 %v7912_v14 }
 0xd7e   :  { %3380 = vmatpush1.msra.mxu0 %v7913_v10  ;;  %3451 = vmatpush1.msra.mxu1 %v7937_v47 }
 0xd7f   :  { %3381 = vmatprep.subr.mxu0 %v7938_v29  ;;  %3452 = vmatprep.subr.mxu1 %v7939_v23 }
 0xd80   :  { %3382 = vmatpush1.msra.mxu0 %v7940_v33  ;;  %3453 = vmatpush1.msra.mxu1 %v7941_v27 }
 0xd81   :  { %3383 = vmatprep.subr.mxu0 %v7942_v38  ;;  %3454 = vmatprep.subr.mxu1 %v7943_v41 }
 0xd82   :  { %3384 = vmatpush1.msra.mxu0 %v7944_v1  ;;  %3455 = vmatpush1.msra.mxu1 %v7945_v6 }
 0xd83   :  { %3385 = vmatprep.subr.mxu0 %v7946_v39  ;;  %3456 = vmatprep.subr.mxu1 %v7947_v35 }
 0xd84   :  { %3386 = vmatpush1.msra.mxu0 %v7948_v11  ;;  %3457 = vmatpush1.msra.mxu1 %v7949_v32 }
 0xd85   :  { %3387 = vmatprep.subr.mxu0 %v7950_v51  ;;  %3458 = vmatprep.subr.mxu1 %v7951_v45  ;;  %v7967_v51 = vld [vmem:[#allocation25_spill] sm:$0xff]  ;;  %v7968_v45 = vld [vmem:[#allocation26_spill] sm:$0xff] }
 0xd86   :  { %3388 = vmatpush1.msra.mxu0 %v7952_v60  ;;  %3421 = vmatprep.mubr.f32.mxu0 %v7953_v36  ;;  %v7333_v60 = vld [vmem:[#allocation9 + $0x100] sm:$0xff] }
 0xd87   :  { %3459 = vmatpush1.msra.mxu1 %v7954_v59  ;;  %3492 = vmatprep.mubr.f32.mxu1 %v7953_v36  ;;  %v7336_v59 = vld [vmem:[#allocation9 + $0x110] sm:$0xff] }
 0xd88   :  { %3527 = vmatprep.subr.mxu0 %v7161_v46  ;;  %3598 = vmatprep.subr.mxu1 %v7164_v40 }
 0xe27   :  { %v3253_v56 = vpop.f32.mrf.mxu0  ;;  %v3324_v20 = vpop.f32.mrf.mxu1 }
 0xe28   :  { %v3329_v18 = vadd.f32 %v3253_v56, %v7963_v25  ;;  %v3331_v52 = vadd.f32 %v3324_v20, %v7966_v7  ;;  %v7342_v56 = vld [vmem:[#allocation9 + $0xf8] sm:$0xff]  ;;  %v7345_v25 = vld [vmem:[#allocation9 + $0xe0] sm:$0xff]  ;;  %v7363_v20 = vld [vmem:[#allocation9 + $0xa8] sm:$0xff] }
 0xe29   :  { %v3255_v4 = vpop.f32.mrf.mxu0  ;;  %v3326_v34 = vpop.f32.mrf.mxu1  ;;  %v7378_v7 = vld [vmem:[#allocation9 + $0x98] sm:$0xff] }
 0xe2a   :  { %v4506_v50 = vmul.f32 -1.442695, %v3329_v18  ;;  %v3330_v49 = vadd.f32 %v3255_v4, %v7964_v58  ;;  %v3332_v37 = vadd.f32 %v3326_v34, %v7965_v2  ;;  %v7348_v18 = vld [vmem:[#allocation9 + $0xf0] sm:$0xff]  ;;  %v7351_v4 = vld [vmem:[#allocation9 + $0xc8] sm:$0xff]  ;;  %v7357_v58 = vld [vmem:[#allocation9 + $0xc0] sm:$0xff] }
 0xe2b   :  { %v7369_v34 = vld [vmem:[#allocation9 + $0xa0] sm:$0xff]  ;;  %v7372_v2 = vld [vmem:[#allocation9 + $0xb0] sm:$0xff] }
 0xe2c   :  { %5209 = vpow2.f32 %v4506_v50  ;;  %v4507_v26 = vmul.f32 -1.442695, %v3330_v49  ;;  %v4508_v5 = vmul.f32 -1.442695, %v3332_v37  ;;  %v7354_v50 = vld [vmem:[#allocation9 + $0xd8] sm:$0xff]  ;;  %v7360_v49 = vld [vmem:[#allocation9 + $0xd0] sm:$0xff] }
 0xe2d   :  { %v7375_v37 = vld [vmem:[#allocation9 + $0x88] sm:$0xff] }
 0xe2e   :  { %5211 = vpow2.f32 %v4507_v26  ;;  %v7366_v26 = vld [vmem:[#allocation9 + $0xb8] sm:$0xff] }
 0xe2f   :  { %5213 = vtanh.f32 %v3331_v52  ;;  %v7381_v52 = vld [vmem:[#allocation9 + $0x80] sm:$0xff] }
 0xe30   :  { %5215 = vpow2.f32 %v4508_v5  ;;  %v7384_v5 = vld [vmem:[#allocation9 + $0x90] sm:$0xff] }
 0xe31   :  { %7969 = vst [vmem:[#allocation21_spill] sm:$0xff] %v7384_v5 }
 0xe39   :  { %v5210_v14 = vpop.eup %5209 }
 0xe3a   :  { %v3342_v10 = vadd.f32 1.0, %v5210_v14  ;;  %v7387_v14 = vld [vmem:[#allocation9 + $0x68] sm:$0xff] }
 0xe3b   :  { %v5212_v47 = vpop.eup %5211  ;;  %7970 = vst [vmem:[#allocation22_spill] sm:$0xff] %v7387_v14 }
 0xe3c   :  { %5217 = vrcp.f32 %v3342_v10  ;;  %v3343_v29 = vadd.f32 1.0, %v5212_v47  ;;  %v5214_v23 = vpop.eup %5213  ;;  %v7390_v10 = vld [vmem:[#allocation9 + $0x78] sm:$0xff]  ;;  %v7393_v47 = vld [vmem:[#allocation9 + $0x60] sm:$0xff] }
 0xe3d   :  { %v5216_v33 = vpop.eup %5215  ;;  %7971 = vst [vmem:[#allocation45_spill] sm:$0xff] %v7390_v10  ;;  %7972 = vst [vmem:[#allocation46_spill] sm:$0xff] %v7393_v47 }
 0xe3e   :  { %5219 = vrcp.f32 %v3343_v29  ;;  %v3344_v1 = vadd.f32 1.0, %v5216_v33  ;;  %v7396_v29 = vld [vmem:[#allocation9 + $0x70] sm:$0xff]  ;;  %v7402_v33 = vld [vmem:[#allocation9 + $0x58] sm:$0xff] }
 0xe3f   :  { %7973 = vst [vmem:[#allocation17_spill] sm:$0xff] %v7396_v29  ;;  %7975 = vst [vmem:[#allocation28_spill] sm:$0xff] %v7402_v33 }
 0xe40   :  { %5221 = vrcp.f32 %v3344_v1  ;;  %v7414_v1 = vld [vmem:[#allocation9 + $0x38] sm:$0xff] }
 0xe41   :  { %7979 = vst [vmem:[#allocation32_spill] sm:$0xff] %v7414_v1 }
 0xe49   :  { %v5218_v27 = vpop.eup %5217 }
 0xe4a   :  { %v3353_v38 = vmul.f32 %v5218_v27, %v5214_v23  ;;  %v7399_v23 = vld [vmem:[#allocation9 + $0x48] sm:$0xff]  ;;  %v7405_v27 = vld [vmem:[#allocation9 + $0x40] sm:$0xff] }
 0xe4b   :  { %v5220_v41 = vpop.eup %5219  ;;  %7974 = vst [vmem:[#allocation27_spill] sm:$0xff] %v7399_v23  ;;  %7976 = vst [vmem:[#allocation29_spill] sm:$0xff] %v7405_v27 }
 0xe4c   :  { %v3352_v6 = vmul.f32 %v5220_v41, %v7172_v12  ;;  %v7339_v12 = vld [vmem:[#allocation9 + $0xe8] sm:$0xff] }
 0xe4d   :  { %v5222_v35 = vpop.eup %5221  ;;  %v7411_v41 = vld [vmem:[#allocation9 + $0x28] sm:$0xff] }
 0xe4e   :  { %v7302_v39 = vadd.f32 %v3353_v38, %v3352_v6  ;;  %v7408_v38 = vld [vmem:[#allocation9 + $0x50] sm:$0xff]  ;;  %7978 = vst [vmem:[#allocation31_spill] sm:$0xff] %v7411_v41  ;;  %v7417_v6 = vld [vmem:[#allocation9 + $0x20] sm:$0xff] }
 0xe4f   :  { %7977 = vst [vmem:[#allocation30_spill] sm:$0xff] %v7408_v38  ;;  %7980 = vst [vmem:[#allocation33_spill] sm:$0xff] %v7417_v6 }
 0xe50   :  { %5223 = vtanh.f32 %v7302_v39 }
 0xe5d   :  { %v5224_v11 = vpop.eup %5223 }
 0xe5e   :  { %v3356_v32 = vmul.f32 %v5224_v11, %v5222_v35  ;;  %v7420_v35 = vld [vmem:[#allocation9 + $0x30] sm:$0xff]  ;;  %v7423_v11 = vld [vmem:[#allocation9 + $0x8] sm:$0xff] }
 0xe5f   :  { %7981 = vst [vmem:[#allocation34_spill] sm:$0xff] %v7420_v35  ;;  %7982 = vst [vmem:[#allocation35_spill] sm:$0xff] %v7423_v11 }
 0xe60   :  { %3422 = vmatmul.mubr.f32.vlgmr.msra.gmra.mxu0 %v3356_v32  ;;  %3493 = vmatmul.mubr.f32.vlgmr.msra.gmra.mxu1 %v3356_v32  ;;  %v7426_v32 = vld [vmem:[#allocation9 + $0x18] sm:$0xff] }
 0xe61   :  { %3528 = vmatpush1.msra.mxu0 %v7175_v31  ;;  %3599 = vmatpush1.msra.mxu1 %v7178_v21  ;;  %7983 = vst [vmem:[#allocation37_spill] sm:$0xff] %v7426_v32 }
 0xe62   :  { %3529 = vmatprep.subr.mxu0 %v7181_v62  ;;  %3600 = vmatprep.subr.mxu1 %v7184_v55 }
 0xe63   :  { %3530 = vmatpush1.msra.mxu0 %v7187_v54  ;;  %3601 = vmatpush1.msra.mxu1 %v7190_v19 }
 0xe64   :  { %3531 = vmatprep.subr.mxu0 %v7193_v15  ;;  %3602 = vmatprep.subr.mxu1 %v7196_v3 }
 0xe65   :  { %3532 = vmatpush1.msra.mxu0 %v7199_v53  ;;  %3603 = vmatpush1.msra.mxu1 %v7202_v22 }
 0xe66   :  { %3533 = vmatprep.subr.mxu0 %v7205_v63  ;;  %3604 = vmatprep.subr.mxu1 %v7208_v43 }
 0xe67   :  { %3534 = vmatpush1.msra.mxu0 %v7211_v24  ;;  %3605 = vmatpush1.msra.mxu1 %v7214_v48 }
 0xe68   :  { %3535 = vmatprep.subr.mxu0 %v7217_v57  ;;  %3606 = vmatprep.subr.mxu1 %v7220_v44 }
 0xe69   :  { %3536 = vmatpush1.msra.mxu0 %v7223_v8  ;;  %3607 = vmatpush1.msra.mxu1 %v7226_v61 }
 0xe6a   :  { %3537 = vmatprep.subr.mxu0 %v7229_v17  ;;  %3608 = vmatprep.subr.mxu1 %v7232_v30 }
 0xe6b   :  { %3538 = vmatpush1.msra.mxu0 %v7967_v51  ;;  %3609 = vmatpush1.msra.mxu1 %v7968_v45 }
 0xe6c   :  { %3539 = vmatprep.subr.mxu0 %v7241_v28  ;;  %3610 = vmatprep.subr.mxu1 %v7244_v42 }
 0xe6d   :  { %3540 = vmatpush1.msra.mxu0 %v7247_v0  ;;  %3611 = vmatpush1.msra.mxu1 %v7250_v9 }
 0xe6e   :  { %3541 = vmatprep.subr.mxu0 %v7253_v13  ;;  %3612 = vmatprep.subr.mxu1 %v7256_v16 }
 0xe6f   :  { %3542 = vmatpush1.msra.mxu0 %v7333_v60  ;;  %3613 = vmatpush1.msra.mxu1 %v7336_v59 }
 0xe70   :  { %3543 = vmatprep.subr.mxu0 %v7339_v12  ;;  %3614 = vmatprep.subr.mxu1 %v7342_v56 }
 0xe71   :  { %3544 = vmatpush1.msra.mxu0 %v7345_v25  ;;  %3615 = vmatpush1.msra.mxu1 %v7348_v18 }
 0xe72   :  { %3545 = vmatprep.subr.mxu0 %v7351_v4  ;;  %3616 = vmatprep.subr.mxu1 %v7354_v50 }
 0xe73   :  { %3546 = vmatpush1.msra.mxu0 %v7357_v58  ;;  %3617 = vmatpush1.msra.mxu1 %v7360_v49 }
 0xe74   :  { %3547 = vmatprep.subr.mxu0 %v7363_v20  ;;  %3618 = vmatprep.subr.mxu1 %v7366_v26 }
 0xe75   :  { %3548 = vmatpush1.msra.mxu0 %v7369_v34  ;;  %3619 = vmatpush1.msra.mxu1 %v7372_v2 }
 0xe76   :  { %3549 = vmatprep.subr.mxu0 %v7375_v37  ;;  %3620 = vmatprep.subr.mxu1 %v7378_v7 }
 0xe77   :  { %3550 = vmatpush1.msra.mxu0 %v7381_v52  ;;  %3621 = vmatpush1.msra.mxu1 %v7384_v5 }
 0xe78   :  { %3551 = vmatprep.subr.mxu0 %v7387_v14  ;;  %3622 = vmatprep.subr.mxu1 %v7390_v10  ;;  %v7989_v10 = vld [vmem:[#allocation56_spill] sm:$0xff] }
 0xe79   :  { %3552 = vmatpush1.msra.mxu0 %v7393_v47  ;;  %3623 = vmatpush1.msra.mxu1 %v7396_v29  ;;  %v7988_v47 = vld [vmem:[#allocation58_spill] sm:$0xff] }
 0xe7a   :  { %3553 = vmatprep.subr.mxu0 %v7399_v23  ;;  %3624 = vmatprep.subr.mxu1 %v7402_v33 }
 0xe7b   :  { %3554 = vmatpush1.msra.mxu0 %v7405_v27  ;;  %3625 = vmatpush1.msra.mxu1 %v7408_v38  ;;  %v7987_v27 = vld [vmem:[#allocation57_spill] sm:$0xff] }
 0xe7c   :  { %3555 = vmatprep.subr.mxu0 %v7411_v41  ;;  %3626 = vmatprep.subr.mxu1 %v7414_v1  ;;  %v7429_v41 = vld [vmem:[#allocation9] sm:$0xff]  ;;  %v7433_v1 = vld [vmem:[#allocation9 + $0x10] sm:$0xff] }
 0xe7d   :  { %3556 = vmatpush1.msra.mxu0 %v7417_v6  ;;  %3627 = vmatpush1.msra.mxu1 %v7420_v35  ;;  %7984 = vst [vmem:[#allocation38_spill] sm:$0xff] %v7429_v41  ;;  %7985 = vst [vmem:[#allocation39_spill] sm:$0xff] %v7433_v1  ;;  %v7986_v35 = vld [vmem:[#allocation55_spill] sm:$0xff] }
 0xe7e   :  { %3557 = vmatprep.subr.mxu0 %v7423_v11  ;;  %3628 = vmatprep.subr.mxu1 %v7426_v32 }
 0xe7f   :  { %3558 = vmatpush1.msra.mxu0 %v7429_v41  ;;  %3591 = vmatprep.mubr.f32.mxu0 %v7953_v36 }
 0xe80   :  { %3629 = vmatpush1.msra.mxu1 %v7433_v1  ;;  %3662 = vmatprep.mubr.f32.mxu1 %v7953_v36 }
 0xe81   :  { %3697 = vmatprep.subr.mxu0 %v7161_v46  ;;  %3768 = vmatprep.subr.mxu1 %v7164_v40 }
 0xf20   :  { %v3423_v11 = vpop.f32.mrf.mxu0  ;;  %v3494_v41 = vpop.f32.mrf.mxu1 }
 0xf21   :  { %v3499_v6 = vadd.f32 %v3423_v11, %v7986_v35  ;;  %v3501_v36 = vadd.f32 %v3494_v41, %v7989_v10  ;;  %v7995_v41 = vld [vmem:[#allocation27_spill] sm:$0xff] }
 0xf22   :  { %v3425_v32 = vpop.f32.mrf.mxu0  ;;  %v3496_v29 = vpop.f32.mrf.mxu1 }
 0xf23   :  { %v4509_v38 = vmul.f32 -1.442695, %v3499_v6  ;;  %v3500_v33 = vadd.f32 %v3425_v32, %v7987_v27  ;;  %v3502_v1 = vadd.f32 %v3496_v29, %v7988_v47  ;;  %v7994_v29 = vld [vmem:[#allocation17_spill] sm:$0xff] }
 0xf25   :  { %5225 = vpow2.f32 %v4509_v38  ;;  %v4510_v23 = vmul.f32 -1.442695, %v3500_v33  ;;  %v4511_v14 = vmul.f32 -1.442695, %v3502_v1  ;;  %v7996_v1 = vld [vmem:[#allocation28_spill] sm:$0xff] }
 0xf27   :  { %5227 = vpow2.f32 %v4510_v23 }
 0xf28   :  { %5229 = vtanh.f32 %v3501_v36 }
 0xf29   :  { %5231 = vpow2.f32 %v4511_v14  ;;  %v7993_v14 = vld [vmem:[#allocation46_spill] sm:$0xff] }
 0xf32   :  { %v5226_v46 = vpop.eup %5225 }
 0xf33   :  { %v3512_v5 = vadd.f32 1.0, %v5226_v46 }
 0xf34   :  { %v5228_v40 = vpop.eup %5227 }
 0xf35   :  { %5233 = vrcp.f32 %v3512_v5  ;;  %v3513_v35 = vadd.f32 1.0, %v5228_v40  ;;  %v5230_v6 = vpop.eup %5229  ;;  %v7990_v40 = vld [vmem:[#allocation21_spill] sm:$0xff] }
 0xf36   :  { %v5232_v27 = vpop.eup %5231  ;;  %v7992_v5 = vld [vmem:[#allocation45_spill] sm:$0xff] }
 0xf37   :  { %5235 = vrcp.f32 %v3513_v35  ;;  %v3514_v23 = vadd.f32 1.0, %v5232_v27  ;;  %v7997_v35 = vld [vmem:[#allocation29_spill] sm:$0xff]  ;;  %v7999_v27 = vld [vmem:[#allocation31_spill] sm:$0xff] }
 0xf39   :  { %5237 = vrcp.f32 %v3514_v23  ;;  %v8003_v23 = vld [vmem:[#allocation35_spill] sm:$0xff] }
 0xf42   :  { %v5234_v38 = vpop.eup %5233 }
 0xf43   :  { %v3523_v11 = vmul.f32 %v5234_v38, %v5230_v6  ;;  %v7998_v6 = vld [vmem:[#allocation30_spill] sm:$0xff]  ;;  %v8000_v38 = vld [vmem:[#allocation32_spill] sm:$0xff] }
 0xf44   :  { %v5236_v33 = vpop.eup %5235 }
 0xf45   :  { %v3522_v32 = vmul.f32 %v5236_v33, %v7302_v39  ;;  %v7991_v39 = vld [vmem:[#allocation22_spill] sm:$0xff] }
 0xf46   :  { %v5238_v46 = vpop.eup %5237  ;;  %v8002_v33 = vld [vmem:[#allocation34_spill] sm:$0xff] }
 0xf47   :  { %v7444_v47 = vadd.f32 %v3523_v11, %v3522_v32  ;;  %v8001_v11 = vld [vmem:[#allocation33_spill] sm:$0xff] }
 0xf48   :  { %v8004_v32 = vld [vmem:[#allocation37_spill] sm:$0xff] }
 0xf49   :  { %5239 = vtanh.f32 %v7444_v47 }
 0xf56   :  { %v5240_v36 = vpop.eup %5239 }
 0xf57   :  { %v3526_v10 = vmul.f32 %v5240_v36, %v5238_v46  ;;  %v8005_v46 = vld [vmem:[#allocation38_spill] sm:$0xff]  ;;  %v8006_v36 = vmov 0.0  }
 0xf59   :  { %3592 = vmatmul.mubr.f32.vlgmr.msra.gmra.mxu0 %v3526_v10  ;;  %3663 = vmatmul.mubr.f32.vlgmr.msra.gmra.mxu1 %v3526_v10  ;;  %v8007_v10 = vld [vmem:[#allocation39_spill] sm:$0xff] }
 0xf5a   :  { %3698 = vmatpush1.msra.mxu0 %v7175_v31  ;;  %3769 = vmatpush1.msra.mxu1 %v7178_v21 }
 0xf5b   :  { %3699 = vmatprep.subr.mxu0 %v7181_v62  ;;  %3770 = vmatprep.subr.mxu1 %v7184_v55 }
 0xf5c   :  { %3700 = vmatpush1.msra.mxu0 %v7187_v54  ;;  %3771 = vmatpush1.msra.mxu1 %v7190_v19 }
 0xf5d   :  { %3701 = vmatprep.subr.mxu0 %v7193_v15  ;;  %3772 = vmatprep.subr.mxu1 %v7196_v3 }
 0xf5e   :  { %3702 = vmatpush1.msra.mxu0 %v7199_v53  ;;  %3773 = vmatpush1.msra.mxu1 %v7202_v22 }
 0xf5f   :  { %3703 = vmatprep.subr.mxu0 %v7205_v63  ;;  %3774 = vmatprep.subr.mxu1 %v7208_v43 }
 0xf60   :  { %3704 = vmatpush1.msra.mxu0 %v7211_v24  ;;  %3775 = vmatpush1.msra.mxu1 %v7214_v48 }
 0xf61   :  { %3705 = vmatprep.subr.mxu0 %v7217_v57  ;;  %3776 = vmatprep.subr.mxu1 %v7220_v44 }
 0xf62   :  { %3706 = vmatpush1.msra.mxu0 %v7223_v8  ;;  %3777 = vmatpush1.msra.mxu1 %v7226_v61 }
 0xf63   :  { %3707 = vmatprep.subr.mxu0 %v7229_v17  ;;  %3778 = vmatprep.subr.mxu1 %v7232_v30 }
 0xf64   :  { %3708 = vmatpush1.msra.mxu0 %v7967_v51  ;;  %3779 = vmatpush1.msra.mxu1 %v7968_v45 }
 0xf65   :  { %3709 = vmatprep.subr.mxu0 %v7241_v28  ;;  %3780 = vmatprep.subr.mxu1 %v7244_v42 }
 0xf66   :  { %3710 = vmatpush1.msra.mxu0 %v7247_v0  ;;  %3781 = vmatpush1.msra.mxu1 %v7250_v9 }
 0xf67   :  { %3711 = vmatprep.subr.mxu0 %v7253_v13  ;;  %3782 = vmatprep.subr.mxu1 %v7256_v16 }
 0xf68   :  { %3712 = vmatpush1.msra.mxu0 %v7333_v60  ;;  %3783 = vmatpush1.msra.mxu1 %v7336_v59 }
 0xf69   :  { %3713 = vmatprep.subr.mxu0 %v7339_v12  ;;  %3784 = vmatprep.subr.mxu1 %v7342_v56 }
 0xf6a   :  { %3714 = vmatpush1.msra.mxu0 %v7345_v25  ;;  %3785 = vmatpush1.msra.mxu1 %v7348_v18 }
 0xf6b   :  { %3715 = vmatprep.subr.mxu0 %v7351_v4  ;;  %3786 = vmatprep.subr.mxu1 %v7354_v50 }
 0xf6c   :  { %3716 = vmatpush1.msra.mxu0 %v7357_v58  ;;  %3787 = vmatpush1.msra.mxu1 %v7360_v49 }
 0xf6d   :  { %3717 = vmatprep.subr.mxu0 %v7363_v20  ;;  %3788 = vmatprep.subr.mxu1 %v7366_v26 }
 0xf6e   :  { %3718 = vmatpush1.msra.mxu0 %v7369_v34  ;;  %3789 = vmatpush1.msra.mxu1 %v7372_v2 }
 0xf6f   :  { %3719 = vmatprep.subr.mxu0 %v7375_v37  ;;  %3790 = vmatprep.subr.mxu1 %v7378_v7 }
 0xf70   :  { %3720 = vmatpush1.msra.mxu0 %v7381_v52  ;;  %3791 = vmatpush1.msra.mxu1 %v7990_v40 }
 0xf71   :  { %3721 = vmatprep.subr.mxu0 %v7991_v39  ;;  %3792 = vmatprep.subr.mxu1 %v7992_v5  ;;  %v8013_v5 = vld [vmem:[#allocation60_spill] sm:$0xff] }
 0xf72   :  { %3722 = vmatpush1.msra.mxu0 %v7993_v14  ;;  %3793 = vmatpush1.msra.mxu1 %v7994_v29  ;;  %v8012_v14 = vld [vmem:[#allocation62_spill] sm:$0xff] }
 0xf73   :  { %3723 = vmatprep.subr.mxu0 %v7995_v41  ;;  %3794 = vmatprep.subr.mxu1 %v7996_v1 }
 0xf74   :  { %3724 = vmatpush1.msra.mxu0 %v7997_v35  ;;  %3795 = vmatpush1.msra.mxu1 %v7998_v6  ;;  %v8008_v6 = vld [vmem:[#allocation23_spill] sm:$0xff] }
 0xf75   :  { %3725 = vmatprep.subr.mxu0 %v7999_v27  ;;  %3796 = vmatprep.subr.mxu1 %v8000_v38  ;;  %v8009_v27 = vld [vmem:[#allocation24_spill] sm:$0xff] }
 0xf76   :  { %3726 = vmatpush1.msra.mxu0 %v8001_v11  ;;  %3797 = vmatpush1.msra.mxu1 %v8002_v33  ;;  %v8010_v11 = vld [vmem:[#allocation59_spill] sm:$0xff] }
 0xf77   :  { %3727 = vmatprep.subr.mxu0 %v8003_v23  ;;  %3798 = vmatprep.subr.mxu1 %v8004_v32  ;;  %v8011_v23 = vld [vmem:[#allocation61_spill] sm:$0xff] }
 0xf78   :  { %3728 = vmatpush1.msra.mxu0 %v8005_v46  ;;  %3761 = vmatprep.mubr.f32.mxu0 %v8006_v36 }
 0xf79   :  { %3799 = vmatpush1.msra.mxu1 %v8007_v10  ;;  %3832 = vmatprep.mubr.f32.mxu1 %v8006_v36 }
 0xf7a   :  { %3867 = vmatprep.subr.mxu0 %v8008_v6  ;;  %3938 = vmatprep.subr.mxu1 %v8009_v27 }
0x1019   :  { %v3593_v38 = vpop.f32.mrf.mxu0  ;;  %v3664_v32 = vpop.f32.mrf.mxu1 }
0x101a   :  { %v3669_v35 = vadd.f32 %v3593_v38, %v8010_v11  ;;  %v3671_v36 = vadd.f32 %v3664_v32, %v8013_v5 }
0x101b   :  { %v3595_v33 = vpop.f32.mrf.mxu0  ;;  %v3666_v29 = vpop.f32.mrf.mxu1 }
0x101c   :  { %v4512_v1 = vmul.f32 -1.442695, %v3669_v35  ;;  %v3670_v41 = vadd.f32 %v3595_v33, %v8011_v23  ;;  %v3672_v10 = vadd.f32 %v3666_v29, %v8012_v14 }
0x101e   :  { %5241 = vpow2.f32 %v4512_v1  ;;  %v4513_v46 = vmul.f32 -1.442695, %v3670_v41  ;;  %v4514_v39 = vmul.f32 -1.442695, %v3672_v10 }
0x1020   :  { %5243 = vpow2.f32 %v4513_v46 }
0x1021   :  { %5245 = vtanh.f32 %v3671_v36 }
0x1022   :  { %5247 = vpow2.f32 %v4514_v39 }
0x102b   :  { %v5242_v6 = vpop.eup %5241 }
0x102c   :  { %v3682_v40 = vadd.f32 1.0, %v5242_v6  ;;  %v4049_v6 = vld [vmem:[#allocation10 + $0x60] sm:$0xff] }
0x102d   :  { %v5244_v27 = vpop.eup %5243 }
0x102e   :  { %5249 = vrcp.f32 %v3682_v40  ;;  %v3683_v38 = vadd.f32 1.0, %v5244_v27  ;;  %v5246_v35 = vpop.eup %5245  ;;  %v4051_v27 = vld [vmem:[#allocation10 + $0x70] sm:$0xff] }
0x102f   :  { %v5248_v11 = vpop.eup %5247 }
0x1030   :  { %5251 = vrcp.f32 %v3683_v38  ;;  %v3684_v23 = vadd.f32 1.0, %v5248_v11  ;;  %v4046_v38 = vld [vmem:[#allocation10 + $0x48] sm:$0xff]  ;;  %v4045_v11 = vld [vmem:[#allocation10 + $0x40] sm:$0xff] }
0x1032   :  { %5253 = vrcp.f32 %v3684_v23  ;;  %v4041_v23 = vld [vmem:[#allocation10 + $0x20] sm:$0xff] }
0x103b   :  { %v5250_v1 = vpop.eup %5249 }
0x103c   :  { %v3693_v33 = vmul.f32 %v5250_v1, %v5246_v35  ;;  %v4048_v35 = vld [vmem:[#allocation10 + $0x58] sm:$0xff]  ;;  %v4047_v1 = vld [vmem:[#allocation10 + $0x50] sm:$0xff] }
0x103d   :  { %v5252_v41 = vpop.eup %5251 }
0x103e   :  { %v3692_v46 = vmul.f32 %v5252_v41, %v7444_v47  ;;  %v4044_v41 = vld [vmem:[#allocation10 + $0x38] sm:$0xff] }
0x103f   :  { %v5254_v5 = vpop.eup %5253 }
0x1040   :  { %v7518_v14 = vadd.f32 %v3693_v33, %v3692_v46  ;;  %v4042_v33 = vld [vmem:[#allocation10 + $0x28] sm:$0xff]  ;;  %v4043_v46 = vld [vmem:[#allocation10 + $0x30] sm:$0xff] }
0x1042   :  { %5255 = vtanh.f32 %v7518_v14 }
0x104f   :  { %v5256_v29 = vpop.eup %5255 }
0x1050   :  { %v3696_v32 = vmul.f32 %v5256_v29, %v5254_v5  ;;  %v4040_v5 = vld [vmem:[#allocation10 + $0x18] sm:$0xff]  ;;  %v4037_v29 = vld [vmem:[#allocation10] sm:$0xff] }
0x1052   :  { %3762 = vmatmul.mubr.f32.vlgmr.msra.gmra.mxu0 %v3696_v32  ;;  %3833 = vmatmul.mubr.f32.vlgmr.msra.gmra.mxu1 %v3696_v32  ;;  %v4039_v32 = vld [vmem:[#allocation10 + $0x10] sm:$0xff] }
0x1053   :  { %3868 = vmatpush1.msra.mxu0 %v7175_v31  ;;  %3939 = vmatpush1.msra.mxu1 %v7178_v21  ;;  %v8014_v31 = vld [vmem:[#allocation21_spill] sm:$0xff]  ;;  %v8015_v21 = vld [vmem:[#allocation22_spill] sm:$0xff] }
0x1054   :  { %3869 = vmatprep.subr.mxu0 %v7181_v62  ;;  %3940 = vmatprep.subr.mxu1 %v7184_v55  ;;  %v8016_v62 = vld [vmem:[#allocation45_spill] sm:$0xff]  ;;  %v8017_v55 = vld [vmem:[#allocation46_spill] sm:$0xff] }
0x1055   :  { %3870 = vmatpush1.msra.mxu0 %v7187_v54  ;;  %3941 = vmatpush1.msra.mxu1 %v7190_v19  ;;  %v8018_v54 = vld [vmem:[#allocation17_spill] sm:$0xff]  ;;  %v8019_v19 = vld [vmem:[#allocation27_spill] sm:$0xff] }
0x1056   :  { %3871 = vmatprep.subr.mxu0 %v7193_v15  ;;  %3942 = vmatprep.subr.mxu1 %v7196_v3  ;;  %v8020_v15 = vld [vmem:[#allocation28_spill] sm:$0xff]  ;;  %v8021_v3 = vld [vmem:[#allocation29_spill] sm:$0xff] }
0x1057   :  { %3872 = vmatpush1.msra.mxu0 %v7199_v53  ;;  %3943 = vmatpush1.msra.mxu1 %v7202_v22  ;;  %v8022_v53 = vld [vmem:[#allocation30_spill] sm:$0xff]  ;;  %v8023_v22 = vld [vmem:[#allocation31_spill] sm:$0xff] }
0x1058   :  { %3873 = vmatprep.subr.mxu0 %v7205_v63  ;;  %3944 = vmatprep.subr.mxu1 %v7208_v43  ;;  %v8024_v63 = vld [vmem:[#allocation32_spill] sm:$0xff]  ;;  %v8025_v43 = vld [vmem:[#allocation33_spill] sm:$0xff] }
0x1059   :  { %3874 = vmatpush1.msra.mxu0 %v7211_v24  ;;  %3945 = vmatpush1.msra.mxu1 %v7214_v48  ;;  %v8026_v24 = vld [vmem:[#allocation34_spill] sm:$0xff]  ;;  %v8027_v48 = vld [vmem:[#allocation35_spill] sm:$0xff] }
0x105a   :  { %3875 = vmatprep.subr.mxu0 %v7217_v57  ;;  %3946 = vmatprep.subr.mxu1 %v7220_v44  ;;  %v8028_v57 = vld [vmem:[#allocation37_spill] sm:$0xff]  ;;  %v8029_v44 = vld [vmem:[#allocation38_spill] sm:$0xff] }
0x105b   :  { %3876 = vmatpush1.msra.mxu0 %v7223_v8  ;;  %3947 = vmatpush1.msra.mxu1 %v7226_v61  ;;  %v8030_v8 = vld [vmem:[#allocation39_spill] sm:$0xff]  ;;  %v8031_v61 = vmov 0.0  }
0x105c   :  { %3877 = vmatprep.subr.mxu0 %v7229_v17  ;;  %3948 = vmatprep.subr.mxu1 %v7232_v30  ;;  %v4050_v17 = vld [vmem:[#allocation10 + $0x68] sm:$0xff]  ;;  %v4052_v30 = vld [vmem:[#allocation10 + $0x78] sm:$0xff] }
0x105d   :  { %3878 = vmatpush1.msra.mxu0 %v7967_v51  ;;  %3949 = vmatpush1.msra.mxu1 %v7968_v45 }
0x105e   :  { %3879 = vmatprep.subr.mxu0 %v7241_v28  ;;  %3950 = vmatprep.subr.mxu1 %v7244_v42 }
0x105f   :  { %3880 = vmatpush1.msra.mxu0 %v7247_v0  ;;  %3951 = vmatpush1.msra.mxu1 %v7250_v9  ;;  %v8033_v9 = vld [vmem:[#allocation65_spill] sm:$0xff] }
0x1060   :  { %3881 = vmatprep.subr.mxu0 %v7253_v13  ;;  %3952 = vmatprep.subr.mxu1 %v7256_v16  ;;  %v8032_v16 = vld [vmem:[#allocation63_spill] sm:$0xff] }
0x1061   :  { %3882 = vmatpush1.msra.mxu0 %v7333_v60  ;;  %3953 = vmatpush1.msra.mxu1 %v7336_v59 }
0x1062   :  { %3883 = vmatprep.subr.mxu0 %v7339_v12  ;;  %3954 = vmatprep.subr.mxu1 %v7342_v56  ;;  %v8034_v12 = vld [vmem:[#allocation66_spill] sm:$0xff] }
0x1063   :  { %3884 = vmatpush1.msra.mxu0 %v7345_v25  ;;  %3955 = vmatpush1.msra.mxu1 %v7348_v18  ;;  %v8035_v25 = vld [vmem:[#allocation64_spill] sm:$0xff] }
0x1064   :  { %3885 = vmatprep.subr.mxu0 %v7351_v4  ;;  %3956 = vmatprep.subr.mxu1 %v7354_v50 }
0x1065   :  { %3886 = vmatpush1.msra.mxu0 %v7357_v58  ;;  %3957 = vmatpush1.msra.mxu1 %v7360_v49 }
0x1066   :  { %3887 = vmatprep.subr.mxu0 %v7363_v20  ;;  %3958 = vmatprep.subr.mxu1 %v7366_v26 }
0x1067   :  { %3888 = vmatpush1.msra.mxu0 %v7369_v34  ;;  %3959 = vmatpush1.msra.mxu1 %v7372_v2 }
0x1068   :  { %3889 = vmatprep.subr.mxu0 %v7375_v37  ;;  %3960 = vmatprep.subr.mxu1 %v7378_v7 }
0x1069   :  { %3890 = vmatpush1.msra.mxu0 %v7381_v52  ;;  %3961 = vmatpush1.msra.mxu1 %v8014_v31  ;;  %v8036_v31 = vld [vmem:[#allocation36_spill] sm:$0xff] }
0x106a   :  { %3891 = vmatprep.subr.mxu0 %v8015_v21  ;;  %3962 = vmatprep.subr.mxu1 %v8016_v62  ;;  %v4242_v21 = vld [vmem:[#allocation12 + $0x78] sm:$0xff]  ;;  %v4241_v62 = vld [vmem:[#allocation12 + $0x70] sm:$0xff] }
0x106b   :  { %3892 = vmatpush1.msra.mxu0 %v8017_v55  ;;  %3963 = vmatpush1.msra.mxu1 %v8018_v54  ;;  %v4258_v55 = vld [vmem:[%s7720_s22 + $0x78] sm:$0xff]  ;;  %v4240_v54 = vld [vmem:[#allocation12 + $0x68] sm:$0xff] }
0x106c   :  { %3893 = vmatprep.subr.mxu0 %v8019_v19  ;;  %3964 = vmatprep.subr.mxu1 %v8020_v15  ;;  %v4257_v19 = vld [vmem:[%s7720_s22 + $0x70] sm:$0xff]  ;;  %v4239_v15 = vld [vmem:[#allocation12 + $0x60] sm:$0xff] }
0x106d   :  { %3894 = vmatpush1.msra.mxu0 %v8021_v3  ;;  %3965 = vmatpush1.msra.mxu1 %v8022_v53  ;;  %v4256_v3 = vld [vmem:[%s7720_s22 + $0x68] sm:$0xff]  ;;  %v4238_v53 = vld [vmem:[#allocation12 + $0x58] sm:$0xff] }
0x106e   :  { %3895 = vmatprep.subr.mxu0 %v8023_v22  ;;  %3966 = vmatprep.subr.mxu1 %v8024_v63  ;;  %v4255_v22 = vld [vmem:[%s7720_s22 + $0x60] sm:$0xff]  ;;  %v4237_v63 = vld [vmem:[#allocation12 + $0x50] sm:$0xff] }
0x106f   :  { %3896 = vmatpush1.msra.mxu0 %v8025_v43  ;;  %3967 = vmatpush1.msra.mxu1 %v8026_v24  ;;  %v4254_v43 = vld [vmem:[%s7720_s22 + $0x58] sm:$0xff]  ;;  %v4236_v24 = vld [vmem:[#allocation12 + $0x48] sm:$0xff] }
0x1070   :  { %3897 = vmatprep.subr.mxu0 %v8027_v48  ;;  %3968 = vmatprep.subr.mxu1 %v8028_v57  ;;  %v4253_v48 = vld [vmem:[%s7720_s22 + $0x50] sm:$0xff]  ;;  %v4235_v57 = vld [vmem:[#allocation12 + $0x40] sm:$0xff] }
0x1071   :  { %3898 = vmatpush1.msra.mxu0 %v8029_v44  ;;  %3969 = vmatpush1.msra.mxu1 %v8030_v8  ;;  %v4252_v44 = vld [vmem:[%s7720_s22 + $0x48] sm:$0xff]  ;;  %v4234_v8 = vld [vmem:[#allocation12 + $0x38] sm:$0xff] }
0x1072   :  { %3931 = vmatprep.mubr.f32.mxu0 %v8031_v61  ;;  %4002 = vmatprep.mubr.f32.mxu1 %v8031_v61 }
0x1073   :  { %4094 = vmatprep.subr.mxu0 %v4050_v17  ;;  %4164 = vmatprep.subr.mxu1 %v4052_v30  ;;  %v4251_v17 = vld [vmem:[%s7720_s22 + $0x40] sm:$0xff]  ;;  %v4233_v30 = vld [vmem:[#allocation12 + $0x30] sm:$0xff] }
0x1112   :  { %v3763_v13 = vpop.f32.mrf.mxu0  ;;  %v3834_v45 = vpop.f32.mrf.mxu1 }
0x1113   :  { %v3839_v28 = vadd.f32 %v3763_v13, %v8032_v16  ;;  %v3841_v18 = vadd.f32 %v3834_v45, %v8035_v25  ;;  %v4250_v13 = vld [vmem:[%s7720_s22 + $0x38] sm:$0xff]  ;;  %v4232_v16 = vld [vmem:[#allocation12 + $0x28] sm:$0xff]  ;;  %v4229_v45 = vld [vmem:[#allocation12 + $0x10] sm:$0xff] }
0x1114   :  { %v3765_v42 = vpop.f32.mrf.mxu0  ;;  %v3836_v59 = vpop.f32.mrf.mxu1  ;;  %v4244_v25 = vld [vmem:[%s7720_s22 + $0x8] sm:$0xff] }
0x1115   :  { %v4515_v0 = vmul.f32 -1.442695, %v3839_v28  ;;  %v3840_v51 = vadd.f32 %v3765_v42, %v8033_v9  ;;  %v3842_v56 = vadd.f32 %v3836_v59, %v8034_v12  ;;  %v4249_v28 = vld [vmem:[%s7720_s22 + $0x30] sm:$0xff]  ;;  %v4231_v42 = vld [vmem:[#allocation12 + $0x20] sm:$0xff]  ;;  %v4230_v9 = vld [vmem:[#allocation12 + $0x18] sm:$0xff] }
0x1116   :  { %v4228_v59 = vld [vmem:[#allocation12 + $0x8] sm:$0xff]  ;;  %v4245_v12 = vld [vmem:[%s7720_s22 + $0x10] sm:$0xff] }
0x1117   :  { %5257 = vpow2.f32 %v4515_v0  ;;  %v4516_v60 = vmul.f32 -1.442695, %v3840_v51  ;;  %v4517_v4 = vmul.f32 -1.442695, %v3842_v56  ;;  %v4248_v0 = vld [vmem:[%s7720_s22 + $0x28] sm:$0xff]  ;;  %v4247_v51 = vld [vmem:[%s7720_s22 + $0x20] sm:$0xff] }
0x1118   :  { %v4227_v56 = vld [vmem:[#allocation12] sm:$0xff] }
0x1119   :  { %5259 = vpow2.f32 %v4516_v60  ;;  %v4246_v60 = vld [vmem:[%s7720_s22 + $0x18] sm:$0xff] }
0x111a   :  { %5261 = vtanh.f32 %v3841_v18  ;;  %v4243_v18 = vld [vmem:[%s7720_s22] sm:$0xff] }
0x111b   :  { %5263 = vpow2.f32 %v4517_v4 }
0x1124   :  { %v5258_v50 = vpop.eup %5257 }
0x1125   :  { %v3852_v58 = vadd.f32 1.0, %v5258_v50  ;;  %v8037_v50 = vld [vmem:[#allocation67_spill] sm:$0xff] }
0x1126   :  { %v5260_v49 = vpop.eup %5259 }
0x1127   :  { %5265 = vrcp.f32 %v3852_v58  ;;  %v3853_v20 = vadd.f32 1.0, %v5260_v49  ;;  %v5262_v26 = vpop.eup %5261 }
0x1128   :  { %v5264_v34 = vpop.eup %5263 }
0x1129   :  { %5267 = vrcp.f32 %v3853_v20  ;;  %v3854_v52 = vadd.f32 1.0, %v5264_v34 }
0x112b   :  { %5269 = vrcp.f32 %v3854_v52  ;;  %v8039_v52 = vld [vmem:[#allocation18_spill] sm:$0xff] }
0x1134   :  { %v5266_v2 = vpop.eup %5265 }
0x1135   :  { %v3863_v37 = vmul.f32 %v5266_v2, %v5262_v26  ;;  %v8038_v26 = vld [vmem:[#allocation69_spill] sm:$0xff] }
0x1136   :  { %v5268_v7 = vpop.eup %5267  ;;  %v4053_v2 = vld [vmem:[%s7718_s20] sm:$0xf] }
0x1137   :  { %v3862_v47 = vmul.f32 %v5268_v7, %v7518_v14  ;;  %v4038_v14 = vld [vmem:[#allocation10 + $0x8] sm:$0xff] }
0x1138   :  { %v5270_v39 = vpop.eup %5269 }
0x1139   :  { %v7590_v40 = vadd.f32 %v3863_v37, %v3862_v47  ;;  %v4058_v47 = vrot.slane %v4053_v2, %v8039_v52 }
0x113b   :  { %5271 = vtanh.f32 %v7590_v40 }
0x1148   :  { %v5272_v36 = vpop.eup %5271 }
0x1149   :  { %v3866_v10 = vmul.f32 %v5272_v36, %v5270_v39 }
0x114b   :  { %3932 = vmatmul.mubr.f32.vlgmr.msra.gmra.mxu0 %v3866_v10  ;;  %4003 = vmatmul.mubr.f32.vlgmr.msra.gmra.mxu1 %v3866_v10 }
0x114c   :  { %4095 = vmatpush1.msra.mxu0 %v4049_v6  ;;  %4165 = vmatpush1.msra.mxu1 %v4051_v27  ;;  %v8040_v27 = vld [vmem:[#allocation70_spill] sm:$0xff] }
0x114d   :  { %4096 = vmatprep.subr.mxu0 %v4046_v38  ;;  %4166 = vmatprep.subr.mxu1 %v4048_v35 }
0x114e   :  { %4097 = vmatpush1.msra.mxu0 %v4045_v11  ;;  %4167 = vmatpush1.msra.mxu1 %v4047_v1  ;;  %v8041_v11 = vld [vmem:[#allocation20_spill] sm:$0xff] }
0x114f   :  { %4098 = vmatprep.subr.mxu0 %v4042_v33  ;;  %4168 = vmatprep.subr.mxu1 %v4044_v41  ;;  %v4066_v1 = vrot.slane %v4053_v2, %v8041_v11  ;;  %v8042_v41 = vld [vmem:[#allocation68_spill] sm:$0xff] }
0x1150   :  { %4099 = vmatpush1.msra.mxu0 %v4041_v23  ;;  %4169 = vmatpush1.msra.mxu1 %v4043_v46 }
0x1151   :  { %4100 = vmatprep.subr.mxu0 %v4038_v14  ;;  %4170 = vmatprep.subr.mxu1 %v4040_v5 }
0x1152   :  { %4101 = vmatpush1.msra.mxu0 %v4037_v29  ;;  %4134 = vmatprep.mubr.f32.mxu0 %v8031_v61 }
0x1153   :  { %4171 = vmatpush1.msra.mxu1 %v4039_v32  ;;  %4204 = vmatprep.mubr.f32.mxu1 %v8031_v61 }
0x1154   :  { %4521 = vmatmul.mubr.msk.f32.vlgmr.msra.gmra.mxu0 %vm180_vm0, %v8036_v31  ;;  %4522 = vmatmul.mubr.msk.f32.vlgmr.msra.gmra.mxu1 %vm180_vm0, %v8036_v31 }
0x1155   :  { %4983 = vmatprep.subr.mxu1 %v8031_v61  ;;  %4948 = vmatprep.subr.mxu0 %v8031_v61 }
0x1156   :  { %4984 = vmatpush3.msra.mxu1 %v4242_v21  ;;  %4949 = vmatpush3.msra.mxu0 %v4258_v55  ;;  %v8043_v21 = vld [vmem:[#allocation19_spill] sm:$0xff] }
0x1157   :  { %4985 = vmatprep.subr.mxu1 %v8031_v61  ;;  %4950 = vmatprep.subr.mxu0 %v8031_v61 }
0x1158   :  { %4986 = vmatpush3.msra.mxu1 %v4241_v62  ;;  %4951 = vmatpush3.msra.mxu0 %v4257_v19  ;;  %v4062_v62 = vrot.slane %v4053_v2, %v8043_v21 }
0x1159   :  { %4987 = vmatprep.subr.mxu1 %v8031_v61  ;;  %4952 = vmatprep.subr.mxu0 %v8031_v61 }
0x115a   :  { %4988 = vmatpush3.msra.mxu1 %v4240_v54  ;;  %4953 = vmatpush3.msra.mxu0 %v4256_v3 }
0x115b   :  { %4989 = vmatprep.subr.mxu1 %v8031_v61  ;;  %4954 = vmatprep.subr.mxu0 %v8031_v61 }
0x115c   :  { %4990 = vmatpush3.msra.mxu1 %v4239_v15  ;;  %4955 = vmatpush3.msra.mxu0 %v4255_v22 }
0x115d   :  { %4991 = vmatprep.subr.mxu1 %v8031_v61  ;;  %4956 = vmatprep.subr.mxu0 %v8031_v61 }
0x115e   :  { %4992 = vmatpush3.msra.mxu1 %v4238_v53  ;;  %4957 = vmatpush3.msra.mxu0 %v4254_v43 }
0x115f   :  { %4993 = vmatprep.subr.mxu1 %v8031_v61  ;;  %4958 = vmatprep.subr.mxu0 %v8031_v61 }
0x1160   :  { %4994 = vmatpush3.msra.mxu1 %v4237_v63  ;;  %4959 = vmatpush3.msra.mxu0 %v4253_v48 }
0x1161   :  { %4995 = vmatprep.subr.mxu1 %v8031_v61  ;;  %4960 = vmatprep.subr.mxu0 %v8031_v61 }
0x1162   :  { %4996 = vmatpush3.msra.mxu1 %v4236_v24  ;;  %4961 = vmatpush3.msra.mxu0 %v4252_v44 }
0x1163   :  { %4997 = vmatprep.subr.mxu1 %v8031_v61  ;;  %4962 = vmatprep.subr.mxu0 %v8031_v61 }
0x1164   :  { %4998 = vmatpush3.msra.mxu1 %v4235_v57  ;;  %4963 = vmatpush3.msra.mxu0 %v4251_v17 }
0x1165   :  { %4999 = vmatprep.subr.mxu1 %v8031_v61  ;;  %4964 = vmatprep.subr.mxu0 %v8031_v61 }
0x1166   :  { %5000 = vmatpush3.msra.mxu1 %v4234_v8  ;;  %4965 = vmatpush3.msra.mxu0 %v4250_v13 }
0x1167   :  { %5001 = vmatprep.subr.mxu1 %v8031_v61  ;;  %4966 = vmatprep.subr.mxu0 %v8031_v61 }
0x1168   :  { %5002 = vmatpush3.msra.mxu1 %v4233_v30  ;;  %4967 = vmatpush3.msra.mxu0 %v4249_v28 }
0x1169   :  { %5003 = vmatprep.subr.mxu1 %v8031_v61  ;;  %4968 = vmatprep.subr.mxu0 %v8031_v61 }
0x116a   :  { %5004 = vmatpush3.msra.mxu1 %v4232_v16  ;;  %4969 = vmatpush3.msra.mxu0 %v4248_v0 }
0x116b   :  { %5005 = vmatprep.subr.mxu1 %v8031_v61  ;;  %4970 = vmatprep.subr.mxu0 %v8031_v61 }
0x116c   :  { %5006 = vmatpush3.msra.mxu1 %v4231_v42  ;;  %4971 = vmatpush3.msra.mxu0 %v4247_v51 }
0x116d   :  { %5007 = vmatprep.subr.mxu1 %v8031_v61  ;;  %4972 = vmatprep.subr.mxu0 %v8031_v61 }
0x116e   :  { %5008 = vmatpush3.msra.mxu1 %v4230_v9  ;;  %4973 = vmatpush3.msra.mxu0 %v4246_v60 }
0x116f   :  { %5009 = vmatprep.subr.mxu1 %v8031_v61  ;;  %4974 = vmatprep.subr.mxu0 %v8031_v61 }
0x1170   :  { %5010 = vmatpush3.msra.mxu1 %v4229_v45  ;;  %4975 = vmatpush3.msra.mxu0 %v4245_v12 }
0x1171   :  { %5011 = vmatprep.subr.mxu1 %v8031_v61  ;;  %4976 = vmatprep.subr.mxu0 %v8031_v61 }
0x1172   :  { %5012 = vmatpush3.msra.mxu1 %v4228_v59  ;;  %5015 = vmatprep.mubr.msk.f32.mxu1 %vm5527_vm2, %v8031_v61  ;;  %v4525_v59 = vld [vmem:[%s7721_s23] ss:$0 sm:$0xff] }
0x1173   :  { %5013 = vmatprep.subr.mxu1 %v8031_v61  ;;  %4977 = vmatpush3.msra.mxu0 %v4244_v25 }
0x1174   :  { %5014 = vmatpush3.msra.mxu1 %v4227_v56  ;;  %4978 = vmatprep.subr.mxu0 %v8031_v61 }
0x1175   :  { %4980 = vmatprep.mubr.msk.f32.mxu0 %vm5527_vm2, %v8031_v61  ;;  %4979 = vmatpush3.msra.mxu0 %v4243_v18 }
0x120b   :  { %v3933_v4 = vpop.f32.mrf.mxu0  ;;  %v4004_v37 = vpop.f32.mrf.mxu1 }
0x120c   :  { %v4009_v58 = vadd.f32 %v3933_v4, %v8037_v50  ;;  %v4011_v23 = vadd.f32 %v4004_v37, %v8042_v41 }
0x120d   :  { %v3935_v49 = vpop.f32.mrf.mxu0  ;;  %v4006_v39 = vpop.f32.mrf.mxu1 }
0x120e   :  { %v4518_v20 = vmul.f32 -1.442695, %v4009_v58  ;;  %v4010_v34 = vadd.f32 %v3935_v49, %v8038_v26  ;;  %v4012_v38 = vadd.f32 %v4006_v39, %v8040_v27 }
0x1210   :  { %5273 = vpow2.f32 %v4518_v20  ;;  %v4519_v7 = vmul.f32 -1.442695, %v4010_v34  ;;  %v4520_v46 = vmul.f32 -1.442695, %v4012_v38 }
0x1212   :  { %5275 = vpow2.f32 %v4519_v7 }
0x1214   :  { %v4136_v61 = vpop.f32.mrf.mxu0  ;;  %v4206_v10 = vpop.f32.mrf.mxu1 }
0x1215   :  { %v4137_v36 = vadd.f32 %v4136_v61, %v4058_v47  ;;  %v4207_v54 = vadd.f32 %v4206_v10, %v4062_v62 }
0x1216   :  { %v4138_v6 = vpop.f32.mrf.mxu0  ;;  %v4208_v33 = vpop.f32.mrf.mxu1 }
0x1217   :  { %v4523_v35 = vmul.f32 -1.442695, %v4137_v36  ;;  %v4209_v14 = vadd.f32 %v4208_v33, %v4066_v1 }
0x1219   :  { %5277 = vpow2.f32 %v4523_v35  ;;  %v4524_v55 = vmul.f32 -1.442695, %v4209_v14 }
0x121a   :  { %5279 = vtanh.f32 %v4011_v23 }
0x121b   :  { %5281 = vpow2.f32 %v4520_v46 }
0x121d   :  { %v5274_v5 = vpop.eup %5273 }
0x121e   :  { %v4022_v29 = vadd.f32 1.0, %v5274_v5 }
0x121f   :  { %v5276_v32 = vpop.eup %5275 }
0x1220   :  { %5283 = vrcp.f32 %v4022_v29  ;;  %v4023_v31 = vadd.f32 1.0, %v5276_v32 }
0x1222   :  { %5285 = vrcp.f32 %v4023_v31 }
0x1223   :  { %5287 = vpow2.f32 %v4524_v55 }
0x1224   :  { %5289 = vtanh.f32 %v4207_v54 }
0x1226   :  { %v5278_v19 = vpop.eup %5277 }
0x1227   :  { %v4214_v15 = vadd.f32 1.0, %v5278_v19  ;;  %v5280_v3 = vpop.eup %5279 }
0x1228   :  { %v5282_v53 = vpop.eup %5281 }
0x1229   :  { %5291 = vrcp.f32 %v4214_v15  ;;  %v4024_v24 = vadd.f32 1.0, %v5282_v53 }
0x122b   :  { %5293 = vrcp.f32 %v4024_v24 }
0x122d   :  { %v5284_v22 = vpop.eup %5283 }
0x122e   :  { %v4033_v63 = vmul.f32 %v5284_v22, %v5280_v3 }
0x122f   :  { %v5286_v43 = vpop.eup %5285 }
0x1230   :  { %v4032_v48 = vmul.f32 %v5286_v43, %v7590_v40  ;;  %v5288_v57 = vpop.eup %5287 }
0x1231   :  { %v4221_v8 = vadd.f32 1.0, %v5288_v57  ;;  %v5290_v17 = vpop.eup %5289 }
0x1232   :  { %v4034_v44 = vadd.f32 %v4033_v63, %v4032_v48 }
0x1234   :  { %5295 = vtanh.f32 %v4034_v44 }
0x1235   :  { %5297 = vrcp.f32 %v4221_v8 }
0x1236   :  { %v5292_v30 = vpop.eup %5291 }
0x1237   :  { %v4224_v13 = vmul.f32 %v5292_v30, %v5290_v17 }
0x1238   :  { %v5294_v16 = vpop.eup %5293 }
0x1239   :  { %5299 = vtanh.f32 %v4224_v13 }
0x1241   :  { %v5296_v28 = vpop.eup %5295 }
0x1242   :  { %v4036_v42 = vmul.f32 %v5296_v28, %v5294_v16  ;;  %v5298_v0 = vpop.eup %5297 }
0x1244   :  { %5016 = vmatmul.mubr.f32.vlgmr.msra.gmra.mxu1 %v4036_v42 }
0x1246   :  { %v5300_v9 = vpop.eup %5299 }
0x1247   :  { %v4226_v51 = vmul.f32 %v5300_v9, %v5298_v0 }
0x1249   :  { %4981 = vmatmul.mubr.f32.vlgmr.msra.gmra.mxu0 %v4226_v51 }
0x1304   :  { %v4395_v45 = vpop.f32.mrf.mxu1 }
0x1306   :  { %v5017_v40 = vpop.f32.mrf.mxu1 }
0x1309   :  { %v4325_v60 = vpop.f32.mrf.mxu0 }
0x130a   :  { %v4396_v12 = vadd.f32 %v4395_v45, %v4325_v60 }
0x130b   :  { %v4982_v56 = vpop.f32.mrf.mxu0 }
0x130c   :  { %v4406_v25 = vadd.f32 %v4525_v59, %v4396_v12 }
0x130e   :  { %4407 = vst [vmem:[%s7722_s24] sm:$0xff] %v4406_v25 }
0x130f   :  { %4412 = vsyncpa [#allocation3], 1 }
0x1310   :  { %4413 = vsyncpa [#allocation5], 1 }
0x1311   :  { %4414 = vsyncpa [#allocation8], 1 }
0x1312   :  { %4415 = vsyncpa [#allocation11], 1 }

</bundles_post_ra>
